<compile_context>
chip_gen: v6e
topology: v6e:2x2x1
jax: 0.10.0
libtpu: 0.0.40
codegen_flags: <defaults>
</compile_context>

<pallas_src>
import functools

import jax
import jax.numpy as jnp
from jax.experimental import pallas as pl
from jax.experimental.pallas import tpu as pltpu

# Module-consistent small config (model_dim divisible by num_heads, and
# dim_per_head // num_heads >= 1 so `scale` stays finite, as with 768/8).
MODEL_DIM = 128
NUM_HEADS = 8
DIM_PER_HEAD = MODEL_DIM // NUM_HEADS   # 16
BATCH = 2
LN_EPS = 1e-5


# ---------------------------------------------------------------------------
# Fused kernel: projections + per-head attention + linear_final + residual + LN
# One grid step == one batch element.
# ---------------------------------------------------------------------------
def _mha_fused_kernel(xq_row_ref, xk_col_ref, xv_col_ref, resid_ref,
                      ctile_ref, wvtile_ref, wftile_ref, gsel_ref,
                      gamma_ref, beta_ref, o_ref, wall_ref, *, num_heads, eps):
    # Shapes (D = model_dim, H = heads, P = D // H):
    #   xq_row : (H, D)   xq_row[h, m] = xq[h*P + m//H]
    #   xk_col : (D, H)   xk_col[n, h] = xk[h*P + n//H]
    #   xv_col : (D, H)   xv_col[n, h] = xv[h*P + n//H]
    #   resid  : (H, P)   query reshaped
    #   ctile  : (D, D)   ctile[n, m] = scale * C[m%H, n%H],  C = Wq2 @ Wk2.T
    #   wvtile : (P, D)   wvtile[p, n] = wv[(n%H)*P + p]
    #   wftile : (P, D)   wftile[p, m] = wf[(m%H)*P + p]
    #   gsel   : (D, P)   gsel[m, g] = 1.0 if m//H == g else 0.0
    xq_row = xq_row_ref[0]
    xk_col = xk_col_ref[0]
    xv_col = xv_col_ref[0]
    ctile = ctile_ref[...]
    wvtile = wvtile_ref[...]
    wftile = wftile_ref[...]

    for h in range(num_heads):                       # unrolled, straight-line
        aq = xq_row[h:h + 1, :]                      # (1, D)  query expansion (row)
        ak = xk_col[:, h:h + 1]                      # (D, 1)  key expansion (col)
        av = xv_col[:, h:h + 1]                      # (D, 1)  value expansion (col)

        # Transposed scores: sT[n, m] = scale * (q_h k_h^T)[m, n]   (pure VPU)
        sT = ak * aq * ctile                         # (D, D)

        # softmax over m (torch Softmax(dim=2)) == lane axis here
        mx = jnp.max(sT, axis=1, keepdims=True)      # (D, 1)
        es = jnp.exp(sT - mx)
        den = jnp.sum(es, axis=1, keepdims=True)     # (D, 1)
        pT = es / den                                # pT[n, m] = P_att[h, m, n]

        # Fold value expansion, then one lane-dense MXU matmul:
        #   o_hT[p, m] = sum_n wv[(n%H)*P+p] * P_att[h,m,n] * xv[h*P+n//H]
        pvT = pT * av                                # (D, D)
        o_hT = jnp.dot(wvtile, pvT,
                       preferred_element_type=jnp.float32)   # (P, D)

        # linear_final folded in on the VPU (no 1-row MXU matmul):
        #   w_row[m] = sum_p O[h, m, p] * wf[(m%H)*P + p]
        w_row = jnp.sum(o_hT * wftile, axis=0, keepdims=True)  # (1, D)
        wall_ref[h:h + 1, :] = w_row

    # Group-of-H lane sums for all heads at once:
    #   y2[h, g] = sum_c w_row_h[H*g + c] == y[h*P + g]
    y2 = jnp.dot(wall_ref[...], gsel_ref[...],
                 preferred_element_type=jnp.float32)          # (H, P)

    # residual + LayerNorm over all D elements (kept in the (H, P) layout)
    x2 = resid_ref[0] + y2
    inv_d = 1.0 / (x2.shape[0] * x2.shape[1])
    mu = jnp.sum(jnp.sum(x2, axis=1, keepdims=True), axis=0, keepdims=True) * inv_d
    dx = x2 - mu
    var = jnp.sum(jnp.sum(dx * dx, axis=1, keepdims=True),
                  axis=0, keepdims=True) * inv_d
    o_ref[0] = (dx * jax.lax.rsqrt(var + eps) * gamma_ref[...]
                + beta_ref[...]).astype(o_ref.dtype)


# ---------------------------------------------------------------------------
# Wrapper: tiny XLA-side reshapes/tiles of [D]-sized vectors, then one kernel.
# ---------------------------------------------------------------------------
def multi_head_attention(query, key, value, params):
    B, D = query.shape
    H, P = NUM_HEADS, DIM_PER_HEAD
    f32 = jnp.float32
    scale = float((P // H) ** (-0.5))         # matches torch integer-div semantics

    wq2 = params["wq"].reshape(H, P)
    wk2 = params["wk"].reshape(H, P)
    wv2 = params["wv"].reshape(H, P)
    wf2 = params["wf"].reshape(H, P)

    # C[i, j] = sum_p wq[i*P+p] * wk[j*P+p]  (exact elementwise+reduce)
    c_mat = jnp.sum(wq2[:, None, :] * wk2[None, :, :], axis=-1)        # (H, H)
    ctile = (scale * jnp.tile(c_mat.T, (D // H, D // H))).astype(f32)  # (D, D)
    wvtile = jnp.tile(wv2.T, (1, D // H)).astype(f32)                  # (P, D)
    wftile = jnp.tile(wf2.T, (1, D // H)).astype(f32)                  # (P, D)
    gsel = (jnp.arange(D)[:, None] // H
            == jnp.arange(D // H)[None, :]).astype(f32)                # (D, P)

    def expand_rows(x):
        # out[b, h, m] = x[b, h*P + m//H]
        return jnp.repeat(x.reshape(B, H, P), H, axis=2)               # (B, H, D)

    xq_row = expand_rows(query)                                        # (B, H, D)
    xk_col = expand_rows(key).transpose(0, 2, 1)                       # (B, D, H)
    xv_col = expand_rows(value).transpose(0, 2, 1)                     # (B, D, H)
    resid2 = query.reshape(B, H, P)                                    # (B, H, P)
    gamma2 = params["gamma"].reshape(H, P)
    beta2 = params["beta"].reshape(H, P)

    kernel = functools.partial(_mha_fused_kernel, num_heads=H, eps=LN_EPS)
    out2 = pl.pallas_call(
        kernel,
        out_shape=jax.ShapeDtypeStruct((B, H, P), query.dtype),
        grid=(B,),
        in_specs=[
            pl.BlockSpec((1, H, D), lambda b: (b, 0, 0)),   # xq_row
            pl.BlockSpec((1, D, H), lambda b: (b, 0, 0)),   # xk_col
            pl.BlockSpec((1, D, H), lambda b: (b, 0, 0)),   # xv_col
            pl.BlockSpec((1, H, P), lambda b: (b, 0, 0)),   # residual
            pl.BlockSpec((D, D), lambda b: (0, 0)),         # ctile
            pl.BlockSpec((P, D), lambda b: (0, 0)),         # wvtile
            pl.BlockSpec((P, D), lambda b: (0, 0)),         # wftile
            pl.BlockSpec((D, P), lambda b: (0, 0)),         # gsel
            pl.BlockSpec((H, P), lambda b: (0, 0)),         # gamma
            pl.BlockSpec((H, P), lambda b: (0, 0)),         # beta
        ],
        out_specs=pl.BlockSpec((1, H, P), lambda b: (b, 0, 0)),
        scratch_shapes=[pltpu.VMEM((H, D), jnp.float32)],
        compiler_params=pltpu.CompilerParams(
            dimension_semantics=("parallel",)),
    )(xq_row, xk_col, xv_col, resid2, ctile, wvtile, wftile, gsel,
      gamma2, beta2)

    return out2.reshape(B, D)


# ---------------------------------------------------------------------------
# Pure-JAX reference (matches the torch module's forward in eval mode)
# ---------------------------------------------------------------------------
def reference(query, key, value, params):
    B, D = query.shape
    H, P = NUM_HEADS, DIM_PER_HEAD
    hp = jax.lax.Precision.HIGHEST
    residual = query

    def proj(x, w):
        return x[:, :, None] * w[None, None, :]

    kp = proj(key, params["wk"]).reshape(B, H, D, P)
    vp = proj(value, params["wv"]).reshape(B, H, D, P)
    qp = proj(query, params["wq"]).reshape(B, H, D, P)
    scale = (P // H) ** (-0.5)
    s = jnp.einsum("bhmp,bhnp->bhmn", qp, kp, precision=hp) * scale
    p = jax.nn.softmax(s, axis=2)
    a = jnp.einsum("bhmn,bhnp->bhmp", p, vp, precision=hp).reshape(B, D, H * P)
    y = jnp.einsum("bmd,d->bm", a, params["wf"], precision=hp)
    x = residual + y
    mean = x.mean(-1, keepdims=True)
    var = ((x - mean) ** 2).mean(-1, keepdims=True)
    return (x - mean) / jnp.sqrt(var + LN_EPS) * params["gamma"] + params["beta"]


if __name__ == "__main__":
    key0 = jax.random.PRNGKey(0)
    kq, kk, kv, kwq, kwk, kwv, kwf = jax.random.split(key0, 7)

    # inputs: [B, model_dim]
    query = jax.random.normal(kq, (BATCH, MODEL_DIM), dtype=jnp.float32)
    keyx = jax.random.normal(kk, (BATCH, MODEL_DIM), dtype=jnp.float32)
    value = jax.random.normal(kv, (BATCH, MODEL_DIM), dtype=jnp.float32)

    # deterministic synthetic parameters (shapes follow the module __init__)
    params = {
        "wq": 0.1 * jax.random.normal(kwq, (MODEL_DIM,), dtype=jnp.float32),  # Linear(1, D)
        "wk": 0.1 * jax.random.normal(kwk, (MODEL_DIM,), dtype=jnp.float32),  # Linear(1, D)
        "wv": 0.1 * jax.random.normal(kwv, (MODEL_DIM,), dtype=jnp.float32),  # Linear(1, D)
        "wf": 0.1 * jax.random.normal(kwf, (MODEL_DIM,), dtype=jnp.float32),  # Linear(D, 1)
        "gamma": jnp.ones((MODEL_DIM,), dtype=jnp.float32),                   # LayerNorm weight
        "beta": jnp.zeros((MODEL_DIM,), dtype=jnp.float32),                   # LayerNorm bias
    }

    out = jax.block_until_ready(
        jax.jit(multi_head_attention)(query, keyx, value, params))
    ref = jax.block_until_ready(reference(query, keyx, value, params))

    assert out.shape == (BATCH, MODEL_DIM), out.shape
    assert jnp.allclose(out, ref, atol=5e-4, rtol=5e-4), (
        float(jnp.max(jnp.abs(out - ref))))
    print("KERNEL_OK")
</pallas_src>

<mosaic_0001>
module attributes {stable_mosaic.version = 11 : i64} {
  func.func @_mha_fused_kernel(%arg0: i32, %arg1: memref<1x8x128xf32, #tpu.memory_space<vmem>>, %arg2: memref<1x128x8xf32, #tpu.memory_space<vmem>>, %arg3: memref<1x128x8xf32, #tpu.memory_space<vmem>>, %arg4: memref<1x8x16xf32, #tpu.memory_space<vmem>>, %arg5: memref<128x128xf32, #tpu.memory_space<vmem>>, %arg6: memref<16x128xf32, #tpu.memory_space<vmem>>, %arg7: memref<16x128xf32, #tpu.memory_space<vmem>>, %arg8: memref<128x16xf32, #tpu.memory_space<vmem>>, %arg9: memref<8x16xf32, #tpu.memory_space<vmem>>, %arg10: memref<8x16xf32, #tpu.memory_space<vmem>>, %arg11: memref<1x8x16xf32, #tpu.memory_space<vmem>>, %arg12: memref<8x128xf32, #tpu.memory_space<vmem>>) attributes {dimension_semantics = [#tpu.dimension_semantics<parallel>], iteration_bounds = array<i64: 2>, scalar_prefetch = 0 : i64, scratch_operands = 1 : i64, tpu.core_type = #tpu.core_type<tc>, window_params = [{transform_indices = @transform_0, window_bounds = array<i64: 1, 8, 128>}, {transform_indices = @transform_1, window_bounds = array<i64: 1, 128, 8>}, {transform_indices = @transform_2, window_bounds = array<i64: 1, 128, 8>}, {transform_indices = @transform_3, window_bounds = array<i64: 1, 8, 16>}, {pipeline_mode = #tpu.pipeline_mode<synchronous>, transform_indices = @transform_4, window_bounds = array<i64: 128, 128>}, {pipeline_mode = #tpu.pipeline_mode<synchronous>, transform_indices = @transform_5, window_bounds = array<i64: 16, 128>}, {pipeline_mode = #tpu.pipeline_mode<synchronous>, transform_indices = @transform_6, window_bounds = array<i64: 16, 128>}, {pipeline_mode = #tpu.pipeline_mode<synchronous>, transform_indices = @transform_7, window_bounds = array<i64: 128, 16>}, {pipeline_mode = #tpu.pipeline_mode<synchronous>, transform_indices = @transform_8, window_bounds = array<i64: 8, 16>}, {pipeline_mode = #tpu.pipeline_mode<synchronous>, transform_indices = @transform_9, window_bounds = array<i64: 8, 16>}, {transform_indices = @transform_10, window_bounds = array<i64: 1, 8, 16>}]} {
    %c0 = arith.constant 0 : index
    %c0_0 = arith.constant 0 : index
    %c0_1 = arith.constant 0 : index
    %0 = vector.load %arg1[%c0, %c0_0, %c0_1] : memref<1x8x128xf32, #tpu.memory_space<vmem>>, vector<1x8x128xf32>
    %1 = vector.shape_cast %0 : vector<1x8x128xf32> to vector<8x128xf32>
    %c0_2 = arith.constant 0 : index
    %c0_3 = arith.constant 0 : index
    %c0_4 = arith.constant 0 : index
    %2 = vector.load %arg2[%c0_2, %c0_3, %c0_4] : memref<1x128x8xf32, #tpu.memory_space<vmem>>, vector<1x128x8xf32>
    %3 = vector.shape_cast %2 : vector<1x128x8xf32> to vector<128x8xf32>
    %c0_5 = arith.constant 0 : index
    %c0_6 = arith.constant 0 : index
    %c0_7 = arith.constant 0 : index
    %4 = vector.load %arg3[%c0_5, %c0_6, %c0_7] : memref<1x128x8xf32, #tpu.memory_space<vmem>>, vector<1x128x8xf32>
    %5 = vector.shape_cast %4 : vector<1x128x8xf32> to vector<128x8xf32>
    %c0_8 = arith.constant 0 : index
    %c0_9 = arith.constant 0 : index
    %6 = vector.load %arg5[%c0_8, %c0_9] : memref<128x128xf32, #tpu.memory_space<vmem>>, vector<128x128xf32>
    %c0_10 = arith.constant 0 : index
    %c0_11 = arith.constant 0 : index
    %7 = vector.load %arg6[%c0_10, %c0_11] : memref<16x128xf32, #tpu.memory_space<vmem>>, vector<16x128xf32>
    %c0_12 = arith.constant 0 : index
    %c0_13 = arith.constant 0 : index
    %8 = vector.load %arg7[%c0_12, %c0_13] : memref<16x128xf32, #tpu.memory_space<vmem>>, vector<16x128xf32>
    %9 = vector.extract_strided_slice %1 {offsets = [0, 0], sizes = [1, 128], strides = [1, 1]} : vector<8x128xf32> to vector<1x128xf32>
    %10 = vector.extract_strided_slice %3 {offsets = [0, 0], sizes = [128, 1], strides = [1, 1]} : vector<128x8xf32> to vector<128x1xf32>
    %11 = vector.extract_strided_slice %5 {offsets = [0, 0], sizes = [128, 1], strides = [1, 1]} : vector<128x8xf32> to vector<128x1xf32>
    %12 = vector.broadcast %10 : vector<128x1xf32> to vector<128x128xf32>
    %13 = vector.broadcast %9 : vector<1x128xf32> to vector<128x128xf32>
    %14 = arith.mulf %12, %13 : vector<128x128xf32>
    %15 = arith.mulf %14, %6 : vector<128x128xf32>
    %cst = arith.constant dense<0xFF800000> : vector<128xf32>
    %16 = vector.multi_reduction <maximumf>, %15, %cst [1] : vector<128x128xf32> to vector<128xf32>
    %17 = vector.shape_cast %16 : vector<128xf32> to vector<128x1xf32>
    %18 = vector.broadcast %17 : vector<128x1xf32> to vector<128x128xf32>
    %19 = arith.subf %15, %18 : vector<128x128xf32>
    %20 = math.exp %19 : vector<128x128xf32>
    %cst_14 = arith.constant dense<0.000000e+00> : vector<128xf32>
    %21 = vector.multi_reduction <add>, %20, %cst_14 [1] : vector<128x128xf32> to vector<128xf32>
    %22 = vector.shape_cast %21 : vector<128xf32> to vector<128x1xf32>
    %23 = vector.broadcast %22 : vector<128x1xf32> to vector<128x128xf32>
    %24 = arith.divf %20, %23 : vector<128x128xf32>
    %25 = vector.broadcast %11 : vector<128x1xf32> to vector<128x128xf32>
    %26 = arith.mulf %24, %25 : vector<128x128xf32>
    %cst_15 = arith.constant dense<0.000000e+00> : vector<16x128xf32>
    %27 = tpu.matmul %7, %26, %cst_15 {dimension_numbers = #tpu.dot_dimension_numbers<[1], [0], [0], [1], [0, 0, 1, 1], [], []>} : vector<16x128xf32>, vector<128x128xf32>, vector<16x128xf32> -> vector<16x128xf32>
    %28 = arith.mulf %27, %8 : vector<16x128xf32>
    %cst_16 = arith.constant dense<0.000000e+00> : vector<128xf32>
    %29 = vector.multi_reduction <add>, %28, %cst_16 [0] : vector<16x128xf32> to vector<128xf32>
    %30 = vector.shape_cast %29 : vector<128xf32> to vector<1x128xf32>
    %c0_17 = arith.constant 0 : index
    %c0_18 = arith.constant 0 : index
    %31 = vector.load %arg12[%c0_17, %c0_18] : memref<8x128xf32, #tpu.memory_space<vmem>>, vector<1x128xf32>
    tpu.vector_store %arg12[%c0_17, %c0_18], %30 {strides = array<i32>} : memref<8x128xf32, #tpu.memory_space<vmem>>, vector<1x128xf32>,
    %32 = vector.extract_strided_slice %1 {offsets = [1, 0], sizes = [1, 128], strides = [1, 1]} : vector<8x128xf32> to vector<1x128xf32>
    %33 = vector.extract_strided_slice %3 {offsets = [0, 1], sizes = [128, 1], strides = [1, 1]} : vector<128x8xf32> to vector<128x1xf32>
    %34 = vector.extract_strided_slice %5 {offsets = [0, 1], sizes = [128, 1], strides = [1, 1]} : vector<128x8xf32> to vector<128x1xf32>
    %35 = vector.broadcast %33 : vector<128x1xf32> to vector<128x128xf32>
    %36 = vector.broadcast %32 : vector<1x128xf32> to vector<128x128xf32>
    %37 = arith.mulf %35, %36 : vector<128x128xf32>
    %38 = arith.mulf %37, %6 : vector<128x128xf32>
    %cst_19 = arith.constant dense<0xFF800000> : vector<128xf32>
    %39 = vector.multi_reduction <maximumf>, %38, %cst_19 [1] : vector<128x128xf32> to vector<128xf32>
    %40 = vector.shape_cast %39 : vector<128xf32> to vector<128x1xf32>
    %41 = vector.broadcast %40 : vector<128x1xf32> to vector<128x128xf32>
    %42 = arith.subf %38, %41 : vector<128x128xf32>
    %43 = math.exp %42 : vector<128x128xf32>
    %cst_20 = arith.constant dense<0.000000e+00> : vector<128xf32>
    %44 = vector.multi_reduction <add>, %43, %cst_20 [1] : vector<128x128xf32> to vector<128xf32>
    %45 = vector.shape_cast %44 : vector<128xf32> to vector<128x1xf32>
    %46 = vector.broadcast %45 : vector<128x1xf32> to vector<128x128xf32>
    %47 = arith.divf %43, %46 : vector<128x128xf32>
    %48 = vector.broadcast %34 : vector<128x1xf32> to vector<128x128xf32>
    %49 = arith.mulf %47, %48 : vector<128x128xf32>
    %cst_21 = arith.constant dense<0.000000e+00> : vector<16x128xf32>
    %50 = tpu.matmul %7, %49, %cst_21 {dimension_numbers = #tpu.dot_dimension_numbers<[1], [0], [0], [1], [0, 0, 1, 1], [], []>} : vector<16x128xf32>, vector<128x128xf32>, vector<16x128xf32> -> vector<16x128xf32>
    %51 = arith.mulf %50, %8 : vector<16x128xf32>
    %cst_22 = arith.constant dense<0.000000e+00> : vector<128xf32>
    %52 = vector.multi_reduction <add>, %51, %cst_22 [0] : vector<16x128xf32> to vector<128xf32>
    %53 = vector.shape_cast %52 : vector<128xf32> to vector<1x128xf32>
    %c1 = arith.constant 1 : index
    %c0_23 = arith.constant 0 : index
    %54 = vector.load %arg12[%c1, %c0_23] : memref<8x128xf32, #tpu.memory_space<vmem>>, vector<1x128xf32>
    tpu.vector_store %arg12[%c1, %c0_23], %53 {strides = array<i32>} : memref<8x128xf32, #tpu.memory_space<vmem>>, vector<1x128xf32>,
    %55 = vector.extract_strided_slice %1 {offsets = [2, 0], sizes = [1, 128], strides = [1, 1]} : vector<8x128xf32> to vector<1x128xf32>
    %56 = vector.extract_strided_slice %3 {offsets = [0, 2], sizes = [128, 1], strides = [1, 1]} : vector<128x8xf32> to vector<128x1xf32>
    %57 = vector.extract_strided_slice %5 {offsets = [0, 2], sizes = [128, 1], strides = [1, 1]} : vector<128x8xf32> to vector<128x1xf32>
    %58 = vector.broadcast %56 : vector<128x1xf32> to vector<128x128xf32>
    %59 = vector.broadcast %55 : vector<1x128xf32> to vector<128x128xf32>
    %60 = arith.mulf %58, %59 : vector<128x128xf32>
    %61 = arith.mulf %60, %6 : vector<128x128xf32>
    %cst_24 = arith.constant dense<0xFF800000> : vector<128xf32>
    %62 = vector.multi_reduction <maximumf>, %61, %cst_24 [1] : vector<128x128xf32> to vector<128xf32>
    %63 = vector.shape_cast %62 : vector<128xf32> to vector<128x1xf32>
    %64 = vector.broadcast %63 : vector<128x1xf32> to vector<128x128xf32>
    %65 = arith.subf %61, %64 : vector<128x128xf32>
    %66 = math.exp %65 : vector<128x128xf32>
    %cst_25 = arith.constant dense<0.000000e+00> : vector<128xf32>
    %67 = vector.multi_reduction <add>, %66, %cst_25 [1] : vector<128x128xf32> to vector<128xf32>
    %68 = vector.shape_cast %67 : vector<128xf32> to vector<128x1xf32>
    %69 = vector.broadcast %68 : vector<128x1xf32> to vector<128x128xf32>
    %70 = arith.divf %66, %69 : vector<128x128xf32>
    %71 = vector.broadcast %57 : vector<128x1xf32> to vector<128x128xf32>
    %72 = arith.mulf %70, %71 : vector<128x128xf32>
    %cst_26 = arith.constant dense<0.000000e+00> : vector<16x128xf32>
    %73 = tpu.matmul %7, %72, %cst_26 {dimension_numbers = #tpu.dot_dimension_numbers<[1], [0], [0], [1], [0, 0, 1, 1], [], []>} : vector<16x128xf32>, vector<128x128xf32>, vector<16x128xf32> -> vector<16x128xf32>
    %74 = arith.mulf %73, %8 : vector<16x128xf32>
    %cst_27 = arith.constant dense<0.000000e+00> : vector<128xf32>
    %75 = vector.multi_reduction <add>, %74, %cst_27 [0] : vector<16x128xf32> to vector<128xf32>
    %76 = vector.shape_cast %75 : vector<128xf32> to vector<1x128xf32>
    %c2 = arith.constant 2 : index
    %c0_28 = arith.constant 0 : index
    %77 = vector.load %arg12[%c2, %c0_28] : memref<8x128xf32, #tpu.memory_space<vmem>>, vector<1x128xf32>
    tpu.vector_store %arg12[%c2, %c0_28], %76 {strides = array<i32>} : memref<8x128xf32, #tpu.memory_space<vmem>>, vector<1x128xf32>,
    %78 = vector.extract_strided_slice %1 {offsets = [3, 0], sizes = [1, 128], strides = [1, 1]} : vector<8x128xf32> to vector<1x128xf32>
    %79 = vector.extract_strided_slice %3 {offsets = [0, 3], sizes = [128, 1], strides = [1, 1]} : vector<128x8xf32> to vector<128x1xf32>
    %80 = vector.extract_strided_slice %5 {offsets = [0, 3], sizes = [128, 1], strides = [1, 1]} : vector<128x8xf32> to vector<128x1xf32>
    %81 = vector.broadcast %79 : vector<128x1xf32> to vector<128x128xf32>
    %82 = vector.broadcast %78 : vector<1x128xf32> to vector<128x128xf32>
    %83 = arith.mulf %81, %82 : vector<128x128xf32>
    %84 = arith.mulf %83, %6 : vector<128x128xf32>
    %cst_29 = arith.constant dense<0xFF800000> : vector<128xf32>
    %85 = vector.multi_reduction <maximumf>, %84, %cst_29 [1] : vector<128x128xf32> to vector<128xf32>
    %86 = vector.shape_cast %85 : vector<128xf32> to vector<128x1xf32>
    %87 = vector.broadcast %86 : vector<128x1xf32> to vector<128x128xf32>
    %88 = arith.subf %84, %87 : vector<128x128xf32>
    %89 = math.exp %88 : vector<128x128xf32>
    %cst_30 = arith.constant dense<0.000000e+00> : vector<128xf32>
    %90 = vector.multi_reduction <add>, %89, %cst_30 [1] : vector<128x128xf32> to vector<128xf32>
    %91 = vector.shape_cast %90 : vector<128xf32> to vector<128x1xf32>
    %92 = vector.broadcast %91 : vector<128x1xf32> to vector<128x128xf32>
    %93 = arith.divf %89, %92 : vector<128x128xf32>
    %94 = vector.broadcast %80 : vector<128x1xf32> to vector<128x128xf32>
    %95 = arith.mulf %93, %94 : vector<128x128xf32>
    %cst_31 = arith.constant dense<0.000000e+00> : vector<16x128xf32>
    %96 = tpu.matmul %7, %95, %cst_31 {dimension_numbers = #tpu.dot_dimension_numbers<[1], [0], [0], [1], [0, 0, 1, 1], [], []>} : vector<16x128xf32>, vector<128x128xf32>, vector<16x128xf32> -> vector<16x128xf32>
    %97 = arith.mulf %96, %8 : vector<16x128xf32>
    %cst_32 = arith.constant dense<0.000000e+00> : vector<128xf32>
    %98 = vector.multi_reduction <add>, %97, %cst_32 [0] : vector<16x128xf32> to vector<128xf32>
    %99 = vector.shape_cast %98 : vector<128xf32> to vector<1x128xf32>
    %c3 = arith.constant 3 : index
    %c0_33 = arith.constant 0 : index
    %100 = vector.load %arg12[%c3, %c0_33] : memref<8x128xf32, #tpu.memory_space<vmem>>, vector<1x128xf32>
    tpu.vector_store %arg12[%c3, %c0_33], %99 {strides = array<i32>} : memref<8x128xf32, #tpu.memory_space<vmem>>, vector<1x128xf32>,
    %101 = vector.extract_strided_slice %1 {offsets = [4, 0], sizes = [1, 128], strides = [1, 1]} : vector<8x128xf32> to vector<1x128xf32>
    %102 = vector.extract_strided_slice %3 {offsets = [0, 4], sizes = [128, 1], strides = [1, 1]} : vector<128x8xf32> to vector<128x1xf32>
    %103 = vector.extract_strided_slice %5 {offsets = [0, 4], sizes = [128, 1], strides = [1, 1]} : vector<128x8xf32> to vector<128x1xf32>
    %104 = vector.broadcast %102 : vector<128x1xf32> to vector<128x128xf32>
    %105 = vector.broadcast %101 : vector<1x128xf32> to vector<128x128xf32>
    %106 = arith.mulf %104, %105 : vector<128x128xf32>
    %107 = arith.mulf %106, %6 : vector<128x128xf32>
    %cst_34 = arith.constant dense<0xFF800000> : vector<128xf32>
    %108 = vector.multi_reduction <maximumf>, %107, %cst_34 [1] : vector<128x128xf32> to vector<128xf32>
    %109 = vector.shape_cast %108 : vector<128xf32> to vector<128x1xf32>
    %110 = vector.broadcast %109 : vector<128x1xf32> to vector<128x128xf32>
    %111 = arith.subf %107, %110 : vector<128x128xf32>
    %112 = math.exp %111 : vector<128x128xf32>
    %cst_35 = arith.constant dense<0.000000e+00> : vector<128xf32>
    %113 = vector.multi_reduction <add>, %112, %cst_35 [1] : vector<128x128xf32> to vector<128xf32>
    %114 = vector.shape_cast %113 : vector<128xf32> to vector<128x1xf32>
    %115 = vector.broadcast %114 : vector<128x1xf32> to vector<128x128xf32>
    %116 = arith.divf %112, %115 : vector<128x128xf32>
    %117 = vector.broadcast %103 : vector<128x1xf32> to vector<128x128xf32>
    %118 = arith.mulf %116, %117 : vector<128x128xf32>
    %cst_36 = arith.constant dense<0.000000e+00> : vector<16x128xf32>
    %119 = tpu.matmul %7, %118, %cst_36 {dimension_numbers = #tpu.dot_dimension_numbers<[1], [0], [0], [1], [0, 0, 1, 1], [], []>} : vector<16x128xf32>, vector<128x128xf32>, vector<16x128xf32> -> vector<16x128xf32>
    %120 = arith.mulf %119, %8 : vector<16x128xf32>
    %cst_37 = arith.constant dense<0.000000e+00> : vector<128xf32>
    %121 = vector.multi_reduction <add>, %120, %cst_37 [0] : vector<16x128xf32> to vector<128xf32>
    %122 = vector.shape_cast %121 : vector<128xf32> to vector<1x128xf32>
    %c4 = arith.constant 4 : index
    %c0_38 = arith.constant 0 : index
    %123 = vector.load %arg12[%c4, %c0_38] : memref<8x128xf32, #tpu.memory_space<vmem>>, vector<1x128xf32>
    tpu.vector_store %arg12[%c4, %c0_38], %122 {strides = array<i32>} : memref<8x128xf32, #tpu.memory_space<vmem>>, vector<1x128xf32>,
    %124 = vector.extract_strided_slice %1 {offsets = [5, 0], sizes = [1, 128], strides = [1, 1]} : vector<8x128xf32> to vector<1x128xf32>
    %125 = vector.extract_strided_slice %3 {offsets = [0, 5], sizes = [128, 1], strides = [1, 1]} : vector<128x8xf32> to vector<128x1xf32>
    %126 = vector.extract_strided_slice %5 {offsets = [0, 5], sizes = [128, 1], strides = [1, 1]} : vector<128x8xf32> to vector<128x1xf32>
    %127 = vector.broadcast %125 : vector<128x1xf32> to vector<128x128xf32>
    %128 = vector.broadcast %124 : vector<1x128xf32> to vector<128x128xf32>
    %129 = arith.mulf %127, %128 : vector<128x128xf32>
    %130 = arith.mulf %129, %6 : vector<128x128xf32>
    %cst_39 = arith.constant dense<0xFF800000> : vector<128xf32>
    %131 = vector.multi_reduction <maximumf>, %130, %cst_39 [1] : vector<128x128xf32> to vector<128xf32>
    %132 = vector.shape_cast %131 : vector<128xf32> to vector<128x1xf32>
    %133 = vector.broadcast %132 : vector<128x1xf32> to vector<128x128xf32>
    %134 = arith.subf %130, %133 : vector<128x128xf32>
    %135 = math.exp %134 : vector<128x128xf32>
    %cst_40 = arith.constant dense<0.000000e+00> : vector<128xf32>
    %136 = vector.multi_reduction <add>, %135, %cst_40 [1] : vector<128x128xf32> to vector<128xf32>
    %137 = vector.shape_cast %136 : vector<128xf32> to vector<128x1xf32>
    %138 = vector.broadcast %137 : vector<128x1xf32> to vector<128x128xf32>
    %139 = arith.divf %135, %138 : vector<128x128xf32>
    %140 = vector.broadcast %126 : vector<128x1xf32> to vector<128x128xf32>
    %141 = arith.mulf %139, %140 : vector<128x128xf32>
    %cst_41 = arith.constant dense<0.000000e+00> : vector<16x128xf32>
    %142 = tpu.matmul %7, %141, %cst_41 {dimension_numbers = #tpu.dot_dimension_numbers<[1], [0], [0], [1], [0, 0, 1, 1], [], []>} : vector<16x128xf32>, vector<128x128xf32>, vector<16x128xf32> -> vector<16x128xf32>
    %143 = arith.mulf %142, %8 : vector<16x128xf32>
    %cst_42 = arith.constant dense<0.000000e+00> : vector<128xf32>
    %144 = vector.multi_reduction <add>, %143, %cst_42 [0] : vector<16x128xf32> to vector<128xf32>
    %145 = vector.shape_cast %144 : vector<128xf32> to vector<1x128xf32>
    %c5 = arith.constant 5 : index
    %c0_43 = arith.constant 0 : index
    %146 = vector.load %arg12[%c5, %c0_43] : memref<8x128xf32, #tpu.memory_space<vmem>>, vector<1x128xf32>
    tpu.vector_store %arg12[%c5, %c0_43], %145 {strides = array<i32>} : memref<8x128xf32, #tpu.memory_space<vmem>>, vector<1x128xf32>,
    %147 = vector.extract_strided_slice %1 {offsets = [6, 0], sizes = [1, 128], strides = [1, 1]} : vector<8x128xf32> to vector<1x128xf32>
    %148 = vector.extract_strided_slice %3 {offsets = [0, 6], sizes = [128, 1], strides = [1, 1]} : vector<128x8xf32> to vector<128x1xf32>
    %149 = vector.extract_strided_slice %5 {offsets = [0, 6], sizes = [128, 1], strides = [1, 1]} : vector<128x8xf32> to vector<128x1xf32>
    %150 = vector.broadcast %148 : vector<128x1xf32> to vector<128x128xf32>
    %151 = vector.broadcast %147 : vector<1x128xf32> to vector<128x128xf32>
    %152 = arith.mulf %150, %151 : vector<128x128xf32>
    %153 = arith.mulf %152, %6 : vector<128x128xf32>
    %cst_44 = arith.constant dense<0xFF800000> : vector<128xf32>
    %154 = vector.multi_reduction <maximumf>, %153, %cst_44 [1] : vector<128x128xf32> to vector<128xf32>
    %155 = vector.shape_cast %154 : vector<128xf32> to vector<128x1xf32>
    %156 = vector.broadcast %155 : vector<128x1xf32> to vector<128x128xf32>
    %157 = arith.subf %153, %156 : vector<128x128xf32>
    %158 = math.exp %157 : vector<128x128xf32>
    %cst_45 = arith.constant dense<0.000000e+00> : vector<128xf32>
    %159 = vector.multi_reduction <add>, %158, %cst_45 [1] : vector<128x128xf32> to vector<128xf32>
    %160 = vector.shape_cast %159 : vector<128xf32> to vector<128x1xf32>
    %161 = vector.broadcast %160 : vector<128x1xf32> to vector<128x128xf32>
    %162 = arith.divf %158, %161 : vector<128x128xf32>
    %163 = vector.broadcast %149 : vector<128x1xf32> to vector<128x128xf32>
    %164 = arith.mulf %162, %163 : vector<128x128xf32>
    %cst_46 = arith.constant dense<0.000000e+00> : vector<16x128xf32>
    %165 = tpu.matmul %7, %164, %cst_46 {dimension_numbers = #tpu.dot_dimension_numbers<[1], [0], [0], [1], [0, 0, 1, 1], [], []>} : vector<16x128xf32>, vector<128x128xf32>, vector<16x128xf32> -> vector<16x128xf32>
    %166 = arith.mulf %165, %8 : vector<16x128xf32>
    %cst_47 = arith.constant dense<0.000000e+00> : vector<128xf32>
    %167 = vector.multi_reduction <add>, %166, %cst_47 [0] : vector<16x128xf32> to vector<128xf32>
    %168 = vector.shape_cast %167 : vector<128xf32> to vector<1x128xf32>
    %c6 = arith.constant 6 : index
    %c0_48 = arith.constant 0 : index
    %169 = vector.load %arg12[%c6, %c0_48] : memref<8x128xf32, #tpu.memory_space<vmem>>, vector<1x128xf32>
    tpu.vector_store %arg12[%c6, %c0_48], %168 {strides = array<i32>} : memref<8x128xf32, #tpu.memory_space<vmem>>, vector<1x128xf32>,
    %170 = vector.extract_strided_slice %1 {offsets = [7, 0], sizes = [1, 128], strides = [1, 1]} : vector<8x128xf32> to vector<1x128xf32>
    %171 = vector.extract_strided_slice %3 {offsets = [0, 7], sizes = [128, 1], strides = [1, 1]} : vector<128x8xf32> to vector<128x1xf32>
    %172 = vector.extract_strided_slice %5 {offsets = [0, 7], sizes = [128, 1], strides = [1, 1]} : vector<128x8xf32> to vector<128x1xf32>
    %173 = vector.broadcast %171 : vector<128x1xf32> to vector<128x128xf32>
    %174 = vector.broadcast %170 : vector<1x128xf32> to vector<128x128xf32>
    %175 = arith.mulf %173, %174 : vector<128x128xf32>
    %176 = arith.mulf %175, %6 : vector<128x128xf32>
    %cst_49 = arith.constant dense<0xFF800000> : vector<128xf32>
    %177 = vector.multi_reduction <maximumf>, %176, %cst_49 [1] : vector<128x128xf32> to vector<128xf32>
    %178 = vector.shape_cast %177 : vector<128xf32> to vector<128x1xf32>
    %179 = vector.broadcast %178 : vector<128x1xf32> to vector<128x128xf32>
    %180 = arith.subf %176, %179 : vector<128x128xf32>
    %181 = math.exp %180 : vector<128x128xf32>
    %cst_50 = arith.constant dense<0.000000e+00> : vector<128xf32>
    %182 = vector.multi_reduction <add>, %181, %cst_50 [1] : vector<128x128xf32> to vector<128xf32>
    %183 = vector.shape_cast %182 : vector<128xf32> to vector<128x1xf32>
    %184 = vector.broadcast %183 : vector<128x1xf32> to vector<128x128xf32>
    %185 = arith.divf %181, %184 : vector<128x128xf32>
    %186 = vector.broadcast %172 : vector<128x1xf32> to vector<128x128xf32>
    %187 = arith.mulf %185, %186 : vector<128x128xf32>
    %cst_51 = arith.constant dense<0.000000e+00> : vector<16x128xf32>
    %188 = tpu.matmul %7, %187, %cst_51 {dimension_numbers = #tpu.dot_dimension_numbers<[1], [0], [0], [1], [0, 0, 1, 1], [], []>} : vector<16x128xf32>, vector<128x128xf32>, vector<16x128xf32> -> vector<16x128xf32>
    %189 = arith.mulf %188, %8 : vector<16x128xf32>
    %cst_52 = arith.constant dense<0.000000e+00> : vector<128xf32>
    %190 = vector.multi_reduction <add>, %189, %cst_52 [0] : vector<16x128xf32> to vector<128xf32>
    %191 = vector.shape_cast %190 : vector<128xf32> to vector<1x128xf32>
    %c7 = arith.constant 7 : index
    %c0_53 = arith.constant 0 : index
    %192 = vector.load %arg12[%c7, %c0_53] : memref<8x128xf32, #tpu.memory_space<vmem>>, vector<1x128xf32>
    tpu.vector_store %arg12[%c7, %c0_53], %191 {strides = array<i32>} : memref<8x128xf32, #tpu.memory_space<vmem>>, vector<1x128xf32>,
    %c0_54 = arith.constant 0 : index
    %c0_55 = arith.constant 0 : index
    %193 = vector.load %arg12[%c0_54, %c0_55] : memref<8x128xf32, #tpu.memory_space<vmem>>, vector<8x128xf32>
    %c0_56 = arith.constant 0 : index
    %c0_57 = arith.constant 0 : index
    %194 = vector.load %arg8[%c0_56, %c0_57] : memref<128x16xf32, #tpu.memory_space<vmem>>, vector<128x16xf32>
    %cst_58 = arith.constant dense<0.000000e+00> : vector<8x16xf32>
    %195 = tpu.matmul %193, %194, %cst_58 {dimension_numbers = #tpu.dot_dimension_numbers<[1], [0], [0], [1], [0, 0, 1, 1], [], []>} : vector<8x128xf32>, vector<128x16xf32>, vector<8x16xf32> -> vector<8x16xf32>
    %c0_59 = arith.constant 0 : index
    %c0_60 = arith.constant 0 : index
    %c0_61 = arith.constant 0 : index
    %196 = vector.load %arg4[%c0_59, %c0_60, %c0_61] : memref<1x8x16xf32, #tpu.memory_space<vmem>>, vector<1x8x16xf32>
    %197 = vector.shape_cast %196 : vector<1x8x16xf32> to vector<8x16xf32>
    %198 = arith.addf %197, %195 : vector<8x16xf32>
    %cst_62 = arith.constant dense<0.000000e+00> : vector<8xf32>
    %199 = vector.multi_reduction <add>, %198, %cst_62 [1] : vector<8x16xf32> to vector<8xf32>
    %200 = vector.shape_cast %199 : vector<8xf32> to vector<8x1xf32>
    %cst_63 = arith.constant dense<0.000000e+00> : vector<1xf32>
    %201 = vector.multi_reduction <add>, %200, %cst_63 [0] : vector<8x1xf32> to vector<1xf32>
    %202 = vector.shape_cast %201 : vector<1xf32> to vector<1x1xf32>
    %cst_64 = arith.constant 7.812500e-03 : f32
    %203 = vector.broadcast %cst_64 : f32 to vector<1x1xf32>
    %204 = arith.mulf %202, %203 : vector<1x1xf32>
    %205 = vector.broadcast %204 : vector<1x1xf32> to vector<8x16xf32>
    %206 = arith.subf %198, %205 : vector<8x16xf32>
    %207 = arith.mulf %206, %206 : vector<8x16xf32>
    %cst_65 = arith.constant dense<0.000000e+00> : vector<8xf32>
    %208 = vector.multi_reduction <add>, %207, %cst_65 [1] : vector<8x16xf32> to vector<8xf32>
    %209 = vector.shape_cast %208 : vector<8xf32> to vector<8x1xf32>
    %cst_66 = arith.constant dense<0.000000e+00> : vector<1xf32>
    %210 = vector.multi_reduction <add>, %209, %cst_66 [0] : vector<8x1xf32> to vector<1xf32>
    %211 = vector.shape_cast %210 : vector<1xf32> to vector<1x1xf32>
    %cst_67 = arith.constant 7.812500e-03 : f32
    %212 = vector.broadcast %cst_67 : f32 to vector<1x1xf32>
    %213 = arith.mulf %211, %212 : vector<1x1xf32>
    %cst_68 = arith.constant 9.99999974E-6 : f32
    %214 = vector.broadcast %cst_68 : f32 to vector<1x1xf32>
    %215 = arith.addf %213, %214 : vector<1x1xf32>
    %216 = math.rsqrt %215 : vector<1x1xf32>
    %217 = vector.broadcast %216 : vector<1x1xf32> to vector<8x16xf32>
    %218 = arith.mulf %206, %217 : vector<8x16xf32>
    %c0_69 = arith.constant 0 : index
    %c0_70 = arith.constant 0 : index
    %219 = vector.load %arg9[%c0_69, %c0_70] : memref<8x16xf32, #tpu.memory_space<vmem>>, vector<8x16xf32>
    %220 = arith.mulf %218, %219 : vector<8x16xf32>
    %c0_71 = arith.constant 0 : index
    %c0_72 = arith.constant 0 : index
    %221 = vector.load %arg10[%c0_71, %c0_72] : memref<8x16xf32, #tpu.memory_space<vmem>>, vector<8x16xf32>
    %222 = arith.addf %220, %221 : vector<8x16xf32>
    %c0_73 = arith.constant 0 : index
    %c0_74 = arith.constant 0 : index
    %c0_75 = arith.constant 0 : index
    %223 = vector.load %arg11[%c0_73, %c0_74, %c0_75] : memref<1x8x16xf32, #tpu.memory_space<vmem>>, vector<1x8x16xf32>
    %224 = vector.shape_cast %223 : vector<1x8x16xf32> to vector<8x16xf32>
    %225 = vector.shape_cast %222 : vector<8x16xf32> to vector<1x8x16xf32>
    tpu.vector_store %arg11[%c0_73, %c0_74, %c0_75], %225 {strides = array<i32>} : memref<1x8x16xf32, #tpu.memory_space<vmem>>, vector<1x8x16xf32>,
    return
  }
  func.func @transform_0(%arg0: i32) -> (i32, i32, i32) {
    %c0_i32 = arith.constant 0 : i32
    %c0_i32_0 = arith.constant 0 : i32
    %c0_i32_1 = arith.constant 0 : i32
    return %arg0, %c0_i32, %c0_i32_0 : i32, i32, i32
  }
  func.func @transform_1(%arg0: i32) -> (i32, i32, i32) {
    %c0_i32 = arith.constant 0 : i32
    %c0_i32_0 = arith.constant 0 : i32
    %c0_i32_1 = arith.constant 0 : i32
    return %arg0, %c0_i32, %c0_i32_0 : i32, i32, i32
  }
  func.func @transform_2(%arg0: i32) -> (i32, i32, i32) {
    %c0_i32 = arith.constant 0 : i32
    %c0_i32_0 = arith.constant 0 : i32
    %c0_i32_1 = arith.constant 0 : i32
    return %arg0, %c0_i32, %c0_i32_0 : i32, i32, i32
  }
  func.func @transform_3(%arg0: i32) -> (i32, i32, i32) {
    %c0_i32 = arith.constant 0 : i32
    %c0_i32_0 = arith.constant 0 : i32
    %c0_i32_1 = arith.constant 0 : i32
    return %arg0, %c0_i32, %c0_i32_0 : i32, i32, i32
  }
  func.func @transform_4(%arg0: i32) -> (i32, i32) {
    %c0_i32 = arith.constant 0 : i32
    %c0_i32_0 = arith.constant 0 : i32
    %c0_i32_1 = arith.constant 0 : i32
    return %c0_i32, %c0_i32_0 : i32, i32
  }
  func.func @transform_5(%arg0: i32) -> (i32, i32) {
    %c0_i32 = arith.constant 0 : i32
    %c0_i32_0 = arith.constant 0 : i32
    %c0_i32_1 = arith.constant 0 : i32
    return %c0_i32, %c0_i32_0 : i32, i32
  }
  func.func @transform_6(%arg0: i32) -> (i32, i32) {
    %c0_i32 = arith.constant 0 : i32
    %c0_i32_0 = arith.constant 0 : i32
    %c0_i32_1 = arith.constant 0 : i32
    return %c0_i32, %c0_i32_0 : i32, i32
  }
  func.func @transform_7(%arg0: i32) -> (i32, i32) {
    %c0_i32 = arith.constant 0 : i32
    %c0_i32_0 = arith.constant 0 : i32
    %c0_i32_1 = arith.constant 0 : i32
    return %c0_i32, %c0_i32_0 : i32, i32
  }
  func.func @transform_8(%arg0: i32) -> (i32, i32) {
    %c0_i32 = arith.constant 0 : i32
    %c0_i32_0 = arith.constant 0 : i32
    %c0_i32_1 = arith.constant 0 : i32
    return %c0_i32, %c0_i32_0 : i32, i32
  }
  func.func @transform_9(%arg0: i32) -> (i32, i32) {
    %c0_i32 = arith.constant 0 : i32
    %c0_i32_0 = arith.constant 0 : i32
    %c0_i32_1 = arith.constant 0 : i32
    return %c0_i32, %c0_i32_0 : i32, i32
  }
  func.func @transform_10(%arg0: i32) -> (i32, i32, i32) {
    %c0_i32 = arith.constant 0 : i32
    %c0_i32_0 = arith.constant 0 : i32
    %c0_i32_1 = arith.constant 0 : i32
    return %arg0, %c0_i32, %c0_i32_0 : i32, i32, i32
  }
}

</mosaic_0001>

<bundles_post_ra>
// kernel: mul.11
= control target key start
LH: loop header
LB: loop body
LE: loop exit
PB: predicated region body
PF: predicated region fallthrough
CT: control target
= control target key end

     0   :  { %s67_s8 = smov 80   ;;  %vm8_vm0 = vcmask 130048   ;;  %s68_s11 = smov 96   ;;  %s118_s0 = inlined_call_operand.vmem [shape: f32[128], index: 0, kind: input, shape index: {}]   ;;  %s119_s1 = inlined_call_operand.vmem [shape: f32[8,16], index: 1, kind: output, shape index: {}]  }
   0x1   :  { %v5_v0 = vld [vmem:[%s118_s0] sm:$0x1]  ;;  %s66_s0 = smov 112   ;;  %s69_s12 = smov 64  }
   0x2   :  { %6 = vst [vmem:[#allocation0] sm:$0x1] %v5_v0  ;;  %s70_s13 = smov 48   ;;  %s71_s14 = smov 32  }
   0x3   :  { %s72_s15 = smov 16  }
   0x9   :  { %v10_v1 = vld [vmem:[#allocation0] sm:$0x1]  }
   0xa   :  { %v22_v2 = vld [vmem:[#allocation0] sm:$0x1]   ;;  %11 = vrot.lane.b32.xlu0 %v10_v1, %s66_s0 }
   0xb   :  { %23 = vrot.lane.b32.xlu1 %v22_v2, %s67_s8  ;;  %v16_v3 = vld [vmem:[#allocation0] sm:$0x1]  }
   0xc   :  { %v28_v4 = vld [vmem:[#allocation0] sm:$0x1]  }
   0xd   :  { %v7_v5 = vld [vmem:[#allocation0] sm:$0x1]  }
   0xe   :  { %9 = vst.msk [vmem:[%s119_s1] sm:$0x1] %vm8_vm0, %v7_v5   ;;  %17 = vrot.lane.b32.xlu0 %v16_v3, %s68_s11  ;;  %v34_v6 = vld [vmem:[#allocation0] sm:$0x1]  }
   0xf   :  { %29 = vrot.lane.b32.xlu1 %v28_v4, %s69_s12  ;;  %v40_v7 = vld [vmem:[#allocation0] sm:$0x1]  }
  0x10   :  { %v46_v8 = vld [vmem:[#allocation0] sm:$0x1]  }
  0x12   :  { %35 = vrot.lane.b32.xlu0 %v34_v6, %s70_s13 }
  0x13   :  { %41 = vrot.lane.b32.xlu1 %v40_v7, %s71_s14 }
  0x16   :  { %47 = vrot.lane.b32.xlu0 %v46_v8, %s72_s15 }
  0x7c   :  { %v12_v9 = vpop.permute.xlu0 %11  }
  0x7d   :  { %v24_v10 = vpop.permute.xlu1 %23   ;;  %52 = vst.msk [vmem:[%s119_s1 + $0x1] sm:$0x1] %vm8_vm0, %v12_v9  }
  0x7e   :  { %54 = vst.msk [vmem:[%s119_s1 + $0x3] sm:$0x1] %vm8_vm0, %v24_v10  }
  0x80   :  { %v18_v11 = vpop.permute.xlu0 %17  }
  0x81   :  { %v30_v12 = vpop.permute.xlu1 %29   ;;  %53 = vst.msk [vmem:[%s119_s1 + $0x2] sm:$0x1] %vm8_vm0, %v18_v11  }
  0x82   :  { %55 = vst.msk [vmem:[%s119_s1 + $0x4] sm:$0x1] %vm8_vm0, %v30_v12  }
  0x84   :  { %v36_v13 = vpop.permute.xlu0 %35  }
  0x85   :  { %v42_v14 = vpop.permute.xlu1 %41   ;;  %56 = vst.msk [vmem:[%s119_s1 + $0x5] sm:$0x1] %vm8_vm0, %v36_v13  }
  0x86   :  { %57 = vst.msk [vmem:[%s119_s1 + $0x6] sm:$0x1] %vm8_vm0, %v42_v14  }
  0x88   :  { %v48_v15 = vpop.permute.xlu0 %47  }
  0x89   :  { %58 = vst.msk [vmem:[%s119_s1 + $0x7] sm:$0x1] %vm8_vm0, %v48_v15  }

// kernel: multi_head_attention.1
= control target key start
LH: loop header
LB: loop body
LE: loop exit
PB: predicated region body
PF: predicated region fallthrough
CT: control target
= control target key end

     0   :  { %s5226_s13 = smov 0   ;;  %s8133_s0 = inlined_call_operand.vmem [shape: f32[2,8,128], index: 0, kind: input, shape index: {}]   ;;  %s8134_s1 = inlined_call_operand.vmem [shape: f32[2,128,8], index: 1, kind: input, shape index: {}]   ;;  %s8135_s2 = inlined_call_operand.vmem [shape: f32[2,128,8], index: 2, kind: input, shape index: {}]   ;;  %s8136_s3 = inlined_call_operand.vmem [shape: f32[2,8,16], index: 3, kind: input, shape index: {}]   ;;  %s8137_s4 = inlined_call_operand.vmem [shape: f32[128,128], index: 4, kind: input, shape index: {}]   ;;  %s8138_s5 = inlined_call_operand.vmem [shape: f32[16,128], index: 5, kind: input, shape index: {}]   ;;  %s8139_s6 = inlined_call_operand.vmem [shape: f32[16,128], index: 6, kind: input, shape index: {}]   ;;  %s8140_s7 = inlined_call_operand.vmem [shape: f32[128,16], index: 7, kind: input, shape index: {}]   ;;  %s8141_s8 = inlined_call_operand.vmem [shape: f32[8,16], index: 8, kind: input, shape index: {}]   ;;  %s8142_s9 = inlined_call_operand.vmem [shape: f32[8,16], index: 9, kind: input, shape index: {}]   ;;  %s8143_s10 = inlined_call_operand.vmem [shape: f32[2,8,16], index: 10, kind: output, shape index: {}]  }
   0x1 LB: > { %s3978_s14 = sadd.s32 4294967295, %s5159_s13   ;;  %p3982_p0 = scmp.ge.s32.totalorder %s5159_s13, 1  ;;  %s5159_s13 = sphi %s5226_s13, %s20_s13  }
   0x2   : > { %p340_p1 = scmp.lt.s32.totalorder %s5159_s13, 3 }
   0x4   : > { %p341_p2 = pnand %p3982_p0, %p340_p1 }
   0x6   : > { %344 = sbr.rel (%p341_p2) target bundleno = 2983 (0xba7), region = 60 }
   0xb   : > { %p390_p3 = scmp.lt.s32.totalorder %s3978_s14, 1  ;;  %v545_v0 = vlaneseq  ;;  %v5161_v1 = vmov 0   ;;  %v5417_v52 = vld [vmem:[%s8137_s4] sm:$0xff]  ;;  %v5424_v55 = vld [vmem:[%s8137_s4 + $0x10] sm:$0xff]  ;;  %v5432_v59 = vld [vmem:[%s8137_s4 + $0x8] sm:$0xff]  ;;  %vm5170_vm0 = vmmov 0  }
   0xc   : > { %4489 = vset.pattern.permute.xlu1 %v5161_v1  ;;  %4488 = vset.pattern.permute.xlu0 %v5161_v1  ;;  %vm3858_vm1 = vcmask 130048  }
   0xd   : > { %s8607_s14 = smov (!%p390_p3, %s3978_s14), 1  ;;  %v5236_v2 = vshrl.u32 %v545_v0, 7 }
   0xe   : > { %s3992_s15 = sshll.u32 %s8607_s14, 7  ;;  %s5243_s16 = sshll.u32 %s8607_s14, 3 }
   0xf   : > { %v972_v3 = vsub.s32 1, %v5236_v2  ;;  %v1381_v4 = vsub.s32 2, %v5236_v2  ;;  %v1790_v5 = vsub.s32 3, %v5236_v2  ;;  %s5250_s19 = scalar_lea.vmem %s8134_s1, %s3992_s15  ;;  %v2199_v6 = vsub.s32 4, %v5236_v2  ;;  %s393_s22 = scalar_lea.vmem %s8133_s0, %s5243_s16 }
  0x10   : > { %v2608_v7 = vsub.s32 5, %v5236_v2  ;;  %v3017_v8 = vsub.s32 6, %v5236_v2  ;;  %v3426_v9 = vsub.s32 7, %v5236_v2  ;;  %v5261_v10 = vld [vmem:[%s5250_s19 + $0x10] sm:$0xff]  ;;  %v5263_v11 = vld [vmem:[%s393_s22] sm:$0xff]  ;;  %v5292_v20 = vld [vmem:[%s5250_s19 + $0x18] sm:$0xff]  ;;  %s5350_s25 = scalar_lea.vmem %s8135_s2, %s3992_s15  ;;  %s407_s18 = scalar_lea.vmem %s8136_s3, %s5243_s16 }
  0x11   : > { %v5266_v12 = vld [vmem:[%s5250_s19] sm:$0xff]  ;;  %477 = vperm.xlu1 %4489, %v5261_v10   ;;  %v5270_v13 = vrot.slane %v5263_v11, %v972_v3  ;;  %v5273_v14 = vrot.slane %v5263_v11, %v1381_v4  ;;  %v5276_v15 = vrot.slane %v5263_v11, %v1790_v5  ;;  %v5279_v16 = vrot.slane %v5263_v11, %v2199_v6  ;;  %v5295_v21 = vld [vmem:[%s5250_s19 + $0x8] sm:$0xff]  ;;  %v5308_v24 = vld [vmem:[%s5250_s19 + $0x38] sm:$0xff]  ;;  %s411_s27 = scalar_lea.vmem %s8143_s10, %s5243_s16 }
  0x12   : > { %v5282_v17 = vrot.slane %v5263_v11, %v2608_v7  ;;  %v5285_v18 = vrot.slane %v5263_v11, %v3017_v8  ;;  %v5288_v19 = vrot.slane %v5263_v11, %v3426_v9  ;;  %467 = vperm.xlu0 %4488, %v5266_v12   ;;  %v5300_v22 = vld [vmem:[%s5250_s19 + $0x28] sm:$0xff]  ;;  %v5303_v23 = vld [vmem:[%s5250_s19 + $0x20] sm:$0xff]  ;;  %v5311_v25 = vld [vmem:[%s5250_s19 + $0x30] sm:$0xff]  ;;  %v547_v48 = vsub.s32 0, %v5236_v2 }
  0x13   : > { %8294 = vst [vmem:[#allocation3_spill] sm:$0xff] %v5273_v14  ;;  %8295 = vst [vmem:[#allocation4_spill] sm:$0xff] %v5276_v15  ;;  %v5316_v26 = vld [vmem:[%s5250_s19 + $0x48] sm:$0xff]  ;;  %v5319_v27 = vld [vmem:[%s5250_s19 + $0x40] sm:$0xff] }
  0x14   : > { %8296 = vst [vmem:[#allocation5_spill] sm:$0xff] %v5279_v16  ;;  %8297 = vst [vmem:[#allocation6_spill] sm:$0xff] %v5282_v17  ;;  %v5324_v28 = vld [vmem:[%s5250_s19 + $0x58] sm:$0xff]  ;;  %v5327_v29 = vld [vmem:[%s5250_s19 + $0x50] sm:$0xff]  ;;  %v5412_v49 = vrot.slane %v5263_v11, %v547_v48 }
  0x15   : > { %8298 = vst [vmem:[#allocation7_spill] sm:$0xff] %v5285_v18  ;;  %8299 = vst [vmem:[#allocation8_spill] sm:$0xff] %v5288_v19  ;;  %482 = vperm.xlu1 %4489, %v5292_v20   ;;  %v5332_v30 = vld [vmem:[%s5250_s19 + $0x68] sm:$0xff]  ;;  %v5335_v31 = vld [vmem:[%s5250_s19 + $0x60] sm:$0xff] }
  0x16   : > { %472 = vperm.xlu0 %4488, %v5295_v21   ;;  %v5340_v32 = vld [vmem:[%s5250_s19 + $0x78] sm:$0xff]  ;;  %v5343_v33 = vld [vmem:[%s5250_s19 + $0x70] sm:$0xff]  ;;  %v5355_v34 = vld [vmem:[%s5350_s25] sm:$0xff] }
  0x17   : > { %v5358_v35 = vld [vmem:[%s5350_s25 + $0x8] sm:$0xff]  ;;  %v5363_v36 = vld [vmem:[%s5350_s25 + $0x10] sm:$0xff]  ;;  %v5366_v37 = vld [vmem:[%s5350_s25 + $0x20] sm:$0xff] }
  0x18   : > { %8300 = vst [vmem:[#allocation9_spill] sm:$0xff] %v5366_v37  ;;  %v5371_v38 = vld [vmem:[%s5350_s25 + $0x18] sm:$0xff]  ;;  %v5374_v39 = vld [vmem:[%s5350_s25 + $0x30] sm:$0xff]  ;;  %v5379_v40 = vld [vmem:[%s5350_s25 + $0x28] sm:$0xff] }
  0x19   : > { %492 = vperm.xlu1 %4489, %v5300_v22   ;;  %8301 = vst [vmem:[#allocation10_spill] sm:$0xff] %v5371_v38  ;;  %8302 = vst [vmem:[#allocation11_spill] sm:$0xff] %v5374_v39  ;;  %v5382_v41 = vld [vmem:[%s5350_s25 + $0x40] sm:$0xff]  ;;  %v5387_v42 = vld [vmem:[%s5350_s25 + $0x38] sm:$0xff] }
  0x1a   : > { %487 = vperm.xlu0 %4488, %v5303_v23   ;;  %8303 = vst [vmem:[#allocation12_spill] sm:$0xff] %v5379_v40  ;;  %8304 = vst [vmem:[#allocation13_spill] sm:$0xff] %v5382_v41  ;;  %v5390_v43 = vld [vmem:[%s5350_s25 + $0x50] sm:$0xff]  ;;  %v5395_v44 = vld [vmem:[%s5350_s25 + $0x48] sm:$0xff] }
  0x1b   : > { %8305 = vst [vmem:[#allocation14_spill] sm:$0xff] %v5387_v42  ;;  %8306 = vst [vmem:[#allocation15_spill] sm:$0xff] %v5390_v43  ;;  %v5398_v45 = vld [vmem:[%s5350_s25 + $0x60] sm:$0xff]  ;;  %v5403_v46 = vld [vmem:[%s5350_s25 + $0x58] sm:$0xff] }
  0x1c   : > { %8307 = vst [vmem:[#allocation16_spill] sm:$0xff] %v5395_v44  ;;  %8308 = vst [vmem:[#allocation17_spill] sm:$0xff] %v5398_v45  ;;  %v5407_v47 = vld [vmem:[%s5350_s25 + $0x68] sm:$0xff]  ;;  %v5446_v2 = vld [vmem:[%s8137_s4 + $0x20] sm:$0xff] }
  0x1d   : > { %502 = vperm.xlu1 %4489, %v5308_v24   ;;  %8309 = vst [vmem:[#allocation18_spill] sm:$0xff] %v5403_v46  ;;  %8310 = vst [vmem:[#allocation19_spill] sm:$0xff] %v5407_v47  ;;  %v5451_v3 = vld [vmem:[%s8137_s4 + $0x18] sm:$0xff]  ;;  %v5466_v11 = vld [vmem:[%s8137_s4 + $0x30] sm:$0xff] }
  0x1e   : > { %497 = vperm.xlu0 %4488, %v5311_v25   ;;  %v5471_v48 = vld [vmem:[%s8137_s4 + $0x28] sm:$0xff]  ;;  %v5526_v16 = vld [vmem:[%s8137_s4 + $0x60] sm:$0xff] }
  0x21   : > { %512 = vperm.xlu1 %4489, %v5316_v26  }
  0x22   : > { %507 = vperm.xlu0 %4488, %v5319_v27  }
  0x25   : > { %522 = vperm.xlu1 %4489, %v5324_v28  }
  0x26   : > { %517 = vperm.xlu0 %4488, %v5327_v29  }
  0x29   : > { %532 = vperm.xlu1 %4489, %v5332_v30  }
  0x2a   : > { %527 = vperm.xlu0 %4488, %v5335_v31  }
  0x2d   : > { %542 = vperm.xlu1 %4489, %v5340_v32  }
  0x2e   : > { %537 = vperm.xlu0 %4488, %v5343_v33  }
  0x31   : > { %727 = vperm.xlu1 %4489, %v5355_v34  }
  0x32   : > { %732 = vperm.xlu0 %4488, %v5358_v35  }
  0x35   : > { %737 = vperm.xlu1 %4489, %v5363_v36  }
  0x36   : > { %747 = vperm.xlu0 %4488, %v5366_v37  }
  0x39   : > { %742 = vperm.xlu1 %4489, %v5371_v38  }
  0x3a   : > { %757 = vperm.xlu0 %4488, %v5374_v39  }
  0x3d   : > { %752 = vperm.xlu1 %4489, %v5379_v40  }
  0x3e   : > { %767 = vperm.xlu0 %4488, %v5382_v41  }
  0x41   : > { %762 = vperm.xlu1 %4489, %v5387_v42  }
  0x42   : > { %777 = vperm.xlu0 %4488, %v5390_v43  }
  0x45   : > { %772 = vperm.xlu1 %4489, %v5395_v44   ;;  %v5566_v44 = vld [vmem:[%s8137_s4 + $0x78] sm:$0xff] }
  0x46   : > { %787 = vperm.xlu0 %4488, %v5398_v45  }
  0x49   : > { %782 = vperm.xlu1 %4489, %v5403_v46   ;;  %v5546_v46 = vld [vmem:[%s8137_s4 + $0x70] sm:$0xff] }
  0x4d   : > { %792 = vperm.xlu1 %4489, %v5407_v47  }
  0x8c   : > { %v478_v50 = vpop.permute.xlu1 %477 }
  0x8d   : > { %v468_v51 = vpop.permute.xlu0 %467  ;;  %v551_v53 = vmul.f32 %v5412_v49, %v478_v50 }
  0x8e   : > { %v549_v54 = vmul.f32 %v5412_v49, %v468_v51 }
  0x8f   : > { %v5437_v61 = vmul.f32 %v551_v53, %v5424_v55 }
  0x90   : > { %v483_v56 = vpop.permute.xlu1 %482  ;;  %v5427_v57 = vmul.f32 %v549_v54, %v5417_v52 }
  0x91   : > { %v473_v58 = vpop.permute.xlu0 %472  ;;  %v552_v62 = vmul.f32 %v5412_v49, %v483_v56 }
  0x92   : > { %v550_v60 = vmul.f32 %v5412_v49, %v473_v58  ;;  %581 = vmax.xlane.f32.xlu0 %v5427_v57 }
  0x93   : > { %v5461_v8 = vmul.f32 %v552_v62, %v5451_v3  ;;  %v5491_v62 = vld [vmem:[%s8137_s4 + $0x38] sm:$0xff] }
  0x94   : > { %v493_v63 = vpop.permute.xlu1 %492  ;;  %v5441_v0 = vmul.f32 %v550_v60, %v5432_v59  ;;  %v5486_v60 = vld [vmem:[%s8137_s4 + $0x40] sm:$0xff] }
  0x95   : > { %v488_v1 = vpop.permute.xlu0 %487  ;;  %v554_v5 = vmul.f32 %v5412_v49, %v493_v63 }
  0x96   : > { %v553_v4 = vmul.f32 %v5412_v49, %v488_v1  ;;  %583 = vmax.xlane.f32.xlu1 %v5441_v0  ;;  %585 = vmax.xlane.f32.xlu0 %v5437_v61 }
  0x97   : > { %v5481_v56 = vmul.f32 %v554_v5, %v5471_v48 }
  0x98   : > { %v503_v6 = vpop.permute.xlu1 %502  ;;  %v5458_v7 = vmul.f32 %v553_v4, %v5446_v2 }
  0x99   : > { %v498_v9 = vpop.permute.xlu0 %497  ;;  %v556_v51 = vmul.f32 %v5412_v49, %v503_v6 }
  0x9a   : > { %v555_v50 = vmul.f32 %v5412_v49, %v498_v9  ;;  %589 = vmax.xlane.f32.xlu1 %v5458_v7  ;;  %587 = vmax.xlane.f32.xlu0 %v5461_v8 }
  0x9b   : > { %v5501_v6 = vmul.f32 %v556_v51, %v5491_v62 }
  0x9c   : > { %v513_v53 = vpop.permute.xlu1 %512  ;;  %v5478_v54 = vmul.f32 %v555_v50, %v5466_v11  ;;  %v5506_v50 = vld [vmem:[%s8137_s4 + $0x50] sm:$0xff] }
  0x9d   : > { %v508_v58 = vpop.permute.xlu0 %507  ;;  %v558_v1 = vmul.f32 %v5412_v49, %v513_v53 }
  0x9e   : > { %v557_v63 = vmul.f32 %v5412_v49, %v508_v58  ;;  %593 = vmax.xlane.f32.xlu1 %v5478_v54  ;;  %591 = vmax.xlane.f32.xlu0 %v5481_v56  ;;  %v5511_v58 = vld [vmem:[%s8137_s4 + $0x48] sm:$0xff] }
  0x9f   : > { %v5521_v19 = vmul.f32 %v558_v1, %v5511_v58 }
  0xa0   : > { %v523_v4 = vpop.permute.xlu1 %522  ;;  %v5498_v5 = vmul.f32 %v557_v63, %v5486_v60 }
  0xa1   : > { %v518_v9 = vpop.permute.xlu0 %517  ;;  %v560_v51 = vmul.f32 %v5412_v49, %v523_v4 }
  0xa2   : > { %v559_v53 = vmul.f32 %v5412_v49, %v518_v9  ;;  %597 = vmax.xlane.f32.xlu1 %v5498_v5  ;;  %595 = vmax.xlane.f32.xlu0 %v5501_v6  ;;  %v5531_v9 = vld [vmem:[%s8137_s4 + $0x58] sm:$0xff] }
  0xa3   : > { %v5541_v15 = vmul.f32 %v560_v51, %v5531_v9 }
  0xa4   : > { %v533_v63 = vpop.permute.xlu1 %532  ;;  %v5518_v18 = vmul.f32 %v559_v53, %v5506_v50 }
  0xa5   : > { %v528_v17 = vpop.permute.xlu0 %527  ;;  %v562_v1 = vmul.f32 %v5412_v49, %v533_v63 }
  0xa6   : > { %v561_v4 = vmul.f32 %v5412_v49, %v528_v17  ;;  %601 = vmax.xlane.f32.xlu1 %v5518_v18  ;;  %599 = vmax.xlane.f32.xlu0 %v5521_v19  ;;  %v5551_v17 = vld [vmem:[%s8137_s4 + $0x68] sm:$0xff] }
  0xa7   : > { %v5561_v45 = vmul.f32 %v562_v1, %v5551_v17  ;;  %v5580_v1 = vld [vmem:[%s5350_s25 + $0x70] sm:$0xff] }
  0xa8   : > { %v5538_v53 = vmul.f32 %v561_v4, %v5526_v16  ;;  %v543_v14 = vpop.permute.xlu1 %542  ;;  %8312 = vst [vmem:[#allocation21_spill] sm:$0xff] %v5580_v1 }
  0xa9   : > { %v538_v47 = vpop.permute.xlu0 %537  ;;  %v564_v51 = vmul.f32 %v5412_v49, %v543_v14  ;;  %v5575_v14 = vld [vmem:[%s5350_s25 + $0x78] sm:$0xff] }
  0xaa   : > { %v563_v63 = vmul.f32 %v5412_v49, %v538_v47  ;;  %605 = vmax.xlane.f32.xlu1 %v5538_v53  ;;  %603 = vmax.xlane.f32.xlu0 %v5541_v15  ;;  %8311 = vst [vmem:[#allocation20_spill] sm:$0xff] %v5575_v14  ;;  %v5162_v49 = vmov 1  }
  0xab   : > { %v5571_v47 = vmul.f32 %v564_v51, %v5566_v44 }
  0xac   : > { %v5558_v4 = vmul.f32 %v563_v63, %v5546_v46 }
  0xae   : > { %609 = vmax.xlane.f32.xlu1 %v5558_v4  ;;  %607 = vmax.xlane.f32.xlu0 %v5561_v45 }
  0xb2   : > { %611 = vmax.xlane.f32.xlu0 %v5571_v47 }
  0xbf   : > { %802 = vperm.xlu1 %4489, %v5575_v14  }
  0xc3   : > { %4491 = vset.pattern.permute.xlu1 %v5162_v49 }
  0xc4   : > { %911 = vperm.xlu1 %4491, %v5295_v21  }
  0xc8   : > { %915 = vperm.xlu1 %4491, %v5261_v10   ;;  %797 = vperm.xlu0 %4488, %v5580_v1   ;;  %v5598_v10 = vpop.permute.xlu1 %727 }
  0xc9   : > { %8313 = vst [vmem:[#allocation22_spill] sm:$0xff] %v5598_v10 }
  0xcc   : > { %923 = vperm.xlu1 %4491, %v5303_v23   ;;  %4490 = vset.pattern.permute.xlu0 %v5162_v49 }
  0xcd   : > { %907 = vperm.xlu0 %4490, %v5266_v12   ;;  %v5600_v12 = vpop.permute.xlu1 %737 }
  0xce   : > { %8314 = vst [vmem:[#allocation23_spill] sm:$0xff] %v5600_v12 }
  0xd0   : > { %931 = vperm.xlu1 %4491, %v5311_v25  }
  0xd1   : > { %919 = vperm.xlu0 %4490, %v5292_v20   ;;  %v5602_v20 = vpop.permute.xlu0 %732  ;;  %v5604_v21 = vpop.permute.xlu1 %742 }
  0xd2   : > { %8315 = vst [vmem:[#allocation24_spill] sm:$0xff] %v5602_v20  ;;  %8316 = vst [vmem:[#allocation25_spill] sm:$0xff] %v5604_v21 }
  0xd4   : > { %939 = vperm.xlu1 %4491, %v5319_v27  }
  0xd5   : > { %927 = vperm.xlu0 %4490, %v5300_v22   ;;  %v5606_v22 = vpop.permute.xlu0 %747  ;;  %v5608_v23 = vpop.permute.xlu1 %752 }
  0xd6   : > { %8317 = vst [vmem:[#allocation26_spill] sm:$0xff] %v5606_v22  ;;  %8318 = vst [vmem:[#allocation27_spill] sm:$0xff] %v5608_v23 }
  0xd8   : > { %947 = vperm.xlu1 %4491, %v5327_v29  }
  0xd9   : > { %935 = vperm.xlu0 %4490, %v5308_v24   ;;  %v5610_v24 = vpop.permute.xlu0 %757  ;;  %v5612_v25 = vpop.permute.xlu1 %762 }
  0xda   : > { %8319 = vst [vmem:[#allocation28_spill] sm:$0xff] %v5610_v24  ;;  %8320 = vst [vmem:[#allocation29_spill] sm:$0xff] %v5612_v25 }
  0xdc   : > { %955 = vperm.xlu1 %4491, %v5335_v31  }
  0xdd   : > { %943 = vperm.xlu0 %4490, %v5316_v26   ;;  %v5614_v26 = vpop.permute.xlu0 %767  ;;  %v5616_v27 = vpop.permute.xlu1 %772 }
  0xde   : > { %8321 = vst [vmem:[#allocation30_spill] sm:$0xff] %v5614_v26  ;;  %8322 = vst [vmem:[#allocation31_spill] sm:$0xff] %v5616_v27 }
  0xe0   : > { %963 = vperm.xlu1 %4491, %v5343_v33  }
  0xe1   : > { %951 = vperm.xlu0 %4490, %v5324_v28   ;;  %v5618_v28 = vpop.permute.xlu0 %777  ;;  %v5620_v29 = vpop.permute.xlu1 %782 }
  0xe2   : > { %8323 = vst [vmem:[#allocation32_spill] sm:$0xff] %v5618_v28  ;;  %8324 = vst [vmem:[#allocation33_spill] sm:$0xff] %v5620_v29 }
  0xe5   : > { %959 = vperm.xlu0 %4490, %v5332_v30   ;;  %v5622_v30 = vpop.permute.xlu0 %787  ;;  %v5624_v31 = vpop.permute.xlu1 %792 }
  0xe6   : > { %8325 = vst [vmem:[#allocation34_spill] sm:$0xff] %v5622_v30  ;;  %8326 = vst [vmem:[#allocation35_spill] sm:$0xff] %v5624_v31 }
  0xe9   : > { %967 = vperm.xlu0 %4490, %v5340_v32  }
 0x11b   : > { %v5626_v32 = vpop.xlane.xlu0 %581 }
 0x11f   : > { %v584_v33 = vpop.xlane.xlu1 %583  ;;  %v5628_v63 = vpop.xlane.xlu0 %585 }
 0x123   : > { %v5630_v51 = vpop.xlane.xlu1 %589  ;;  %v588_v49 = vpop.xlane.xlu0 %587 }
 0x124   : > { %v616_v37 = vsub.f32 %v5461_v8, %v588_v49 }
 0x127   : > { %v5632_v10 = vpop.xlane.xlu1 %593  ;;  %v5634_v20 = vpop.xlane.xlu0 %591 }
 0x128   : > { %v618_v8 = vsub.f32 %v5481_v56, %v5634_v20 }
 0x12a   : > { %v639_v56 = vmul.f32 1.442695, %v618_v8 }
 0x12b   : > { %v5636_v12 = vpop.xlane.xlu1 %597  ;;  %v5638_v21 = vpop.xlane.xlu0 %595 }
 0x12f   : > { %v5640_v22 = vpop.xlane.xlu1 %601  ;;  %v5642_v14 = vpop.xlane.xlu0 %599 }
 0x133   : > { %v5644_v23 = vpop.xlane.xlu1 %605  ;;  %v5646_v24 = vpop.xlane.xlu0 %603 }
 0x137   : > { %v5648_v1 = vpop.xlane.xlu1 %609  ;;  %v5650_v25 = vpop.xlane.xlu0 %607 }
 0x13b   : > { %v5652_v26 = vpop.permute.xlu1 %802  ;;  %v5654_v27 = vpop.xlane.xlu0 %611 }
 0x13f   : > { %v912_v28 = vpop.permute.xlu1 %911 }
 0x140   : > { %v975_v43 = vmul.f32 %v5270_v13, %v912_v28 }
 0x142   : > { %v5658_v29 = vmul.f32 %v975_v43, %v5432_v59 }
 0x143   : > { %v916_v30 = vpop.permute.xlu1 %915  ;;  %v5660_v42 = vpop.permute.xlu0 %797 }
 0x144   : > { %8327 = vst [vmem:[#allocation36_spill] sm:$0xff] %v5660_v42  ;;  %v976_v41 = vmul.f32 %v5270_v13, %v916_v30  ;;  %1008 = vmax.xlane.f32.xlu0 %v5658_v29 }
 0x146   : > { %v5665_v31 = vmul.f32 %v976_v41, %v5424_v55 }
 0x147   : > { %v924_v40 = vpop.permute.xlu1 %923 }
 0x148   : > { %v978_v39 = vmul.f32 %v5270_v13, %v924_v40  ;;  %1010 = vmax.xlane.f32.xlu0 %v5665_v31  ;;  %v908_v38 = vpop.permute.xlu0 %907  ;;  %v614_v40 = vsub.f32 %v5441_v0, %v584_v33 }
 0x149   : > { %v974_v28 = vmul.f32 %v5270_v13, %v908_v38 }
 0x14a   : > { %v5671_v43 = vmul.f32 %v978_v39, %v5446_v2 }
 0x14b   : > { %v932_v59 = vpop.permute.xlu1 %931  ;;  %v5674_v42 = vmul.f32 %v974_v28, %v5417_v52 }
 0x14c   : > { %v980_v30 = vmul.f32 %v5270_v13, %v932_v59  ;;  %1014 = vmax.xlane.f32.xlu0 %v5671_v43  ;;  %v920_v41 = vpop.permute.xlu0 %919 }
 0x14d   : > { %v977_v55 = vmul.f32 %v5270_v13, %v920_v41  ;;  %1006 = vmax.xlane.f32.xlu1 %v5674_v42  ;;  %v631_v41 = vmul.f32 1.442695, %v614_v40  ;;  %v635_v40 = vmul.f32 1.442695, %v616_v37 }
 0x14e   : > { %v5682_v38 = vmul.f32 %v980_v30, %v5466_v11 }
 0x14f   : > { %v940_v39 = vpop.permute.xlu1 %939  ;;  %v5685_v2 = vmul.f32 %v977_v55, %v5451_v3  ;;  %4538 = vpow2.f32 %v631_v41 }
 0x150   : > { %v982_v52 = vmul.f32 %v5270_v13, %v940_v39  ;;  %1018 = vmax.xlane.f32.xlu0 %v5682_v38  ;;  %v928_v28 = vpop.permute.xlu0 %927  ;;  %4540 = vpow2.f32 %v635_v40 }
 0x151   : > { %v979_v59 = vmul.f32 %v5270_v13, %v928_v28  ;;  %1012 = vmax.xlane.f32.xlu1 %v5685_v2  ;;  %4542 = vpow2.f32 %v639_v56 }
 0x152   : > { %v5693_v0 = vmul.f32 %v982_v52, %v5486_v60 }
 0x153   : > { %v948_v11 = vpop.permute.xlu1 %947  ;;  %v5696_v33 = vmul.f32 %v979_v59, %v5471_v48  ;;  %v613_v48 = vsub.f32 %v5427_v57, %v5626_v32 }
 0x154   : > { %v984_v3 = vmul.f32 %v5270_v13, %v948_v11  ;;  %1022 = vmax.xlane.f32.xlu0 %v5693_v0  ;;  %v936_v30 = vpop.permute.xlu0 %935 }
 0x155   : > { %v981_v55 = vmul.f32 %v5270_v13, %v936_v30  ;;  %1016 = vmax.xlane.f32.xlu1 %v5696_v33  ;;  %v629_v20 = vmul.f32 1.442695, %v613_v48 }
 0x156   : > { %v5705_v60 = vmul.f32 %v984_v3, %v5506_v50  ;;  %v620_v50 = vsub.f32 %v5501_v6, %v5638_v21  ;;  %v622_v6 = vsub.f32 %v5521_v19, %v5642_v14  ;;  %v617_v21 = vsub.f32 %v5458_v7, %v5630_v51 }
 0x157   : > { %v956_v49 = vpop.permute.xlu1 %955  ;;  %v5710_v39 = vmul.f32 %v981_v55, %v5491_v62  ;;  %v615_v62 = vsub.f32 %v5437_v61, %v5628_v63  ;;  %4544 = vpow2.f32 %v629_v20  ;;  %v619_v7 = vsub.f32 %v5478_v54, %v5632_v10 }
 0x158   : > { %v986_v52 = vmul.f32 %v5270_v13, %v956_v49  ;;  %1026 = vmax.xlane.f32.xlu0 %v5705_v60  ;;  %v944_v28 = vpop.permute.xlu0 %943  ;;  %v647_v19 = vmul.f32 1.442695, %v622_v6  ;;  %v637_v40 = vmul.f32 1.442695, %v617_v21  ;;  %v621_v54 = vsub.f32 %v5498_v5, %v5636_v12 }
 0x159   : > { %v983_v37 = vmul.f32 %v5270_v13, %v944_v28  ;;  %1020 = vmax.xlane.f32.xlu1 %v5710_v39  ;;  %v641_v49 = vmul.f32 1.442695, %v619_v7  ;;  %v628_v10 = vsub.f32 %v5571_v47, %v5654_v27  ;;  %v625_v47 = vsub.f32 %v5538_v53, %v5644_v23 }
 0x15a   : > { %v5719_v57 = vmul.f32 %v986_v52, %v5526_v16  ;;  %v643_v16 = vmul.f32 1.442695, %v620_v50  ;;  %v623_v52 = vsub.f32 %v5518_v18, %v5640_v22 }
 0x15b   : > { %v964_v32 = vpop.permute.xlu1 %963  ;;  %v5724_v59 = vmul.f32 %v983_v37, %v5511_v58  ;;  %v633_v58 = vmul.f32 1.442695, %v615_v62  ;;  %v653_v22 = vmul.f32 1.442695, %v625_v47  ;;  %v627_v37 = vsub.f32 %v5558_v4, %v5648_v1 }
 0x15c   : > { %v988_v41 = vmul.f32 %v5270_v13, %v964_v32  ;;  %1030 = vmax.xlane.f32.xlu0 %v5719_v57  ;;  %v952_v11 = vpop.permute.xlu0 %951  ;;  %4546 = vpow2.f32 %v643_v16  ;;  %v5745_v14 = vpop.eup %4538  ;;  %v649_v28 = vmul.f32 1.442695, %v623_v52 }
 0x15d   : > { %v985_v3 = vmul.f32 %v5270_v13, %v952_v11  ;;  %1024 = vmax.xlane.f32.xlu1 %v5724_v59  ;;  %4548 = vpow2.f32 %v633_v58  ;;  %v657_v23 = vmul.f32 1.442695, %v627_v37 }
 0x15e   : > { %v5733_v61 = vmul.f32 %v988_v41, %v5546_v46  ;;  %v624_v46 = vsub.f32 %v5541_v15, %v5646_v24  ;;  %4550 = vpow2.f32 %v647_v19  ;;  %v626_v15 = vsub.f32 %v5561_v45, %v5650_v25  ;;  %v5757_v24 = vpop.eup %4540 }
 0x15f   : > { %v5738_v63 = vmul.f32 %v985_v3, %v5531_v9  ;;  %4552 = vpow2.f32 %v637_v40  ;;  %v5768_v45 = vpop.eup %4542  ;;  %v645_v25 = vmul.f32 1.442695, %v621_v54 }
 0x160   : > { %1034 = vmax.xlane.f32.xlu0 %v5733_v61  ;;  %v960_v30 = vpop.permute.xlu0 %959  ;;  %v651_v48 = vmul.f32 1.442695, %v624_v46 }
 0x161   : > { %v987_v55 = vmul.f32 %v5270_v13, %v960_v30  ;;  %1028 = vmax.xlane.f32.xlu1 %v5738_v63 }
 0x162   : > { %4554 = vpow2.f32 %v651_v48 }
 0x163   : > { %v5750_v9 = vmul.f32 %v987_v55, %v5551_v17  ;;  %4556 = vpow2.f32 %v641_v49 }
 0x164   : > { %663 = vadd.xlane.f32.xlu0 %v5745_v14  ;;  %v968_v51 = vpop.permute.xlu0 %967  ;;  %v5772_v5 = vpop.eup %4544 }
 0x165   : > { %v989_v8 = vmul.f32 %v5270_v13, %v968_v51  ;;  %1032 = vmax.xlane.f32.xlu1 %v5750_v9  ;;  %v655_v13 = vmul.f32 1.442695, %v626_v15 }
 0x167   : > { %v5762_v17 = vmul.f32 %v989_v8, %v5566_v44  ;;  %4558 = vpow2.f32 %v655_v13  ;;  %v659_v44 = vmul.f32 1.442695, %v628_v10 }
 0x168   : > { %667 = vadd.xlane.f32.xlu0 %v5757_v24  ;;  %4560 = vpow2.f32 %v645_v25 }
 0x169   : > { %1036 = vmax.xlane.f32.xlu1 %v5762_v17  ;;  %v5776_v12 = vpop.eup %4546  ;;  %4562 = vpow2.f32 %v659_v44 }
 0x16a   : > { %v5780_v27 = vpop.eup %4548  ;;  %4564 = vpow2.f32 %v649_v28 }
 0x16b   : > { %v5784_v18 = vpop.eup %4550  ;;  %4566 = vpow2.f32 %v653_v22 }
 0x16c   : > { %671 = vadd.xlane.f32.xlu0 %v5768_v45  ;;  %v5788_v56 = vpop.eup %4552  ;;  %4568 = vpow2.f32 %v657_v23 }
 0x16d   : > { %661 = vadd.xlane.f32.xlu1 %v5772_v5 }
 0x16f   : > { %v5792_v53 = vpop.eup %4554 }
 0x170   : > { %675 = vadd.xlane.f32.xlu0 %v5776_v12  ;;  %v5794_v50 = vpop.eup %4556 }
 0x171   : > { %665 = vadd.xlane.f32.xlu1 %v5780_v27 }
 0x174   : > { %679 = vadd.xlane.f32.xlu0 %v5784_v18  ;;  %v5798_v20 = vpop.eup %4558 }
 0x175   : > { %669 = vadd.xlane.f32.xlu1 %v5788_v56  ;;  %v5800_v4 = vpop.eup %4560 }
 0x176   : > { %v5804_v1 = vpop.eup %4562 }
 0x177   : > { %v5806_v62 = vpop.eup %4564 }
 0x178   : > { %683 = vadd.xlane.f32.xlu0 %v5792_v53  ;;  %v5810_v32 = vpop.eup %4566 }
 0x179   : > { %673 = vadd.xlane.f32.xlu1 %v5794_v50  ;;  %v5813_v41 = vpop.eup %4568 }
 0x17c   : > { %687 = vadd.xlane.f32.xlu0 %v5798_v20 }
 0x17d   : > { %677 = vadd.xlane.f32.xlu1 %v5800_v4 }
 0x180   : > { %691 = vadd.xlane.f32.xlu0 %v5804_v1 }
 0x181   : > { %681 = vadd.xlane.f32.xlu1 %v5806_v62 }
 0x185   : > { %685 = vadd.xlane.f32.xlu1 %v5810_v32 }
 0x189   : > { %689 = vadd.xlane.f32.xlu1 %v5813_v41 }
 0x1cd   : > { %v1009_v11 = vpop.xlane.xlu0 %1008 }
 0x1ce   : > { %v1039_v3 = vsub.f32 %v5658_v29, %v1009_v11 }
 0x1d0   : > { %v1056_v16 = vmul.f32 1.442695, %v1039_v3 }
 0x1d1   : > { %v1011_v6 = vpop.xlane.xlu0 %1010 }
 0x1d2   : > { %4570 = vpow2.f32 %v1056_v16  ;;  %v1040_v21 = vsub.f32 %v5665_v31, %v1011_v6 }
 0x1d4   : > { %v1058_v40 = vmul.f32 1.442695, %v1040_v21 }
 0x1d5   : > { %v1015_v58 = vpop.xlane.xlu0 %1014 }
 0x1d6   : > { %v1007_v30 = vpop.xlane.xlu1 %1006  ;;  %v1042_v7 = vsub.f32 %v5671_v43, %v1015_v58 }
 0x1d7   : > { %v1038_v55 = vsub.f32 %v5674_v42, %v1007_v30 }
 0x1d8   : > { %v1062_v15 = vmul.f32 1.442695, %v1042_v7 }
 0x1d9   : > { %v1054_v19 = vmul.f32 1.442695, %v1038_v55  ;;  %v1019_v46 = vpop.xlane.xlu0 %1018 }
 0x1da   : > { %v1013_v51 = vpop.xlane.xlu1 %1012  ;;  %v1044_v49 = vsub.f32 %v5682_v38, %v1019_v46 }
 0x1db   : > { %4572 = vpow2.f32 %v1054_v19  ;;  %v1041_v8 = vsub.f32 %v5685_v2, %v1013_v51 }
 0x1dc   : > { %4574 = vpow2.f32 %v1058_v40  ;;  %v1066_v10 = vmul.f32 1.442695, %v1044_v49 }
 0x1dd   : > { %v1060_v48 = vmul.f32 1.442695, %v1041_v8  ;;  %v1023_v29 = vpop.xlane.xlu0 %1022 }
 0x1de   : > { %v1017_v54 = vpop.xlane.xlu1 %1016  ;;  %v1046_v2 = vsub.f32 %v5693_v0, %v1023_v29 }
 0x1df   : > { %v5822_v31 = vpop.eup %4570  ;;  %4576 = vpow2.f32 %v1060_v48  ;;  %v1043_v42 = vsub.f32 %v5696_v33, %v1017_v54 }
 0x1e0   : > { %1088 = vadd.xlane.f32.xlu1 %v5822_v31  ;;  %4578 = vpow2.f32 %v1062_v15  ;;  %v1070_v28 = vmul.f32 1.442695, %v1046_v2 }
 0x1e1   : > { %v1064_v13 = vmul.f32 1.442695, %v1043_v42  ;;  %v1027_v43 = vpop.xlane.xlu0 %1026 }
 0x1e2   : > { %v1021_v25 = vpop.xlane.xlu1 %1020  ;;  %v1048_v47 = vsub.f32 %v5705_v60, %v1027_v43 }
 0x1e3   : > { %4580 = vpow2.f32 %v1064_v13  ;;  %v1045_v52 = vsub.f32 %v5710_v39, %v1021_v25 }
 0x1e4   : > { %4582 = vpow2.f32 %v1066_v10  ;;  %v1074_v11 = vmul.f32 1.442695, %v1048_v47 }
 0x1e5   : > { %v1068_v44 = vmul.f32 1.442695, %v1045_v52  ;;  %v1031_v38 = vpop.xlane.xlu0 %1030 }
 0x1e6   : > { %v1025_v22 = vpop.xlane.xlu1 %1024  ;;  %v1050_v39 = vsub.f32 %v5719_v57, %v1031_v38 }
 0x1e7   : > { %4584 = vpow2.f32 %v1068_v44  ;;  %v1047_v33 = vsub.f32 %v5724_v59, %v1025_v22 }
 0x1e8   : > { %v5830_v37 = vpop.eup %4572  ;;  %4586 = vpow2.f32 %v1070_v28  ;;  %v1078_v21 = vmul.f32 1.442695, %v1050_v39 }
 0x1e9   : > { %v1072_v23 = vmul.f32 1.442695, %v1047_v33  ;;  %1086 = vadd.xlane.f32.xlu0 %v5830_v37  ;;  %v1035_v0 = vpop.xlane.xlu0 %1034  ;;  %v5834_v16 = vpop.eup %4574 }
 0x1ea   : > { %v1029_v3 = vpop.xlane.xlu1 %1028  ;;  %v1052_v30 = vsub.f32 %v5733_v61, %v1035_v0 }
 0x1eb   : > { %4588 = vpow2.f32 %v1072_v23  ;;  %v1049_v60 = vsub.f32 %v5738_v63, %v1029_v3 }
 0x1ec   : > { %v5837_v6 = vpop.eup %4576  ;;  %4590 = vpow2.f32 %v1074_v11  ;;  %v1082_v7 = vmul.f32 1.442695, %v1052_v30  ;;  %v8328_v30 = vld [vmem:[#allocation9_spill] sm:$0xff] }
 0x1ed   : > { %v1076_v58 = vmul.f32 1.442695, %v1049_v60  ;;  %1092 = vadd.xlane.f32.xlu1 %v5837_v6  ;;  %1090 = vadd.xlane.f32.xlu0 %v5834_v16  ;;  %v5841_v59 = vpop.xlane.xlu0 %663  ;;  %v5844_v55 = vpop.eup %4578 }
 0x1ee   : > { %v1033_v57 = vpop.xlane.xlu1 %1032 }
 0x1ef   : > { %4592 = vpow2.f32 %v1076_v58  ;;  %v1051_v19 = vsub.f32 %v5750_v9, %v1033_v57 }
 0x1f0   : > { %v5847_v63 = vpop.eup %4580  ;;  %4594 = vpow2.f32 %v1078_v21 }
 0x1f1   : > { %v1080_v46 = vmul.f32 1.442695, %v1051_v19  ;;  %1096 = vadd.xlane.f32.xlu1 %v5847_v63  ;;  %1094 = vadd.xlane.f32.xlu0 %v5844_v55  ;;  %v5851_v40 = vpop.xlane.xlu0 %667  ;;  %v5853_v8 = vpop.eup %4582 }
 0x1f2   : > { %v1037_v51 = vpop.xlane.xlu1 %1036 }
 0x1f3   : > { %4596 = vpow2.f32 %v1080_v46  ;;  %v1053_v61 = vsub.f32 %v5762_v17, %v1037_v51 }
 0x1f4   : > { %v5856_v48 = vpop.eup %4584  ;;  %4598 = vpow2.f32 %v1082_v7  ;;  %v8332_v7 = vld [vmem:[#allocation36_spill] sm:$0xff] }
 0x1f5   : > { %v1084_v9 = vmul.f32 1.442695, %v1053_v61  ;;  %1100 = vadd.xlane.f32.xlu1 %v5856_v48  ;;  %1098 = vadd.xlane.f32.xlu0 %v5853_v8  ;;  %v672_v29 = vpop.xlane.xlu0 %671  ;;  %v5862_v49 = vpop.eup %4586 }
 0x1f6   : > { %v5860_v15 = vpop.xlane.xlu1 %661 }
 0x1f7   : > { %4600 = vpow2.f32 %v1084_v9 }
 0x1f8   : > { %v5864_v54 = vpop.eup %4588 }
 0x1f9   : > { %1104 = vadd.xlane.f32.xlu1 %v5864_v54  ;;  %1102 = vadd.xlane.f32.xlu0 %v5862_v49  ;;  %v676_v17 = vpop.xlane.xlu0 %675  ;;  %v5870_v13 = vpop.eup %4590 }
 0x1fa   : > { %v5868_v42 = vpop.xlane.xlu1 %665 }
 0x1fc   : > { %v5872_v43 = vpop.eup %4592 }
 0x1fd   : > { %1108 = vadd.xlane.f32.xlu1 %v5872_v43  ;;  %1106 = vadd.xlane.f32.xlu0 %v5870_v13  ;;  %v680_v10 = vpop.xlane.xlu0 %679  ;;  %v5876_v25 = vpop.eup %4594 }
 0x1fe   : > { %v670_v2 = vpop.xlane.xlu1 %669 }
 0x200   : > { %v5878_v52 = vpop.eup %4596 }
 0x201   : > { %1112 = vadd.xlane.f32.xlu1 %v5878_v52  ;;  %1110 = vadd.xlane.f32.xlu0 %v5876_v25  ;;  %v684_v44 = vpop.xlane.xlu0 %683  ;;  %v5882_v28 = vpop.eup %4598 }
 0x202   : > { %v674_v38 = vpop.xlane.xlu1 %673 }
 0x204   : > { %v5884_v47 = vpop.eup %4600 }
 0x205   : > { %1116 = vadd.xlane.f32.xlu1 %v5884_v47  ;;  %1114 = vadd.xlane.f32.xlu0 %v5882_v28  ;;  %v688_v22 = vpop.xlane.xlu0 %687 }
 0x206   : > { %v678_v33 = vpop.xlane.xlu1 %677 }
 0x209   : > { %v692_v23 = vpop.xlane.xlu0 %691 }
 0x20a   : > { %4602 = vrcp.f32 %v692_v23  ;;  %v682_v0 = vpop.xlane.xlu1 %681 }
 0x20b   : > { %4604 = vrcp.f32 %v688_v22 }
 0x20e   : > { %v686_v11 = vpop.xlane.xlu1 %685 }
 0x20f   : > { %4606 = vrcp.f32 %v686_v11  ;;  %v8339_v11 = vld [vmem:[#allocation16_spill] sm:$0xff] }
 0x212   : > { %v690_v39 = vpop.xlane.xlu1 %689 }
 0x213   : > { %4608 = vrcp.f32 %v690_v39  ;;  %v8340_v39 = vld [vmem:[#allocation32_spill] sm:$0xff] }
 0x214   : > { %4610 = vrcp.f32 %v684_v44 }
 0x215   : > { %4612 = vrcp.f32 %v682_v0  ;;  %v8338_v0 = vld [vmem:[#allocation15_spill] sm:$0xff] }
 0x216   : > { %1155 = vperm.xlu1 %4491, %v5358_v35   ;;  %4614 = vrcp.f32 %v680_v10  ;;  %v8329_v35 = vld [vmem:[#allocation10_spill] sm:$0xff] }
 0x217   : > { %v4603_v3 = vpop.eup %4602  ;;  %4616 = vrcp.f32 %v678_v33 }
 0x218   : > { %v724_v60 = vmul.f32 %v4603_v3, %v5804_v1  ;;  %4618 = vrcp.f32 %v676_v17  ;;  %v4605_v21 = vpop.eup %4604  ;;  %v8333_v17 = vld [vmem:[#allocation35_spill] sm:$0xff] }
 0x219   : > { %4620 = vrcp.f32 %v674_v38  ;;  %v8336_v38 = vld [vmem:[#allocation34_spill] sm:$0xff] }
 0x21a   : > { %1159 = vperm.xlu1 %4491, %v5363_v36   ;;  %v820_v58 = vmul.f32 %v5652_v26, %v724_v60  ;;  %v720_v36 = vmul.f32 %v4605_v21, %v5798_v20  ;;  %4622 = vrcp.f32 %v672_v29  ;;  %v8330_v26 = vld [vmem:[#allocation11_spill] sm:$0xff]  ;;  %v8334_v20 = vld [vmem:[#allocation13_spill] sm:$0xff]  ;;  %v8335_v29 = vld [vmem:[#allocation14_spill] sm:$0xff] }
 0x21b   : > { %1151 = vperm.xlu0 %4490, %v5355_v34   ;;  %v8331_v34 = vld [vmem:[#allocation12_spill] sm:$0xff]  ;;  %4624 = vrcp.f32 %v670_v2  ;;  %v8337_v2 = vld [vmem:[#allocation33_spill] sm:$0xff]  ;;  %v8341_v60 = vld [vmem:[#allocation31_spill] sm:$0xff] }
 0x21c   : > { %4155 = vmatprep.subr.mxu0 %v820_v58  ;;  %v4607_v57 = vpop.eup %4606  ;;  %v818_v10 = vmul.f32 %v8333_v17, %v720_v36  ;;  %4626 = vrcp.f32 %v5851_v40  ;;  %v8346_v36 = vld [vmem:[#allocation21_spill] sm:$0xff] }
 0x21d   : > { %4156 = vmatpush3.msra.mxu0 %v820_v58  ;;  %v718_v61 = vmul.f32 %v4607_v57, %v5810_v32  ;;  %4628 = vrcp.f32 %v5868_v42  ;;  %v8344_v57 = vld [vmem:[#allocation30_spill] sm:$0xff] }
 0x21e   : > { %1167 = vperm.xlu1 %4491, %v8328_v30   ;;  %4630 = vrcp.f32 %v5841_v59  ;;  %v8342_v59 = vld [vmem:[#allocation17_spill] sm:$0xff]  ;;  %v8343_v30 = vld [vmem:[#allocation18_spill] sm:$0xff] }
 0x21f   : > { %1163 = vperm.xlu0 %4490, %v8329_v35   ;;  %v817_v22 = vmul.f32 %v8336_v38, %v718_v61  ;;  %4632 = vrcp.f32 %v5860_v15  ;;  %v8345_v15 = vld [vmem:[#allocation29_spill] sm:$0xff]  ;;  %v5163_v61 = vmov 2  }
 0x220   : > { %v4609_v19 = vpop.eup %4608 }
 0x221   : > { %v722_v1 = vmul.f32 %v4609_v19, %v5813_v41  ;;  %v4611_v46 = vpop.eup %4610 }
 0x222   : > { %1175 = vperm.xlu1 %4491, %v8330_v26   ;;  %v4613_v9 = vpop.eup %4612  ;;  %v716_v44 = vmul.f32 %v4611_v46, %v5792_v53  ;;  %v8347_v26 = vld [vmem:[#allocation19_spill] sm:$0xff] }
 0x223   : > { %1171 = vperm.xlu0 %4490, %v8331_v34   ;;  %v819_v51 = vmul.f32 %v8332_v7, %v722_v1  ;;  %v4615_v41 = vpop.eup %4614  ;;  %v714_v32 = vmul.f32 %v4613_v9, %v5806_v62  ;;  %v8348_v34 = vld [vmem:[#allocation28_spill] sm:$0xff]  ;;  %v8349_v9 = vld [vmem:[#allocation27_spill] sm:$0xff] }
 0x224   : > { %v4617_v33 = vpop.eup %4616  ;;  %v816_v53 = vmul.f32 %v8337_v2, %v716_v44  ;;  %v712_v23 = vmul.f32 %v4615_v41, %v5784_v18  ;;  %v5932_v44 = vld [vmem:[%s5250_s19] sm:$0xff]  ;;  %v8350_v41 = vld [vmem:[#allocation20_spill] sm:$0xff]  ;;  %v8353_v2 = vld [vmem:[#allocation23_spill] sm:$0xff] }
 0x225   : > { %4157 = vmatprep.subr.mxu0 %v819_v51  ;;  %v4619_v40 = vpop.eup %4618  ;;  %v815_v62 = vmul.f32 %v8340_v39, %v714_v32  ;;  %v710_v3 = vmul.f32 %v4617_v33, %v5800_v4  ;;  %v5941_v33 = vld [vmem:[%s5250_s19 + $0x10] sm:$0xff]  ;;  %v5957_v39 = vld [vmem:[%s5250_s19 + $0x20] sm:$0xff] }
 0x226   : > { %1183 = vperm.xlu1 %4491, %v8334_v20   ;;  %4158 = vmatpush3.msra.mxu0 %v819_v51  ;;  %v4621_v42 = vpop.eup %4620  ;;  %v814_v18 = vmul.f32 %v8341_v60, %v712_v23  ;;  %v708_v58 = vmul.f32 %v4619_v40, %v5776_v12  ;;  %v5947_v23 = vld [vmem:[%s5250_s19 + $0x8] sm:$0xff]  ;;  %v5973_v60 = vld [vmem:[%s5250_s19 + $0x40] sm:$0xff] }
 0x227   : > { %1179 = vperm.xlu0 %4490, %v8335_v29   ;;  %4159 = vmatprep.subr.mxu0 %v818_v10  ;;  %v4623_v21 = vpop.eup %4622  ;;  %v813_v35 = vmul.f32 %v8344_v57, %v710_v3  ;;  %v706_v4 = vmul.f32 %v4621_v42, %v5794_v50  ;;  %v5965_v3 = vld [vmem:[%s5250_s19 + $0x30] sm:$0xff]  ;;  %v5969_v42 = vld [vmem:[%s5250_s19 + $0x38] sm:$0xff] }
 0x228   : > { %4160 = vmatpush3.msra.mxu0 %v818_v10  ;;  %v4625_v19 = vpop.eup %4624  ;;  %v812_v1 = vmul.f32 %v8345_v15, %v708_v58  ;;  %v704_v12 = vmul.f32 %v4623_v21, %v5768_v45  ;;  %v5981_v58 = vld [vmem:[%s5250_s19 + $0x50] sm:$0xff]  ;;  %v5989_v21 = vld [vmem:[%s5250_s19 + $0x60] sm:$0xff] }
 0x229   : > { %4161 = vmatprep.subr.mxu0 %v817_v22  ;;  %v4627_v46 = vpop.eup %4626  ;;  %v811_v7 = vmul.f32 %v8348_v34, %v706_v4  ;;  %v702_v50 = vmul.f32 %v4625_v19, %v5788_v56  ;;  %v8351_v56 = vld [vmem:[#allocation26_spill] sm:$0xff]  ;;  %8356 = vst [vmem:[#allocation9_spill] sm:$0xff] %v5989_v21  ;;  %v5997_v57 = vld [vmem:[%s5250_s19 + $0x70] sm:$0xff] }
 0x22a   : > { %1191 = vperm.xlu1 %4491, %v8338_v0   ;;  %4162 = vmatpush3.msra.mxu0 %v817_v22  ;;  %v4629_v51 = vpop.eup %4628  ;;  %v810_v17 = vmul.f32 %v8349_v9, %v704_v12  ;;  %v700_v10 = vmul.f32 %v4627_v46, %v5757_v24  ;;  %v8352_v22 = vld [vmem:[#allocation25_spill] sm:$0xff]  ;;  %8358 = vst [vmem:[#allocation11_spill] sm:$0xff] %v5997_v57 }
 0x22b   : > { %1187 = vperm.xlu0 %4490, %v8339_v11   ;;  %4163 = vmatprep.subr.mxu0 %v816_v53  ;;  %v4631_v45 = vpop.eup %4630  ;;  %v809_v20 = vmul.f32 %v8351_v56, %v702_v50  ;;  %v698_v29 = vmul.f32 %v4629_v51, %v5780_v27  ;;  %v5952_v0 = vld [vmem:[%s5250_s19 + $0x18] sm:$0xff] }
 0x22c   : > { %4164 = vmatpush3.msra.mxu0 %v816_v53  ;;  %v4633_v38 = vpop.eup %4632  ;;  %v808_v32 = vmul.f32 %v8352_v22, %v700_v10  ;;  %v696_v24 = vmul.f32 %v4631_v45, %v5745_v14  ;;  %v8354_v14 = vld [vmem:[#allocation24_spill] sm:$0xff] }
 0x22d   : > { %4165 = vmatprep.subr.mxu0 %v815_v62  ;;  %v807_v53 = vmul.f32 %v8353_v2, %v698_v29  ;;  %v694_v27 = vmul.f32 %v4633_v38, %v5772_v5  ;;  %v8355_v5 = vld [vmem:[#allocation22_spill] sm:$0xff] }
 0x22e   : > { %1199 = vperm.xlu1 %4491, %v8342_v59   ;;  %4166 = vmatpush3.msra.mxu0 %v815_v62  ;;  %v806_v40 = vmul.f32 %v8354_v14, %v696_v24  ;;  %v5961_v62 = vld [vmem:[%s5250_s19 + $0x28] sm:$0xff]  ;;  %v5985_v59 = vld [vmem:[%s5250_s19 + $0x58] sm:$0xff] }
 0x22f   : > { %1195 = vperm.xlu0 %4490, %v8343_v30   ;;  %4167 = vmatprep.subr.mxu0 %v814_v18  ;;  %v805_v11 = vmul.f32 %v8355_v5, %v694_v27  ;;  %v5993_v30 = vld [vmem:[%s5250_s19 + $0x68] sm:$0xff] }
 0x230   : > { %4168 = vmatpush3.msra.mxu0 %v814_v18  ;;  %v5977_v18 = vld [vmem:[%s5250_s19 + $0x48] sm:$0xff]  ;;  %8357 = vst [vmem:[#allocation10_spill] sm:$0xff] %v5993_v30 }
 0x231   : > { %4169 = vmatprep.subr.mxu0 %v813_v35 }
 0x232   : > { %1207 = vperm.xlu1 %4491, %v8346_v36   ;;  %4170 = vmatpush3.msra.mxu0 %v813_v35  ;;  %v6001_v35 = vld [vmem:[%s5250_s19 + $0x78] sm:$0xff] }
 0x233   : > { %1203 = vperm.xlu0 %4490, %v8347_v26   ;;  %4171 = vmatprep.subr.mxu0 %v812_v1  ;;  %8359 = vst [vmem:[#allocation12_spill] sm:$0xff] %v6001_v35 }
 0x234   : > { %4172 = vmatpush3.msra.mxu0 %v812_v1 }
 0x235   : > { %4173 = vmatprep.subr.mxu0 %v811_v7 }
 0x236   : > { %4492 = vset.pattern.permute.xlu1 %v5163_v61  ;;  %4174 = vmatpush3.msra.mxu0 %v811_v7 }
 0x237   : > { %1316 = vperm.xlu1 %4492, %v5932_v44   ;;  %1211 = vperm.xlu0 %4490, %v8350_v41  }
 0x238   : > { %4175 = vmatprep.subr.mxu0 %v810_v17 }
 0x239   : > { %4176 = vmatpush3.msra.mxu0 %v810_v17 }
 0x23a   : > { %4177 = vmatprep.subr.mxu0 %v809_v20 }
 0x23b   : > { %4178 = vmatpush3.msra.mxu0 %v809_v20  ;;  %1324 = vperm.xlu1 %4492, %v5941_v33  }
 0x23c   : > { %4493 = vset.pattern.permute.xlu0 %v5163_v61  ;;  %4179 = vmatprep.subr.mxu0 %v808_v32 }
 0x23d   : > { %1320 = vperm.xlu0 %4493, %v5947_v23   ;;  %4180 = vmatpush3.msra.mxu0 %v808_v32 }
 0x23e   : > { %4181 = vmatprep.subr.mxu0 %v807_v53 }
 0x23f   : > { %4182 = vmatpush3.msra.mxu0 %v807_v53  ;;  %1328 = vperm.xlu1 %4492, %v5952_v0  }
 0x240   : > { %4183 = vmatprep.subr.mxu0 %v806_v40 }
 0x241   : > { %1332 = vperm.xlu0 %4493, %v5957_v39   ;;  %4184 = vmatpush3.msra.mxu0 %v806_v40 }
 0x242   : > { %4185 = vmatprep.subr.mxu0 %v805_v11 }
 0x243   : > { %4186 = vmatpush3.msra.mxu0 %v805_v11  ;;  %1336 = vperm.xlu1 %4492, %v5961_v62  }
 0x245   : > { %1340 = vperm.xlu0 %4493, %v5965_v3  }
 0x247   : > { %1344 = vperm.xlu1 %4492, %v5969_v42  }
 0x249   : > { %1348 = vperm.xlu0 %4493, %v5973_v60  }
 0x24b   : > { %1352 = vperm.xlu1 %4492, %v5977_v18  }
 0x24d   : > { %1356 = vperm.xlu0 %4493, %v5981_v58  }
 0x24f   : > { %1360 = vperm.xlu1 %4492, %v5985_v59  }
 0x251   : > { %1364 = vperm.xlu0 %4493, %v5989_v21  }
 0x253   : > { %1368 = vperm.xlu1 %4492, %v5993_v30  }
 0x255   : > { %1372 = vperm.xlu0 %4493, %v5997_v57  }
 0x257   : > { %1376 = vperm.xlu1 %4492, %v6001_v35  }
 0x269   : > { %v6004_v4 = vpop.xlane.xlu1 %1088 }
 0x272   : > { %v6006_v19 = vpop.xlane.xlu0 %1086 }
 0x276   : > { %v6008_v15 = vpop.xlane.xlu1 %1092  ;;  %v6010_v1 = vpop.xlane.xlu0 %1090 }
 0x27a   : > { %v1097_v36 = vpop.xlane.xlu1 %1096  ;;  %v1095_v12 = vpop.xlane.xlu0 %1094 }
 0x27e   : > { %v1101_v46 = vpop.xlane.xlu1 %1100  ;;  %v1099_v26 = vpop.xlane.xlu0 %1098 }
 0x282   : > { %v1105_v34 = vpop.xlane.xlu1 %1104  ;;  %v1103_v7 = vpop.xlane.xlu0 %1102 }
 0x286   : > { %v1109_v50 = vpop.xlane.xlu1 %1108  ;;  %v1107_v51 = vpop.xlane.xlu0 %1106 }
 0x28a   : > { %v1113_v61 = vpop.xlane.xlu1 %1112  ;;  %v1111_v9 = vpop.xlane.xlu0 %1110 }
 0x28e   : > { %v1117_v17 = vpop.xlane.xlu1 %1116  ;;  %v1115_v10 = vpop.xlane.xlu0 %1114 }
 0x28f   : > { %4634 = vrcp.f32 %v1117_v17 }
 0x290   : > { %4636 = vrcp.f32 %v1115_v10 }
 0x291   : > { %4638 = vrcp.f32 %v1113_v61 }
 0x292   : > { %v6012_v45 = vpop.permute.xlu1 %1155  ;;  %4640 = vrcp.f32 %v1111_v9  ;;  %v8360_v9 = vld [vmem:[#allocation3_spill] sm:$0xff] }
 0x293   : > { %4642 = vrcp.f32 %v1109_v50 }
 0x294   : > { %4644 = vrcp.f32 %v1107_v51 }
 0x295   : > { %4646 = vrcp.f32 %v1105_v34 }
 0x296   : > { %v6014_v41 = vpop.permute.xlu1 %1159  ;;  %v6016_v56 = vpop.permute.xlu0 %1151  ;;  %4648 = vrcp.f32 %v1103_v7 }
 0x297   : > { %4650 = vrcp.f32 %v1101_v46  ;;  %v6041_v46 = vld [vmem:[%s8137_s4] sm:$0xff] }
 0x298   : > { %4652 = vrcp.f32 %v1099_v26 }
 0x299   : > { %4654 = vrcp.f32 %v1097_v36 }
 0x29a   : > { %v6018_v20 = vpop.permute.xlu1 %1167  ;;  %v6020_v29 = vpop.permute.xlu0 %1163  ;;  %4656 = vrcp.f32 %v1095_v12  ;;  %v6054_v12 = vld [vmem:[%s8137_s4 + $0x10] sm:$0xff] }
 0x29b   : > { %4658 = vrcp.f32 %v6008_v15 }
 0x29c   : > { %v4635_v40 = vpop.eup %4634  ;;  %4660 = vrcp.f32 %v6010_v1 }
 0x29d   : > { %v4637_v17 = vpop.eup %4636  ;;  %v1149_v35 = vmul.f32 %v4635_v40, %v5884_v47  ;;  %4662 = vrcp.f32 %v6004_v4 }
 0x29e   : > { %v6022_v38 = vpop.permute.xlu1 %1175  ;;  %v6024_v22 = vpop.permute.xlu0 %1171  ;;  %v1147_v30 = vmul.f32 %v4637_v17, %v5882_v28  ;;  %4664 = vrcp.f32 %v6006_v19 }
 0x29f   : > { %v4639_v10 = vpop.eup %4638 }
 0x2a0   : > { %v4641_v21 = vpop.eup %4640  ;;  %v1145_v7 = vmul.f32 %v4639_v10, %v5878_v52 }
 0x2a1   : > { %v4643_v26 = vpop.eup %4642 }
 0x2a2   : > { %v6026_v32 = vpop.permute.xlu1 %1183  ;;  %v6028_v24 = vpop.permute.xlu0 %1179  ;;  %v1141_v17 = vmul.f32 %v4643_v26, %v5872_v43  ;;  %v6065_v43 = vld [vmem:[%s8137_s4 + $0x8] sm:$0xff] }
 0x2a3   : > { %v4645_v40 = vpop.eup %4644 }
 0x2a4   : > { %v4647_v36 = vpop.eup %4646  ;;  %v1139_v15 = vmul.f32 %v4645_v40, %v5870_v13  ;;  %v6091_v40 = vld [vmem:[%s8137_s4 + $0x20] sm:$0xff] }
 0x2a5   : > { %v1137_v13 = vmul.f32 %v4647_v36, %v5864_v54 }
 0x2a6   : > { %v6030_v2 = vpop.permute.xlu1 %1191  ;;  %v6032_v53 = vpop.permute.xlu0 %1187 }
 0x2aa   : > { %v1200_v27 = vpop.permute.xlu1 %1199  ;;  %v1196_v14 = vpop.permute.xlu0 %1195 }
 0x2ab   : > { %v1225_v10 = vmul.f32 %v1196_v14, %v1141_v17 }
 0x2ae   : > { %v1208_v5 = vpop.permute.xlu1 %1207  ;;  %v1204_v11 = vpop.permute.xlu0 %1203 }
 0x2af   : > { %v1228_v34 = vmul.f32 %v1208_v5, %v1147_v30 }
 0x2b2   : > { %v1317_v61 = vpop.permute.xlu1 %1316  ;;  %v1212_v57 = vpop.permute.xlu0 %1211 }
 0x2b3   : > { %v1383_v50 = vmul.f32 %v8360_v9, %v1317_v61  ;;  %v1229_v51 = vmul.f32 %v1212_v57, %v1149_v35  ;;  %v1143_v57 = vmul.f32 %v4641_v21, %v5876_v25  ;;  %v1227_v35 = vmul.f32 %v1204_v11, %v1145_v7 }
 0x2b5   : > { %v6044_v47 = vmul.f32 %v6041_v46, %v1383_v50  ;;  %4190 = vmatprep.subr.mxu1 %v1229_v51  ;;  %v1226_v5 = vmul.f32 %v1200_v27, %v1143_v57  ;;  %v4649_v27 = vpop.eup %4648 }
 0x2b6   : > { %v1325_v28 = vpop.permute.xlu1 %1324  ;;  %4191 = vmatpush3.msra.mxu1 %v1229_v51  ;;  %v4651_v14 = vpop.eup %4650  ;;  %v1224_v51 = vmul.f32 %v6030_v2, %v1139_v15  ;;  %v1135_v54 = vmul.f32 %v4649_v27, %v5862_v49  ;;  %v6115_v15 = vld [vmem:[%s8137_s4 + $0x30] sm:$0xff] }
 0x2b7   : > { %v1385_v30 = vmul.f32 %v8360_v9, %v1325_v28  ;;  %1415 = vmax.xlane.f32.xlu0 %v6044_v47  ;;  %4192 = vmatprep.subr.mxu1 %v1228_v34  ;;  %v4653_v2 = vpop.eup %4652  ;;  %v1223_v28 = vmul.f32 %v6032_v53, %v1137_v13  ;;  %v1133_v49 = vmul.f32 %v4651_v14, %v5856_v48  ;;  %v6127_v13 = vld [vmem:[%s8137_s4 + $0x38] sm:$0xff] }
 0x2b8   : > { %v1321_v52 = vpop.permute.xlu0 %1320  ;;  %4193 = vmatpush3.msra.mxu1 %v1228_v34  ;;  %v6078_v34 = vld [vmem:[%s8137_s4 + $0x18] sm:$0xff]  ;;  %v1222_v53 = vmul.f32 %v6026_v32, %v1135_v54  ;;  %v1131_v48 = vmul.f32 %v4653_v2, %v5853_v8  ;;  %v6139_v54 = vld [vmem:[%s8137_s4 + $0x40] sm:$0xff] }
 0x2b9   : > { %v6057_v25 = vmul.f32 %v6054_v12, %v1385_v30  ;;  %v1384_v21 = vmul.f32 %v8360_v9, %v1321_v52  ;;  %4194 = vmatprep.subr.mxu1 %v1227_v35  ;;  %v4655_v30 = vpop.eup %4654  ;;  %v6103_v52 = vld [vmem:[%s8137_s4 + $0x28] sm:$0xff]  ;;  %v1221_v32 = vmul.f32 %v6028_v24, %v1133_v49 }
 0x2ba   : > { %v1329_v11 = vpop.permute.xlu1 %1328  ;;  %4195 = vmatpush3.msra.mxu1 %v1227_v35  ;;  %v1129_v8 = vmul.f32 %v4655_v30, %v5847_v63  ;;  %v1220_v24 = vmul.f32 %v6022_v38, %v1131_v48  ;;  %v6151_v49 = vld [vmem:[%s8137_s4 + $0x48] sm:$0xff]  ;;  %v6163_v48 = vld [vmem:[%s8137_s4 + $0x50] sm:$0xff] }
 0x2bb   : > { %v6068_v61 = vmul.f32 %v6065_v43, %v1384_v21  ;;  %v1386_v50 = vmul.f32 %v8360_v9, %v1329_v11  ;;  %1419 = vmax.xlane.f32.xlu0 %v6057_v25  ;;  %4196 = vmatprep.subr.mxu1 %v1226_v5  ;;  %v4657_v21 = vpop.eup %4656 }
 0x2bc   : > { %v1333_v1 = vpop.permute.xlu0 %1332  ;;  %4197 = vmatpush3.msra.mxu1 %v1226_v5  ;;  %v1127_v63 = vmul.f32 %v4657_v21, %v5844_v55  ;;  %v1219_v38 = vmul.f32 %v6024_v22, %v1129_v8 }
 0x2bd   : > { %v6081_v7 = vmul.f32 %v6078_v34, %v1386_v50  ;;  %v1387_v26 = vmul.f32 %v8360_v9, %v1333_v1  ;;  %1417 = vmax.xlane.f32.xlu1 %v6068_v61  ;;  %4198 = vmatprep.subr.mxu1 %v1225_v10  ;;  %v4659_v50 = vpop.eup %4658 }
 0x2be   : > { %v1337_v4 = vpop.permute.xlu1 %1336  ;;  %4199 = vmatpush3.msra.mxu1 %v1225_v10  ;;  %v1125_v55 = vmul.f32 %v4659_v50, %v5837_v6  ;;  %v1218_v22 = vmul.f32 %v6018_v20, %v1127_v63 }
 0x2bf   : > { %v6094_v57 = vmul.f32 %v6091_v40, %v1387_v26  ;;  %v1388_v35 = vmul.f32 %v8360_v9, %v1337_v4  ;;  %1421 = vmax.xlane.f32.xlu0 %v6081_v7  ;;  %4200 = vmatprep.subr.mxu1 %v1224_v51  ;;  %v4661_v26 = vpop.eup %4660 }
 0x2c0   : > { %v1341_v19 = vpop.permute.xlu0 %1340  ;;  %4201 = vmatpush3.msra.mxu1 %v1224_v51  ;;  %v1123_v6 = vmul.f32 %v4661_v26, %v5834_v16  ;;  %v1217_v20 = vmul.f32 %v6020_v29, %v1125_v55  ;;  %v6175_v29 = vld [vmem:[%s8137_s4 + $0x58] sm:$0xff]  ;;  %v6208_v55 = vld [vmem:[%s8137_s4 + $0x70] sm:$0xff] }
 0x2c1   : > { %v6106_v36 = vmul.f32 %v6103_v52, %v1388_v35  ;;  %v1389_v5 = vmul.f32 %v8360_v9, %v1341_v19  ;;  %1423 = vmax.xlane.f32.xlu1 %v6094_v57  ;;  %4202 = vmatprep.subr.mxu1 %v1223_v28  ;;  %v4663_v35 = vpop.eup %4662  ;;  %8363 = vst [vmem:[#allocation13_spill] sm:$0xff] %v6208_v55 }
 0x2c2   : > { %v1345_v17 = vpop.permute.xlu1 %1344  ;;  %4203 = vmatpush3.msra.mxu1 %v1223_v28  ;;  %v1121_v16 = vmul.f32 %v4663_v35, %v5822_v31  ;;  %v6218_v35 = vld [vmem:[%s8137_s4 + $0x78] sm:$0xff] }
 0x2c3   : > { %v6118_v11 = vmul.f32 %v6115_v15, %v1389_v5  ;;  %v1390_v27 = vmul.f32 %v8360_v9, %v1345_v17  ;;  %1425 = vmax.xlane.f32.xlu0 %v6106_v36  ;;  %4204 = vmatprep.subr.mxu1 %v1222_v53  ;;  %v4665_v5 = vpop.eup %4664  ;;  %8364 = vst [vmem:[#allocation14_spill] sm:$0xff] %v6218_v35 }
 0x2c4   : > { %v1349_v10 = vpop.permute.xlu0 %1348  ;;  %4205 = vmatpush3.msra.mxu1 %v1222_v53  ;;  %v1119_v50 = vmul.f32 %v4665_v5, %v5830_v37 }
 0x2c5   : > { %v6130_v1 = vmul.f32 %v6127_v13, %v1390_v27  ;;  %v1391_v14 = vmul.f32 %v8360_v9, %v1349_v10  ;;  %1427 = vmax.xlane.f32.xlu1 %v6118_v11  ;;  %4206 = vmatprep.subr.mxu1 %v1221_v32  ;;  %v1216_v27 = vmul.f32 %v6014_v41, %v1123_v6  ;;  %v6187_v41 = vld [vmem:[%s8137_s4 + $0x60] sm:$0xff] }
 0x2c6   : > { %v1353_v51 = vpop.permute.xlu1 %1352  ;;  %4207 = vmatpush3.msra.mxu1 %v1221_v32  ;;  %8361 = vst [vmem:[#allocation36_spill] sm:$0xff] %v6187_v41  ;;  %v1214_v37 = vmul.f32 %v6016_v56, %v1119_v50 }
 0x2c7   : > { %v6142_v4 = vmul.f32 %v6139_v54, %v1391_v14  ;;  %v1392_v2 = vmul.f32 %v8360_v9, %v1353_v51  ;;  %1429 = vmax.xlane.f32.xlu0 %v6130_v1  ;;  %4208 = vmatprep.subr.mxu1 %v1220_v24 }
 0x2c8   : > { %v1357_v28 = vpop.permute.xlu0 %1356  ;;  %4209 = vmatpush3.msra.mxu1 %v1220_v24  ;;  %v1215_v24 = vmul.f32 %v6012_v45, %v1121_v16  ;;  %v6198_v45 = vld [vmem:[%s8137_s4 + $0x68] sm:$0xff] }
 0x2c9   : > { %v6154_v19 = vmul.f32 %v6151_v49, %v1392_v2  ;;  %v1393_v30 = vmul.f32 %v8360_v9, %v1357_v28  ;;  %1431 = vmax.xlane.f32.xlu1 %v6142_v4  ;;  %4210 = vmatprep.subr.mxu1 %v1219_v38  ;;  %8362 = vst [vmem:[#allocation35_spill] sm:$0xff] %v6198_v45 }
 0x2ca   : > { %v1361_v53 = vpop.permute.xlu1 %1360  ;;  %4211 = vmatpush3.msra.mxu1 %v1219_v38 }
 0x2cb   : > { %v6166_v17 = vmul.f32 %v6163_v48, %v1393_v30  ;;  %v1394_v21 = vmul.f32 %v8360_v9, %v1361_v53  ;;  %1433 = vmax.xlane.f32.xlu0 %v6154_v19  ;;  %4212 = vmatprep.subr.mxu1 %v1218_v22 }
 0x2cc   : > { %v1365_v32 = vpop.permute.xlu0 %1364  ;;  %4213 = vmatpush3.msra.mxu1 %v1218_v22 }
 0x2cd   : > { %v6178_v8 = vmul.f32 %v6175_v29, %v1394_v21  ;;  %v1395_v10 = vmul.f32 %v8360_v9, %v1365_v32  ;;  %1435 = vmax.xlane.f32.xlu1 %v6166_v17  ;;  %4214 = vmatprep.subr.mxu1 %v1217_v20 }
 0x2ce   : > { %v1369_v31 = vpop.permute.xlu1 %1368  ;;  %4215 = vmatpush3.msra.mxu1 %v1217_v20 }
 0x2cf   : > { %v6190_v14 = vmul.f32 %v6187_v41, %v1395_v10  ;;  %v1396_v63 = vmul.f32 %v8360_v9, %v1369_v31  ;;  %1437 = vmax.xlane.f32.xlu0 %v6178_v8  ;;  %4216 = vmatprep.subr.mxu1 %v1216_v27 }
 0x2d0   : > { %v1373_v51 = vpop.permute.xlu0 %1372  ;;  %4217 = vmatpush3.msra.mxu1 %v1216_v27 }
 0x2d1   : > { %v6201_v26 = vmul.f32 %v6198_v45, %v1396_v63  ;;  %v1397_v38 = vmul.f32 %v8360_v9, %v1373_v51  ;;  %1439 = vmax.xlane.f32.xlu1 %v6190_v14  ;;  %4218 = vmatprep.subr.mxu1 %v1215_v24 }
 0x2d2   : > { %v1377_v2 = vpop.permute.xlu1 %1376  ;;  %4219 = vmatpush3.msra.mxu1 %v1215_v24 }
 0x2d3   : > { %v6211_v56 = vmul.f32 %v6208_v55, %v1397_v38  ;;  %v1398_v28 = vmul.f32 %v8360_v9, %v1377_v2  ;;  %1441 = vmax.xlane.f32.xlu0 %v6201_v26  ;;  %4220 = vmatprep.subr.mxu1 %v1214_v37 }
 0x2d4   : > { %4221 = vmatpush3.msra.mxu1 %v1214_v37 }
 0x2d5   : > { %v6221_v22 = vmul.f32 %v6218_v35, %v1398_v28  ;;  %1443 = vmax.xlane.f32.xlu1 %v6211_v56 }
 0x2d7   : > { %1445 = vmax.xlane.f32.xlu0 %v6221_v22 }
 0x340   : > { %v1416_v30 = vpop.xlane.xlu0 %1415 }
 0x341   : > { %v1447_v6 = vsub.f32 %v6044_v47, %v1416_v30 }
 0x343   : > { %v1463_v9 = vmul.f32 1.442695, %v1447_v6 }
 0x344   : > { %v1420_v53 = vpop.xlane.xlu0 %1419 }
 0x345   : > { %4666 = vpow2.f32 %v1463_v9  ;;  %v1449_v5 = vsub.f32 %v6057_v25, %v1420_v53 }
 0x346   : > { %v1418_v20 = vpop.xlane.xlu1 %1417 }
 0x347   : > { %v1467_v21 = vmul.f32 1.442695, %v1449_v5  ;;  %v1448_v16 = vsub.f32 %v6068_v61, %v1418_v20 }
 0x348   : > { %v1422_v32 = vpop.xlane.xlu0 %1421 }
 0x349   : > { %4668 = vpow2.f32 %v1467_v21  ;;  %v1465_v27 = vmul.f32 1.442695, %v1448_v16  ;;  %v1450_v10 = vsub.f32 %v6081_v7, %v1422_v32 }
 0x34a   : > { %v1424_v50 = vpop.xlane.xlu1 %1423 }
 0x34b   : > { %4670 = vpow2.f32 %v1465_v27  ;;  %v1469_v31 = vmul.f32 1.442695, %v1450_v10  ;;  %v1451_v24 = vsub.f32 %v6094_v57, %v1424_v50 }
 0x34c   : > { %v1426_v47 = vpop.xlane.xlu0 %1425 }
 0x34d   : > { %4672 = vpow2.f32 %v1469_v31  ;;  %v1471_v63 = vmul.f32 1.442695, %v1451_v24  ;;  %v1452_v51 = vsub.f32 %v6106_v36, %v1426_v47 }
 0x34e   : > { %v1428_v25 = vpop.xlane.xlu1 %1427 }
 0x34f   : > { %4674 = vpow2.f32 %v1471_v63  ;;  %v1473_v37 = vmul.f32 1.442695, %v1452_v51  ;;  %v1453_v61 = vsub.f32 %v6118_v11, %v1428_v25 }
 0x350   : > { %v1430_v38 = vpop.xlane.xlu0 %1429 }
 0x351   : > { %4676 = vpow2.f32 %v1473_v37  ;;  %v1475_v2 = vmul.f32 1.442695, %v1453_v61  ;;  %v1454_v7 = vsub.f32 %v6130_v1, %v1430_v38 }
 0x352   : > { %v6233_v28 = vpop.eup %4666  ;;  %v1432_v30 = vpop.xlane.xlu1 %1431 }
 0x353   : > { %4678 = vpow2.f32 %v1475_v2  ;;  %v1477_v57 = vmul.f32 1.442695, %v1454_v7  ;;  %v1455_v6 = vsub.f32 %v6142_v4, %v1432_v30  ;;  %1495 = vadd.xlane.f32.xlu1 %v6233_v28 }
 0x354   : > { %v1434_v36 = vpop.xlane.xlu0 %1433 }
 0x355   : > { %4680 = vpow2.f32 %v1477_v57  ;;  %v1479_v9 = vmul.f32 1.442695, %v1455_v6  ;;  %v1456_v53 = vsub.f32 %v6154_v19, %v1434_v36 }
 0x356   : > { %v6238_v11 = vpop.eup %4668  ;;  %v1436_v5 = vpop.xlane.xlu1 %1435 }
 0x357   : > { %4682 = vpow2.f32 %v1479_v9  ;;  %v1481_v20 = vmul.f32 1.442695, %v1456_v53  ;;  %v1457_v1 = vsub.f32 %v6166_v17, %v1436_v5  ;;  %1499 = vadd.xlane.f32.xlu1 %v6238_v11  ;;  %v6290_v53 = vld [vmem:[%s5350_s25] sm:$0xff]  ;;  %v6294_v5 = vld [vmem:[%s5350_s25 + $0x10] sm:$0xff] }
 0x358   : > { %v6242_v21 = vpop.eup %4670  ;;  %v1438_v16 = vpop.xlane.xlu0 %1437  ;;  %8365 = vst [vmem:[#allocation34_spill] sm:$0xff] %v6290_v53  ;;  %8366 = vst [vmem:[#allocation33_spill] sm:$0xff] %v6294_v5 }
 0x359   : > { %4684 = vpow2.f32 %v1481_v20  ;;  %v1483_v4 = vmul.f32 1.442695, %v1457_v1  ;;  %1497 = vadd.xlane.f32.xlu0 %v6242_v21  ;;  %v1458_v32 = vsub.f32 %v6178_v8, %v1438_v16  ;;  %v6298_v20 = vld [vmem:[%s5350_s25 + $0x18] sm:$0xff]  ;;  %v6302_v1 = vld [vmem:[%s5350_s25 + $0x8] sm:$0xff] }
 0x35a   : > { %v6246_v27 = vpop.eup %4672  ;;  %v1440_v19 = vpop.xlane.xlu1 %1439  ;;  %8367 = vst [vmem:[#allocation15_spill] sm:$0xff] %v6298_v20  ;;  %8368 = vst [vmem:[#allocation16_spill] sm:$0xff] %v6302_v1  ;;  %v6306_v16 = vld [vmem:[%s5350_s25 + $0x28] sm:$0xff] }
 0x35b   : > { %4686 = vpow2.f32 %v1483_v4  ;;  %v1485_v10 = vmul.f32 1.442695, %v1458_v32  ;;  %v1459_v50 = vsub.f32 %v6190_v14, %v1440_v19  ;;  %8369 = vst [vmem:[#allocation32_spill] sm:$0xff] %v6306_v16  ;;  %v6310_v4 = vld [vmem:[%s5350_s25 + $0x20] sm:$0xff]  ;;  %v6314_v32 = vld [vmem:[%s5350_s25 + $0x38] sm:$0xff]  ;;  %v6318_v19 = vld [vmem:[%s5350_s25 + $0x30] sm:$0xff] }
 0x35c   : > { %v6249_v31 = vpop.eup %4674  ;;  %v1442_v17 = vpop.xlane.xlu0 %1441  ;;  %8370 = vst [vmem:[#allocation31_spill] sm:$0xff] %v6310_v4  ;;  %8371 = vst [vmem:[#allocation17_spill] sm:$0xff] %v6314_v32 }
 0x35d   : > { %4688 = vpow2.f32 %v1485_v10  ;;  %v1487_v24 = vmul.f32 1.442695, %v1459_v50  ;;  %1503 = vadd.xlane.f32.xlu1 %v6249_v31  ;;  %1501 = vadd.xlane.f32.xlu0 %v6246_v27  ;;  %v1460_v47 = vsub.f32 %v6201_v26, %v1442_v17  ;;  %8372 = vst [vmem:[#allocation18_spill] sm:$0xff] %v6318_v19  ;;  %v6322_v10 = vld [vmem:[%s5350_s25 + $0x48] sm:$0xff]  ;;  %v6326_v50 = vld [vmem:[%s5350_s25 + $0x40] sm:$0xff]  ;;  %v6330_v17 = vld [vmem:[%s5350_s25 + $0x58] sm:$0xff] }
 0x35e   : > { %v6254_v63 = vpop.eup %4676  ;;  %v1444_v8 = vpop.xlane.xlu1 %1443  ;;  %8373 = vst [vmem:[#allocation30_spill] sm:$0xff] %v6322_v10  ;;  %8374 = vst [vmem:[#allocation29_spill] sm:$0xff] %v6326_v50 }
 0x35f   : > { %4690 = vpow2.f32 %v1487_v24  ;;  %v1489_v51 = vmul.f32 1.442695, %v1460_v47  ;;  %v1461_v25 = vsub.f32 %v6211_v56, %v1444_v8  ;;  %8375 = vst [vmem:[#allocation21_spill] sm:$0xff] %v6330_v17  ;;  %v6334_v24 = vld [vmem:[%s5350_s25 + $0x50] sm:$0xff]  ;;  %v6338_v47 = vld [vmem:[%s5350_s25 + $0x68] sm:$0xff]  ;;  %v6342_v8 = vld [vmem:[%s5350_s25 + $0x60] sm:$0xff] }
 0x360   : > { %v6257_v37 = vpop.eup %4678  ;;  %v1446_v14 = vpop.xlane.xlu0 %1445  ;;  %8376 = vst [vmem:[#allocation19_spill] sm:$0xff] %v6334_v24  ;;  %8377 = vst [vmem:[#allocation28_spill] sm:$0xff] %v6338_v47 }
 0x361   : > { %4692 = vpow2.f32 %v1489_v51  ;;  %v1491_v61 = vmul.f32 1.442695, %v1461_v25  ;;  %1507 = vadd.xlane.f32.xlu1 %v6257_v37  ;;  %1505 = vadd.xlane.f32.xlu0 %v6254_v63  ;;  %v1462_v38 = vsub.f32 %v6221_v22, %v1446_v14  ;;  %8378 = vst [vmem:[#allocation27_spill] sm:$0xff] %v6342_v8  ;;  %v6348_v51 = vld [vmem:[%s8138_s5] sm:$0xff]  ;;  %v6355_v25 = vld [vmem:[%s8138_s5 + $0x8] sm:$0xff]  ;;  %v6358_v14 = vld [vmem:[%s5350_s25 + $0x78] sm:$0xff] }
 0x362   : > { %v6262_v2 = vpop.eup %4680  ;;  %8379 = vst [vmem:[#allocation20_spill] sm:$0xff] %v6348_v51  ;;  %4187 = vmatprep.mubr.f32.mxu0 %v6348_v51  ;;  %4222 = vmatprep.mubr.f32.mxu1 %v6348_v51  ;;  %8380 = vst [vmem:[#allocation26_spill] sm:$0xff] %v6355_v25 }
 0x363   : > { %4694 = vpow2.f32 %v1491_v61  ;;  %v1493_v26 = vmul.f32 1.442695, %v1462_v38  ;;  %8381 = vst [vmem:[#allocation25_spill] sm:$0xff] %v6358_v14  ;;  %4188 = vmatmul.mubr.f32.vlgmr.msra.gmra.mxu0 %v6355_v25  ;;  %v6363_v61 = vld [vmem:[%s5350_s25 + $0x70] sm:$0xff]  ;;  %4223 = vmatmul.mubr.f32.vlgmr.msra.gmra.mxu1 %v6355_v25  ;;  %v5164_v38 = vmov 3  }
 0x364   : > { %v6264_v7 = vpop.eup %4682  ;;  %8382 = vst [vmem:[#allocation23_spill] sm:$0xff] %v6363_v61  ;;  %4257 = vmatprep.mubr.f32.mxu0 %v6348_v51  ;;  %4292 = vmatprep.mubr.f32.mxu1 %v6348_v51 }
 0x365   : > { %4696 = vpow2.f32 %v1493_v26  ;;  %1511 = vadd.xlane.f32.xlu1 %v6264_v7  ;;  %1509 = vadd.xlane.f32.xlu0 %v6262_v2 }
 0x366   : > { %v6268_v56 = vpop.eup %4684 }
 0x368   : > { %v6270_v30 = vpop.eup %4686 }
 0x369   : > { %1515 = vadd.xlane.f32.xlu1 %v6270_v30  ;;  %1513 = vadd.xlane.f32.xlu0 %v6268_v56 }
 0x36a   : > { %v6274_v22 = vpop.eup %4688 }
 0x36c   : > { %v6276_v57 = vpop.eup %4690 }
 0x36d   : > { %1519 = vadd.xlane.f32.xlu1 %v6276_v57  ;;  %1517 = vadd.xlane.f32.xlu0 %v6274_v22 }
 0x36e   : > { %v6280_v6 = vpop.eup %4692 }
 0x370   : > { %v6282_v36 = vpop.eup %4694 }
 0x371   : > { %1523 = vadd.xlane.f32.xlu1 %v6282_v36  ;;  %1521 = vadd.xlane.f32.xlu0 %v6280_v6 }
 0x372   : > { %v6286_v9 = vpop.eup %4696 }
 0x375   : > { %1525 = vadd.xlane.f32.xlu0 %v6286_v9 }
 0x382   : > { %1560 = vperm.xlu1 %4492, %v6290_v53  }
 0x386   : > { %1568 = vperm.xlu1 %4492, %v6294_v5  }
 0x38a   : > { %1572 = vperm.xlu1 %4492, %v6298_v20  }
 0x38b   : > { %1564 = vperm.xlu0 %4493, %v6302_v1  }
 0x38e   : > { %1580 = vperm.xlu1 %4492, %v6306_v16  }
 0x38f   : > { %1576 = vperm.xlu0 %4493, %v6310_v4  }
 0x392   : > { %1588 = vperm.xlu1 %4492, %v6314_v32  }
 0x393   : > { %1584 = vperm.xlu0 %4493, %v6318_v19  }
 0x396   : > { %1596 = vperm.xlu1 %4492, %v6322_v10  }
 0x397   : > { %1592 = vperm.xlu0 %4493, %v6326_v50  }
 0x39a   : > { %1604 = vperm.xlu1 %4492, %v6330_v17  }
 0x39b   : > { %1600 = vperm.xlu0 %4493, %v6334_v24  }
 0x39e   : > { %1612 = vperm.xlu1 %4492, %v6338_v47  }
 0x39f   : > { %1608 = vperm.xlu0 %4493, %v6342_v8  }
 0x3a2   : > { %1620 = vperm.xlu1 %4492, %v6358_v14  }
 0x3a3   : > { %1616 = vperm.xlu0 %4493, %v6363_v61  }
 0x3a6   : > { %4495 = vset.pattern.permute.xlu1 %v5164_v38 }
 0x3a7   : > { %1729 = vperm.xlu1 %4495, %v5947_v23   ;;  %4494 = vset.pattern.permute.xlu0 %v5164_v38  ;;  %v8385_v23 = vld [vmem:[#allocation11_spill] sm:$0xff] }
 0x3a8   : > { %1725 = vperm.xlu0 %4494, %v5932_v44   ;;  %v8383_v44 = vld [vmem:[#allocation9_spill] sm:$0xff] }
 0x3ab   : > { %1733 = vperm.xlu1 %4495, %v5941_v33   ;;  %v8384_v33 = vld [vmem:[#allocation10_spill] sm:$0xff] }
 0x3ac   : > { %1737 = vperm.xlu0 %4494, %v5952_v0   ;;  %v8386_v0 = vld [vmem:[#allocation12_spill] sm:$0xff] }
 0x3af   : > { %1741 = vperm.xlu1 %4495, %v5957_v39  }
 0x3b0   : > { %1745 = vperm.xlu0 %4494, %v5961_v62  }
 0x3b3   : > { %1749 = vperm.xlu1 %4495, %v5965_v3  }
 0x3b4   : > { %1753 = vperm.xlu0 %4494, %v5969_v42  }
 0x3b7   : > { %1757 = vperm.xlu1 %4495, %v5973_v60  }
 0x3b8   : > { %1761 = vperm.xlu0 %4494, %v5977_v18  }
 0x3bb   : > { %1765 = vperm.xlu1 %4495, %v5981_v58  }
 0x3bc   : > { %1769 = vperm.xlu0 %4494, %v5985_v59  }
 0x3bf   : > { %1773 = vperm.xlu1 %4495, %v8383_v44  }
 0x3c0   : > { %1777 = vperm.xlu0 %4494, %v8384_v33  }
 0x3c3   : > { %1781 = vperm.xlu1 %4495, %v8385_v23  }
 0x3c4   : > { %1785 = vperm.xlu0 %4494, %v8386_v0  }
 0x3dc   : > { %v6385_v39 = vpop.xlane.xlu1 %1495 }
 0x3e0   : > { %v6387_v62 = vpop.xlane.xlu1 %1499 }
 0x3e2   : > { %v6389_v3 = vpop.xlane.xlu0 %1497 }
 0x3e6   : > { %v1504_v42 = vpop.xlane.xlu1 %1503  ;;  %v1502_v60 = vpop.xlane.xlu0 %1501 }
 0x3ea   : > { %v1508_v18 = vpop.xlane.xlu1 %1507  ;;  %v1506_v58 = vpop.xlane.xlu0 %1505 }
 0x3ee   : > { %v1512_v26 = vpop.xlane.xlu1 %1511  ;;  %v1510_v59 = vpop.xlane.xlu0 %1509 }
 0x3f2   : > { %v1516_v38 = vpop.xlane.xlu1 %1515  ;;  %v1514_v44 = vpop.xlane.xlu0 %1513 }
 0x3f6   : > { %v1520_v14 = vpop.xlane.xlu1 %1519  ;;  %v1518_v33 = vpop.xlane.xlu0 %1517 }
 0x3fa   : > { %v1524_v47 = vpop.xlane.xlu1 %1523  ;;  %v1522_v23 = vpop.xlane.xlu0 %1521 }
 0x3fe   : > { %v6391_v61 = vpop.permute.xlu1 %1560  ;;  %v1526_v0 = vpop.xlane.xlu0 %1525 }
 0x3ff   : > { %4698 = vrcp.f32 %v1526_v0 }
 0x400   : > { %4700 = vrcp.f32 %v1524_v47 }
 0x401   : > { %4702 = vrcp.f32 %v1522_v23 }
 0x402   : > { %v6393_v17 = vpop.permute.xlu1 %1568  ;;  %4704 = vrcp.f32 %v1520_v14 }
 0x403   : > { %4706 = vrcp.f32 %v1518_v33 }
 0x404   : > { %4708 = vrcp.f32 %v1516_v38 }
 0x405   : > { %4710 = vrcp.f32 %v1514_v44 }
 0x406   : > { %v6395_v8 = vpop.permute.xlu1 %1572  ;;  %v6397_v10 = vpop.permute.xlu0 %1564  ;;  %4712 = vrcp.f32 %v1512_v26 }
 0x407   : > { %4714 = vrcp.f32 %v1510_v59 }
 0x408   : > { %4716 = vrcp.f32 %v1508_v18 }
 0x409   : > { %4718 = vrcp.f32 %v1506_v58 }
 0x40a   : > { %v6399_v24 = vpop.permute.xlu1 %1580  ;;  %v6401_v32 = vpop.permute.xlu0 %1576  ;;  %4720 = vrcp.f32 %v1504_v42 }
 0x40b   : > { %4722 = vrcp.f32 %v1502_v60 }
 0x40c   : > { %v4699_v5 = vpop.eup %4698  ;;  %4724 = vrcp.f32 %v6387_v62 }
 0x40d   : > { %v4701_v0 = vpop.eup %4700  ;;  %v1558_v35 = vmul.f32 %v4699_v5, %v6286_v9  ;;  %v8387_v5 = vld [vmem:[#allocation4_spill] sm:$0xff]  ;;  %4726 = vrcp.f32 %v6389_v3 }
 0x40e   : > { %v6403_v50 = vpop.permute.xlu1 %1588  ;;  %v6405_v16 = vpop.permute.xlu0 %1584  ;;  %v1556_v14 = vmul.f32 %v4701_v0, %v6282_v36  ;;  %4728 = vrcp.f32 %v6385_v39 }
 0x40f   : > { %v4703_v47 = vpop.eup %4702 }
 0x410   : > { %v4705_v33 = vpop.eup %4704  ;;  %v1554_v38 = vmul.f32 %v4703_v47, %v6280_v6 }
 0x411   : > { %v4707_v45 = vpop.eup %4706  ;;  %v1552_v9 = vmul.f32 %v4705_v33, %v6276_v57 }
 0x412   : > { %v6407_v19 = vpop.permute.xlu1 %1596  ;;  %v6409_v20 = vpop.permute.xlu0 %1592  ;;  %v1550_v6 = vmul.f32 %v4707_v45, %v6274_v22 }
 0x416   : > { %v1605_v4 = vpop.permute.xlu1 %1604  ;;  %v1601_v53 = vpop.permute.xlu0 %1600 }
 0x41a   : > { %v1613_v1 = vpop.permute.xlu1 %1612  ;;  %v1609_v51 = vpop.permute.xlu0 %1608 }
 0x41b   : > { %v1636_v26 = vmul.f32 %v1613_v1, %v1554_v38 }
 0x41e   : > { %v1621_v23 = vpop.permute.xlu1 %1620  ;;  %v1617_v25 = vpop.permute.xlu0 %1616 }
 0x41f   : > { %v1638_v55 = vmul.f32 %v1621_v23, %v1558_v35  ;;  %v1637_v44 = vmul.f32 %v1617_v25, %v1556_v14  ;;  %v4709_v35 = vpop.eup %4708  ;;  %v1635_v25 = vmul.f32 %v1609_v51, %v1552_v9 }
 0x420   : > { %v1548_v42 = vmul.f32 %v4709_v35, %v6270_v30 }
 0x421   : > { %4225 = vmatprep.subr.mxu0 %v1638_v55 }
 0x422   : > { %v1730_v41 = vpop.permute.xlu1 %1729  ;;  %4226 = vmatpush3.msra.mxu0 %v1638_v55  ;;  %v4711_v55 = vpop.eup %4710  ;;  %v1633_v51 = vmul.f32 %v1601_v53, %v1548_v42 }
 0x423   : > { %v1793_v59 = vmul.f32 %v8387_v5, %v1730_v41  ;;  %4227 = vmatprep.subr.mxu0 %v1637_v44  ;;  %v1726_v18 = vpop.permute.xlu0 %1725  ;;  %v1634_v41 = vmul.f32 %v1605_v4, %v1550_v6 }
 0x424   : > { %v1792_v36 = vmul.f32 %v8387_v5, %v1726_v18  ;;  %4228 = vmatpush3.msra.mxu0 %v1637_v44 }
 0x425   : > { %v6419_v58 = vmul.f32 %v6065_v43, %v1793_v59  ;;  %4229 = vmatprep.subr.mxu0 %v1636_v26  ;;  %v4713_v43 = vpop.eup %4712 }
 0x426   : > { %v6422_v1 = vmul.f32 %v6041_v46, %v1792_v36  ;;  %v1734_v57 = vpop.permute.xlu1 %1733  ;;  %4230 = vmatpush3.msra.mxu0 %v1636_v26  ;;  %v1546_v46 = vmul.f32 %v4711_v55, %v6268_v56  ;;  %v4715_v30 = vpop.eup %4714  ;;  %v1544_v23 = vmul.f32 %v4713_v43, %v6264_v7 }
 0x427   : > { %v1794_v60 = vmul.f32 %v8387_v5, %v1734_v57  ;;  %1826 = vmax.xlane.f32.xlu0 %v6419_v58  ;;  %4231 = vmatprep.subr.mxu0 %v1635_v25  ;;  %v1738_v45 = vpop.permute.xlu0 %1737  ;;  %v4717_v56 = vpop.eup %4716 }
 0x428   : > { %v1795_v22 = vmul.f32 %v8387_v5, %v1738_v45  ;;  %4232 = vmatpush3.msra.mxu0 %v1635_v25  ;;  %1824 = vmax.xlane.f32.xlu1 %v6422_v1  ;;  %v1632_v47 = vmul.f32 %v6407_v19, %v1546_v46  ;;  %v1631_v39 = vmul.f32 %v6409_v20, %v1544_v23  ;;  %v4719_v7 = vpop.eup %4718 }
 0x429   : > { %v6433_v4 = vmul.f32 %v6054_v12, %v1794_v60  ;;  %4233 = vmatprep.subr.mxu0 %v1634_v41  ;;  %v1540_v44 = vmul.f32 %v4717_v56, %v6257_v37  ;;  %v4721_v20 = vpop.eup %4720  ;;  %v8391_v56 = vld [vmem:[#allocation26_spill] sm:$0xff] }
 0x42a   : > { %v6436_v62 = vmul.f32 %v6078_v34, %v1795_v22  ;;  %v1742_v0 = vpop.permute.xlu1 %1741  ;;  %4234 = vmatpush3.msra.mxu0 %v1634_v41  ;;  %v1542_v34 = vmul.f32 %v4715_v30, %v6262_v2  ;;  %v4723_v37 = vpop.eup %4722  ;;  %v1536_v36 = vmul.f32 %v4721_v20, %v6249_v31 }
 0x42b   : > { %v1796_v3 = vmul.f32 %v8387_v5, %v1742_v0  ;;  %1828 = vmax.xlane.f32.xlu0 %v6433_v4  ;;  %4235 = vmatprep.subr.mxu0 %v1633_v51  ;;  %v1746_v12 = vpop.permute.xlu0 %1745  ;;  %v1629_v9 = vmul.f32 %v6405_v16, %v1540_v44  ;;  %v4725_v16 = vpop.eup %4724 }
 0x42c   : > { %v1797_v53 = vmul.f32 %v8387_v5, %v1746_v12  ;;  %4236 = vmatpush3.msra.mxu0 %v1633_v51  ;;  %1830 = vmax.xlane.f32.xlu1 %v6436_v62  ;;  %v1630_v38 = vmul.f32 %v6403_v50, %v1542_v34  ;;  %v1627_v25 = vmul.f32 %v6401_v32, %v1536_v36  ;;  %v4727_v31 = vpop.eup %4726 }
 0x42d   : > { %v6448_v19 = vmul.f32 %v6091_v40, %v1796_v3  ;;  %4237 = vmatprep.subr.mxu0 %v1632_v47  ;;  %v1532_v41 = vmul.f32 %v4725_v16, %v6238_v11  ;;  %v4729_v32 = vpop.eup %4728  ;;  %v1530_v45 = vmul.f32 %v4727_v31, %v6242_v21 }
 0x42e   : > { %v6451_v14 = vmul.f32 %v6103_v52, %v1797_v53  ;;  %v1750_v33 = vpop.permute.xlu1 %1749  ;;  %4238 = vmatpush3.msra.mxu0 %v1632_v47  ;;  %v1538_v52 = vmul.f32 %v4719_v7, %v6254_v63  ;;  %v1528_v22 = vmul.f32 %v4729_v32, %v6233_v28  ;;  %v8389_v28 = vld [vmem:[#allocation35_spill] sm:$0xff]  ;;  %v8392_v53 = vld [vmem:[#allocation14_spill] sm:$0xff] }
 0x42f   : > { %v1798_v26 = vmul.f32 %v8387_v5, %v1750_v33  ;;  %1832 = vmax.xlane.f32.xlu0 %v6448_v19  ;;  %4239 = vmatprep.subr.mxu0 %v1631_v39  ;;  %v1754_v2 = vpop.permute.xlu0 %1753  ;;  %v1624_v46 = vmul.f32 %v6397_v10, %v1530_v45 }
 0x430   : > { %v1799_v40 = vmul.f32 %v8387_v5, %v1754_v2  ;;  %4240 = vmatpush3.msra.mxu0 %v1631_v39  ;;  %1834 = vmax.xlane.f32.xlu1 %v6451_v14  ;;  %v1628_v35 = vmul.f32 %v6399_v24, %v1538_v52  ;;  %v8393_v39 = vld [vmem:[#allocation20_spill] sm:$0xff] }
 0x431   : > { %v6462_v50 = vmul.f32 %v6115_v15, %v1798_v26  ;;  %4241 = vmatprep.subr.mxu0 %v1630_v38 }
 0x432   : > { %v6465_v59 = vmul.f32 %v6127_v13, %v1799_v40  ;;  %v1758_v18 = vpop.permute.xlu1 %1757  ;;  %4242 = vmatpush3.msra.mxu0 %v1630_v38  ;;  %v1534_v13 = vmul.f32 %v4723_v37, %v6246_v27 }
 0x433   : > { %v1800_v6 = vmul.f32 %v8387_v5, %v1758_v18  ;;  %1836 = vmax.xlane.f32.xlu0 %v6462_v50  ;;  %4243 = vmatprep.subr.mxu0 %v1629_v9  ;;  %v1762_v63 = vpop.permute.xlu0 %1761 }
 0x434   : > { %v1801_v15 = vmul.f32 %v8387_v5, %v1762_v63  ;;  %4244 = vmatpush3.msra.mxu0 %v1629_v9  ;;  %1838 = vmax.xlane.f32.xlu1 %v6465_v59  ;;  %v1626_v42 = vmul.f32 %v6395_v8, %v1534_v13 }
 0x435   : > { %v6476_v24 = vmul.f32 %v6139_v54, %v1800_v6  ;;  %4245 = vmatprep.subr.mxu0 %v1628_v35 }
 0x436   : > { %v6479_v55 = vmul.f32 %v6151_v49, %v1801_v15  ;;  %v1766_v57 = vpop.permute.xlu1 %1765  ;;  %4246 = vmatpush3.msra.mxu0 %v1628_v35  ;;  %v1625_v49 = vmul.f32 %v6393_v17, %v1532_v41 }
 0x437   : > { %v1802_v60 = vmul.f32 %v8387_v5, %v1766_v57  ;;  %1840 = vmax.xlane.f32.xlu0 %v6476_v24  ;;  %4247 = vmatprep.subr.mxu0 %v1627_v25  ;;  %v1770_v27 = vpop.permute.xlu0 %1769 }
 0x438   : > { %v1803_v54 = vmul.f32 %v8387_v5, %v1770_v27  ;;  %4248 = vmatpush3.msra.mxu0 %v1627_v25  ;;  %1842 = vmax.xlane.f32.xlu1 %v6479_v55 }
 0x439   : > { %v6490_v11 = vmul.f32 %v6163_v48, %v1802_v60  ;;  %4249 = vmatprep.subr.mxu0 %v1626_v42  ;;  %v1623_v48 = vmul.f32 %v6391_v61, %v1528_v22  ;;  %v8390_v61 = vld [vmem:[#allocation13_spill] sm:$0xff] }
 0x43a   : > { %v6493_v8 = vmul.f32 %v6175_v29, %v1803_v54  ;;  %v1774_v43 = vpop.permute.xlu1 %1773  ;;  %4250 = vmatpush3.msra.mxu0 %v1626_v42  ;;  %v8388_v29 = vld [vmem:[#allocation36_spill] sm:$0xff] }
 0x43b   : > { %v1804_v51 = vmul.f32 %v8387_v5, %v1774_v43  ;;  %1844 = vmax.xlane.f32.xlu0 %v6490_v11  ;;  %4251 = vmatprep.subr.mxu0 %v1625_v49  ;;  %v1778_v17 = vpop.permute.xlu0 %1777 }
 0x43c   : > { %v1805_v21 = vmul.f32 %v8387_v5, %v1778_v17  ;;  %4252 = vmatpush3.msra.mxu0 %v1625_v49  ;;  %1846 = vmax.xlane.f32.xlu1 %v6493_v8 }
 0x43d   : > { %v6503_v30 = vmul.f32 %v8388_v29, %v1804_v51  ;;  %4253 = vmatprep.subr.mxu0 %v1624_v46 }
 0x43e   : > { %v6506_v0 = vmul.f32 %v8389_v28, %v1805_v21  ;;  %v1782_v10 = vpop.permute.xlu1 %1781  ;;  %4254 = vmatpush3.msra.mxu0 %v1624_v46 }
 0x43f   : > { %v1806_v47 = vmul.f32 %v8387_v5, %v1782_v10  ;;  %1848 = vmax.xlane.f32.xlu0 %v6503_v30  ;;  %4255 = vmatprep.subr.mxu0 %v1623_v48  ;;  %v1786_v23 = vpop.permute.xlu0 %1785 }
 0x440   : > { %v1807_v3 = vmul.f32 %v8387_v5, %v1786_v23  ;;  %4256 = vmatpush3.msra.mxu0 %v1623_v48  ;;  %1850 = vmax.xlane.f32.xlu1 %v6506_v0 }
 0x441   : > { %v6513_v12 = vmul.f32 %v8390_v61, %v1806_v47  ;;  %4258 = vmatmul.mubr.f32.vlgmr.msra.gmra.mxu0 %v8391_v56 }
 0x442   : > { %v6517_v34 = vmul.f32 %v8392_v53, %v1807_v3  ;;  %4327 = vmatprep.mubr.f32.mxu0 %v8393_v39 }
 0x443   : > { %1852 = vmax.xlane.f32.xlu0 %v6513_v12 }
 0x444   : > { %1854 = vmax.xlane.f32.xlu1 %v6517_v34 }
 0x4b0   : > { %v1827_v7 = vpop.xlane.xlu0 %1826 }
 0x4b1   : > { %v1857_v5 = vsub.f32 %v6419_v58, %v1827_v7  ;;  %v1825_v33 = vpop.xlane.xlu1 %1824  ;;  %v8394_v7 = vld [vmem:[#allocation16_spill] sm:$0xff] }
 0x4b2   : > { %v1856_v38 = vsub.f32 %v6422_v1, %v1825_v33  ;;  %v8396_v33 = vld [vmem:[#allocation34_spill] sm:$0xff] }
 0x4b3   : > { %v1874_v44 = vmul.f32 1.442695, %v1857_v5  ;;  %v8395_v5 = vld [vmem:[#allocation33_spill] sm:$0xff] }
 0x4b4   : > { %v1872_v26 = vmul.f32 1.442695, %v1856_v38  ;;  %v1829_v2 = vpop.xlane.xlu0 %1828  ;;  %v8397_v38 = vld [vmem:[#allocation31_spill] sm:$0xff] }
 0x4b5   : > { %4730 = vpow2.f32 %v1874_v44  ;;  %v1858_v20 = vsub.f32 %v6433_v4, %v1829_v2  ;;  %v1831_v40 = vpop.xlane.xlu1 %1830  ;;  %v8398_v44 = vld [vmem:[#allocation15_spill] sm:$0xff]  ;;  %v8400_v2 = vld [vmem:[#allocation32_spill] sm:$0xff] }
 0x4b6   : > { %4732 = vpow2.f32 %v1872_v26  ;;  %v1859_v52 = vsub.f32 %v6436_v62, %v1831_v40  ;;  %v8399_v26 = vld [vmem:[#allocation18_spill] sm:$0xff]  ;;  %v8402_v40 = vld [vmem:[#allocation17_spill] sm:$0xff] }
 0x4b7   : > { %v1876_v9 = vmul.f32 1.442695, %v1858_v20  ;;  %v8401_v20 = vld [vmem:[#allocation29_spill] sm:$0xff] }
 0x4b8   : > { %v1878_v37 = vmul.f32 1.442695, %v1859_v52  ;;  %v1833_v18 = vpop.xlane.xlu0 %1832  ;;  %v8403_v52 = vld [vmem:[#allocation19_spill] sm:$0xff] }
 0x4b9   : > { %4734 = vpow2.f32 %v1876_v9  ;;  %v1860_v35 = vsub.f32 %v6448_v19, %v1833_v18  ;;  %v1835_v58 = vpop.xlane.xlu1 %1834  ;;  %v8404_v9 = vld [vmem:[#allocation30_spill] sm:$0xff]  ;;  %v8406_v18 = vld [vmem:[#allocation21_spill] sm:$0xff] }
 0x4ba   : > { %4736 = vpow2.f32 %v1878_v37  ;;  %v1861_v1 = vsub.f32 %v6451_v14, %v1835_v58  ;;  %v8405_v37 = vld [vmem:[#allocation27_spill] sm:$0xff]  ;;  %v8408_v58 = vld [vmem:[#allocation28_spill] sm:$0xff] }
 0x4bb   : > { %v1880_v36 = vmul.f32 1.442695, %v1860_v35  ;;  %v8407_v35 = vld [vmem:[#allocation23_spill] sm:$0xff] }
 0x4bc   : > { %v1882_v6 = vmul.f32 1.442695, %v1861_v1  ;;  %v1837_v63 = vpop.xlane.xlu0 %1836  ;;  %v8190_v1 = vmov 4  }
 0x4bd   : > { %4738 = vpow2.f32 %v1880_v36  ;;  %v1862_v4 = vsub.f32 %v6462_v50, %v1837_v63  ;;  %v1839_v16 = vpop.xlane.xlu1 %1838  ;;  %v6603_v36 = vld [vmem:[%s5250_s19 + $0x78] sm:$0xff]  ;;  %v6608_v63 = vld [vmem:[%s5250_s19 + $0x70] sm:$0xff] }
 0x4be   : > { %4740 = vpow2.f32 %v1882_v6  ;;  %v1863_v62 = vsub.f32 %v6465_v59, %v1839_v16  ;;  %v8409_v6 = vld [vmem:[#allocation25_spill] sm:$0xff]  ;;  %v8189_v16 = vmov 5  }
 0x4bf   : > { %v1884_v15 = vmul.f32 1.442695, %v1862_v4  ;;  %v6613_v4 = vld [vmem:[%s5250_s19 + $0x68] sm:$0xff] }
 0x4c0   : > { %v1886_v13 = vmul.f32 1.442695, %v1863_v62  ;;  %v1841_v25 = vpop.xlane.xlu0 %1840  ;;  %v6619_v62 = vld [vmem:[%s5250_s19 + $0x50] sm:$0xff] }
 0x4c1   : > { %4742 = vpow2.f32 %v1884_v15  ;;  %v1864_v19 = vsub.f32 %v6476_v24, %v1841_v25  ;;  %v1843_v31 = vpop.xlane.xlu1 %1842  ;;  %v6624_v15 = vld [vmem:[%s5250_s19 + $0x38] sm:$0xff]  ;;  %v6633_v25 = vld [vmem:[%s5250_s19 + $0x60] sm:$0xff] }
 0x4c2   : > { %v6531_v57 = vpop.eup %4730  ;;  %4744 = vpow2.f32 %v1886_v13  ;;  %v1865_v14 = vsub.f32 %v6479_v55, %v1843_v31  ;;  %v6629_v13 = vld [vmem:[%s5250_s19 + $0x20] sm:$0xff]  ;;  %v6641_v31 = vld [vmem:[%s5250_s19 + $0x58] sm:$0xff] }
 0x4c3   : > { %v6534_v41 = vpop.eup %4732  ;;  %v1888_v42 = vmul.f32 1.442695, %v1864_v19  ;;  %1906 = vadd.xlane.f32.xlu1 %v6531_v57  ;;  %v6637_v19 = vld [vmem:[%s5250_s19 + $0x8] sm:$0xff] }
 0x4c4   : > { %v1890_v50 = vmul.f32 1.442695, %v1865_v14  ;;  %1904 = vadd.xlane.f32.xlu0 %v6534_v41  ;;  %v1845_v59 = vpop.xlane.xlu0 %1844  ;;  %v8194_v14 = vmov 6  }
 0x4c5   : > { %4746 = vpow2.f32 %v1888_v42  ;;  %v1866_v60 = vsub.f32 %v6490_v11, %v1845_v59  ;;  %v1847_v27 = vpop.xlane.xlu1 %1846  ;;  %v6651_v42 = vld [vmem:[%s5250_s19 + $0x40] sm:$0xff]  ;;  %v6660_v59 = vld [vmem:[%s5250_s19 + $0x28] sm:$0xff] }
 0x4c6   : > { %v6539_v24 = vpop.eup %4734  ;;  %4748 = vpow2.f32 %v1890_v50  ;;  %v1867_v32 = vsub.f32 %v6493_v8, %v1847_v27  ;;  %v6656_v50 = vld [vmem:[%s5250_s19 + $0x48] sm:$0xff]  ;;  %v8192_v27 = vmov 7  }
 0x4c7   : > { %v6542_v54 = vpop.eup %4736  ;;  %v1892_v55 = vmul.f32 1.442695, %v1866_v60  ;;  %v6665_v60 = vld [vmem:[%s5250_s19 + $0x10] sm:$0xff] }
 0x4c8   : > { %v1894_v49 = vmul.f32 1.442695, %v1867_v32  ;;  %1910 = vadd.xlane.f32.xlu1 %v6542_v54  ;;  %1908 = vadd.xlane.f32.xlu0 %v6539_v24  ;;  %v1849_v45 = vpop.xlane.xlu0 %1848  ;;  %v6676_v32 = vld [vmem:[%s5250_s19 + $0x30] sm:$0xff] }
 0x4c9   : > { %4750 = vpow2.f32 %v1892_v55  ;;  %v1868_v43 = vsub.f32 %v6503_v30, %v1849_v45  ;;  %v1851_v22 = vpop.xlane.xlu1 %1850 }
 0x4ca   : > { %v6547_v11 = vpop.eup %4738  ;;  %4752 = vpow2.f32 %v1894_v49  ;;  %v1869_v46 = vsub.f32 %v6506_v0, %v1851_v22 }
 0x4cb   : > { %v6550_v51 = vpop.eup %4740  ;;  %v1896_v8 = vmul.f32 1.442695, %v1868_v43 }
 0x4cc   : > { %v1898_v17 = vmul.f32 1.442695, %v1869_v46  ;;  %1914 = vadd.xlane.f32.xlu1 %v6550_v51  ;;  %1912 = vadd.xlane.f32.xlu0 %v6547_v11  ;;  %v1853_v21 = vpop.xlane.xlu0 %1852 }
 0x4cd   : > { %4754 = vpow2.f32 %v1896_v8  ;;  %v1870_v48 = vsub.f32 %v6513_v12, %v1853_v21  ;;  %v1855_v29 = vpop.xlane.xlu1 %1854  ;;  %v6704_v21 = vld [vmem:[%s5250_s19 + $0x18] sm:$0xff] }
 0x4ce   : > { %v6555_v30 = vpop.eup %4742  ;;  %4756 = vpow2.f32 %v1898_v17  ;;  %v1871_v28 = vsub.f32 %v6517_v34, %v1855_v29 }
 0x4cf   : > { %v6558_v10 = vpop.eup %4744  ;;  %v1900_v0 = vmul.f32 1.442695, %v1870_v48 }
 0x4d0   : > { %v1902_v47 = vmul.f32 1.442695, %v1871_v28  ;;  %1918 = vadd.xlane.f32.xlu1 %v6558_v10  ;;  %1916 = vadd.xlane.f32.xlu0 %v6555_v30 }
 0x4d1   : > { %4758 = vpow2.f32 %v1900_v0 }
 0x4d2   : > { %v6562_v23 = vpop.eup %4746  ;;  %4760 = vpow2.f32 %v1902_v47 }
 0x4d3   : > { %v6564_v3 = vpop.eup %4748 }
 0x4d4   : > { %1922 = vadd.xlane.f32.xlu1 %v6564_v3  ;;  %1920 = vadd.xlane.f32.xlu0 %v6562_v23 }
 0x4d6   : > { %v6568_v61 = vpop.eup %4750 }
 0x4d7   : > { %v6570_v12 = vpop.eup %4752 }
 0x4d8   : > { %1926 = vadd.xlane.f32.xlu1 %v6570_v12  ;;  %1924 = vadd.xlane.f32.xlu0 %v6568_v61 }
 0x4da   : > { %v6574_v56 = vpop.eup %4754 }
 0x4db   : > { %v6576_v53 = vpop.eup %4756 }
 0x4dc   : > { %1930 = vadd.xlane.f32.xlu1 %v6576_v53  ;;  %1928 = vadd.xlane.f32.xlu0 %v6574_v56 }
 0x4de   : > { %v6580_v34 = vpop.eup %4758 }
 0x4df   : > { %v6582_v39 = vpop.eup %4760 }
 0x4e0   : > { %1934 = vadd.xlane.f32.xlu1 %v6582_v39  ;;  %1932 = vadd.xlane.f32.xlu0 %v6580_v34 }
 0x4f1   : > { %1973 = vperm.xlu1 %4495, %v8394_v7  }
 0x4f5   : > { %1977 = vperm.xlu1 %4495, %v8395_v5  }
 0x4f6   : > { %1969 = vperm.xlu0 %4494, %v8396_v33   ;;  %v6716_v33 = vld [vmem:[%s5250_s19] sm:$0xff] }
 0x4f9   : > { %1985 = vperm.xlu1 %4495, %v8397_v38  }
 0x4fa   : > { %1981 = vperm.xlu0 %4494, %v8398_v44  }
 0x4fd   : > { %1993 = vperm.xlu1 %4495, %v8399_v26  }
 0x4fe   : > { %1989 = vperm.xlu0 %4494, %v8400_v2  }
 0x501   : > { %2001 = vperm.xlu1 %4495, %v8401_v20  }
 0x502   : > { %1997 = vperm.xlu0 %4494, %v8402_v40  }
 0x505   : > { %2009 = vperm.xlu1 %4495, %v8403_v52  }
 0x506   : > { %2005 = vperm.xlu0 %4494, %v8404_v9  }
 0x509   : > { %2017 = vperm.xlu1 %4495, %v8405_v37  }
 0x50a   : > { %2013 = vperm.xlu0 %4494, %v8406_v18  }
 0x50d   : > { %2025 = vperm.xlu1 %4495, %v8407_v35  }
 0x50e   : > { %2021 = vperm.xlu0 %4494, %v8408_v58  }
 0x511   : > { %4496 = vset.pattern.permute.xlu1 %v8190_v1 }
 0x512   : > { %2194 = vperm.xlu1 %4496, %v6603_v36   ;;  %2029 = vperm.xlu0 %4494, %v8409_v6  }
 0x516   : > { %2190 = vperm.xlu1 %4496, %v6608_v63   ;;  %4498 = vset.pattern.permute.xlu0 %v8190_v1 }
 0x517   : > { %2186 = vperm.xlu0 %4498, %v6613_v4  }
 0x51a   : > { %4497 = vset.pattern.permute.xlu1 %v8189_v16 }
 0x51b   : > { %2599 = vperm.xlu1 %4497, %v6608_v63   ;;  %2174 = vperm.xlu0 %4498, %v6619_v62  }
 0x51f   : > { %2595 = vperm.xlu1 %4497, %v6613_v4   ;;  %2162 = vperm.xlu0 %4498, %v6624_v15  }
 0x523   : > { %4499 = vset.pattern.permute.xlu1 %v8190_v1  ;;  %2150 = vperm.xlu0 %4498, %v6629_v13  }
 0x524   : > { %2182 = vperm.xlu1 %4499, %v6633_v25  }
 0x527   : > { %2138 = vperm.xlu0 %4498, %v6637_v19  }
 0x528   : > { %2178 = vperm.xlu1 %4499, %v6641_v31  }
 0x52b   : > { %4510 = vset.pattern.permute.xlu0 %v8194_v14 }
 0x52c   : > { %4500 = vset.pattern.permute.xlu1 %v8189_v16  ;;  %3008 = vperm.xlu0 %4510, %v6608_v63  }
 0x52d   : > { %2587 = vperm.xlu1 %4500, %v6641_v31  }
 0x530   : > { %2996 = vperm.xlu0 %4510, %v6641_v31  }
 0x531   : > { %2583 = vperm.xlu1 %4500, %v6619_v62  }
 0x534   : > { %2984 = vperm.xlu0 %4510, %v6651_v42  }
 0x535   : > { %4501 = vset.pattern.permute.xlu1 %v8190_v1 }
 0x536   : > { %2170 = vperm.xlu1 %4501, %v6656_v50  }
 0x538   : > { %2972 = vperm.xlu0 %4510, %v6660_v59  }
 0x53a   : > { %2166 = vperm.xlu1 %4501, %v6651_v42  }
 0x53c   : > { %2960 = vperm.xlu0 %4510, %v6665_v60  }
 0x53e   : > { %4502 = vset.pattern.permute.xlu1 %v8189_v16 }
 0x53f   : > { %2575 = vperm.xlu1 %4502, %v6651_v42  }
 0x540   : > { %4519 = vset.pattern.permute.xlu0 %v8192_v27 }
 0x541   : > { %3413 = vperm.xlu0 %4519, %v6613_v4  }
 0x543   : > { %2571 = vperm.xlu1 %4502, %v6624_v15  }
 0x545   : > { %3401 = vperm.xlu0 %4519, %v6619_v62  }
 0x547   : > { %4503 = vset.pattern.permute.xlu1 %v8190_v1 }
 0x548   : > { %2158 = vperm.xlu1 %4503, %v6676_v32  }
 0x549   : > { %3389 = vperm.xlu0 %4519, %v6624_v15  }
 0x54c   : > { %2154 = vperm.xlu1 %4503, %v6660_v59   ;;  %v6681_v55 = vpop.xlane.xlu1 %1906 }
 0x54d   : > { %3377 = vperm.xlu0 %4519, %v6629_v13   ;;  %v6684_v49 = vpop.xlane.xlu0 %1904 }
 0x550   : > { %4504 = vset.pattern.permute.xlu1 %v8189_v16 }
 0x551   : > { %2563 = vperm.xlu1 %4504, %v6660_v59   ;;  %v6688_v45 = vpop.xlane.xlu1 %1910  ;;  %3365 = vperm.xlu0 %4519, %v6637_v19   ;;  %v6691_v43 = vpop.xlane.xlu0 %1908 }
 0x555   : > { %2559 = vperm.xlu1 %4504, %v6629_v13   ;;  %v6694_v22 = vpop.xlane.xlu1 %1914  ;;  %4521 = vset.pattern.permute.xlu0 %v8189_v16  ;;  %v6697_v46 = vpop.xlane.xlu0 %1912 }
 0x556   : > { %2603 = vperm.xlu0 %4521, %v6603_v36  }
 0x559   : > { %4505 = vset.pattern.permute.xlu1 %v8190_v1  ;;  %v1919_v8 = vpop.xlane.xlu1 %1918  ;;  %v6701_v17 = vpop.xlane.xlu0 %1916 }
 0x55a   : > { %2146 = vperm.xlu1 %4505, %v6704_v21   ;;  %2591 = vperm.xlu0 %4521, %v6633_v25  }
 0x55d   : > { %v1923_v48 = vpop.xlane.xlu1 %1922  ;;  %v1921_v29 = vpop.xlane.xlu0 %1920 }
 0x55e   : > { %2142 = vperm.xlu1 %4505, %v6665_v60   ;;  %2579 = vperm.xlu0 %4521, %v6656_v50  }
 0x561   : > { %v1927_v28 = vpop.xlane.xlu1 %1926  ;;  %v1925_v0 = vpop.xlane.xlu0 %1924 }
 0x562   : > { %4506 = vset.pattern.permute.xlu1 %v8189_v16  ;;  %2567 = vperm.xlu0 %4521, %v6676_v32  }
 0x563   : > { %2551 = vperm.xlu1 %4506, %v6665_v60  }
 0x565   : > { %v1931_v47 = vpop.xlane.xlu1 %1930  ;;  %v1929_v7 = vpop.xlane.xlu0 %1928 }
 0x566   : > { %2555 = vperm.xlu0 %4521, %v6704_v21  }
 0x567   : > { %2547 = vperm.xlu1 %4506, %v6637_v19  }
 0x569   : > { %v1935_v5 = vpop.xlane.xlu1 %1934  ;;  %v1933_v38 = vpop.xlane.xlu0 %1932 }
 0x56a   : > { %2543 = vperm.xlu0 %4521, %v6716_v33   ;;  %4762 = vrcp.f32 %v1935_v5 }
 0x56b   : > { %4507 = vset.pattern.permute.xlu1 %v8190_v1  ;;  %4764 = vrcp.f32 %v1933_v38 }
 0x56c   : > { %2134 = vperm.xlu1 %4507, %v6716_v33   ;;  %4766 = vrcp.f32 %v1931_v47 }
 0x56d   : > { %v6721_v44 = vpop.permute.xlu1 %1973  ;;  %4768 = vrcp.f32 %v1929_v7 }
 0x56e   : > { %4770 = vrcp.f32 %v1927_v28 }
 0x56f   : > { %4772 = vrcp.f32 %v1925_v0 }
 0x570   : > { %4508 = vset.pattern.permute.xlu1 %v8194_v14  ;;  %4774 = vrcp.f32 %v1923_v48  ;;  %v8410_v48 = vld [vmem:[#allocation5_spill] sm:$0xff] }
 0x571   : > { %3012 = vperm.xlu1 %4508, %v6603_v36   ;;  %v6725_v26 = vpop.permute.xlu1 %1977  ;;  %v6727_v2 = vpop.permute.xlu0 %1969  ;;  %4776 = vrcp.f32 %v1921_v29 }
 0x572   : > { %4778 = vrcp.f32 %v1919_v8 }
 0x573   : > { %4780 = vrcp.f32 %v6701_v17 }
 0x574   : > { %4782 = vrcp.f32 %v6694_v22 }
 0x575   : > { %4509 = vset.pattern.permute.xlu1 %v8192_v27  ;;  %v6730_v20 = vpop.permute.xlu1 %1985  ;;  %v6732_v40 = vpop.permute.xlu0 %1981  ;;  %4784 = vrcp.f32 %v6697_v46  ;;  %v6781_v46 = vld [vmem:[%s8137_s4 + $0x70] sm:$0xff] }
 0x576   : > { %3421 = vperm.xlu1 %4509, %v6603_v36   ;;  %4786 = vrcp.f32 %v6688_v45 }
 0x577   : > { %4788 = vrcp.f32 %v6691_v43 }
 0x578   : > { %4790 = vrcp.f32 %v6681_v55 }
 0x579   : > { %v6735_v52 = vpop.permute.xlu1 %1993  ;;  %v6737_v9 = vpop.permute.xlu0 %1989  ;;  %4792 = vrcp.f32 %v6684_v49 }
 0x57a   : > { %3417 = vperm.xlu1 %4509, %v6608_v63   ;;  %v4763_v63 = vpop.eup %4762 }
 0x57b   : > { %v4765_v47 = vpop.eup %4764  ;;  %v1967_v7 = vmul.f32 %v4763_v63, %v6582_v39  ;;  %v6763_v39 = vld [vmem:[%s8137_s4 + $0x78] sm:$0xff] }
 0x57c   : > { %v4767_v38 = vpop.eup %4766  ;;  %v1965_v0 = vmul.f32 %v4765_v47, %v6580_v34 }
 0x57d   : > { %v6740_v37 = vpop.permute.xlu1 %2001  ;;  %v6742_v18 = vpop.permute.xlu0 %1997  ;;  %v1963_v8 = vmul.f32 %v4767_v38, %v6576_v53 }
 0x57e   : > { %4511 = vset.pattern.permute.xlu1 %v8194_v14 }
 0x57f   : > { %3004 = vperm.xlu1 %4511, %v6613_v4  }
 0x581   : > { %v6746_v35 = vpop.permute.xlu1 %2009  ;;  %v6748_v58 = vpop.permute.xlu0 %2005 }
 0x583   : > { %3000 = vperm.xlu1 %4511, %v6633_v25  }
 0x585   : > { %v2018_v36 = vpop.permute.xlu1 %2017  ;;  %v2014_v6 = vpop.permute.xlu0 %2013 }
 0x587   : > { %4512 = vset.pattern.permute.xlu1 %v8192_v27  ;;  %v4769_v27 = vpop.eup %4768 }
 0x588   : > { %3409 = vperm.xlu1 %4512, %v6633_v25   ;;  %v4771_v34 = vpop.eup %4770  ;;  %v1961_v53 = vmul.f32 %v4769_v27, %v6574_v56 }
 0x589   : > { %v2026_v5 = vpop.permute.xlu1 %2025  ;;  %v2022_v4 = vpop.permute.xlu0 %2021 }
 0x58a   : > { %v2046_v29 = vmul.f32 %v2026_v5, %v1965_v0  ;;  %v2045_v22 = vmul.f32 %v2022_v4, %v1963_v8  ;;  %v4773_v63 = vpop.eup %4772  ;;  %v2044_v5 = vmul.f32 %v2018_v36, %v1961_v53 }
 0x58b   : > { %v4775_v27 = vpop.eup %4774  ;;  %v1957_v45 = vmul.f32 %v4773_v63, %v6568_v61 }
 0x58c   : > { %3405 = vperm.xlu1 %4512, %v6641_v31   ;;  %v4777_v47 = vpop.eup %4776  ;;  %v1955_v0 = vmul.f32 %v4775_v27, %v6564_v3 }
 0x58d   : > { %v2195_v28 = vpop.permute.xlu1 %2194  ;;  %v2030_v16 = vpop.permute.xlu0 %2029 }
 0x58e   : > { %v2216_v1 = vmul.f32 %v8410_v48, %v2195_v28  ;;  %v2047_v25 = vmul.f32 %v2030_v16, %v1967_v7  ;;  %v8411_v7 = vld [vmem:[#allocation6_spill] sm:$0xff]  ;;  %v2042_v28 = vmul.f32 %v6746_v35, %v1957_v45  ;;  %v4779_v43 = vpop.eup %4778 }
 0x58f   : > { %v4781_v3 = vpop.eup %4780  ;;  %v1951_v49 = vmul.f32 %v4779_v43, %v6558_v10 }
 0x590   : > { %v6766_v31 = vmul.f32 %v6763_v39, %v2216_v1  ;;  %4513 = vset.pattern.permute.xlu1 %v8194_v14  ;;  %4260 = vmatprep.subr.mxu1 %v2047_v25 }
 0x591   : > { %2992 = vperm.xlu1 %4513, %v6619_v62   ;;  %v2191_v16 = vpop.permute.xlu1 %2190  ;;  %4261 = vmatpush3.msra.mxu1 %v2047_v25  ;;  %v1959_v62 = vmul.f32 %v4771_v34, %v6570_v12  ;;  %v1953_v25 = vmul.f32 %v4777_v47, %v6562_v23  ;;  %v4783_v23 = vpop.eup %4782  ;;  %v2039_v53 = vmul.f32 %v6742_v18, %v1951_v49 }
 0x592   : > { %v2215_v17 = vmul.f32 %v8410_v48, %v2191_v16  ;;  %2263 = vmax.xlane.f32.xlu0 %v6766_v31  ;;  %4262 = vmatprep.subr.mxu1 %v2046_v29  ;;  %v6774_v1 = vpop.permute.xlu0 %2186  ;;  %v1949_v16 = vmul.f32 %v4781_v3, %v6555_v30  ;;  %v4785_v10 = vpop.eup %4784  ;;  %v1947_v63 = vmul.f32 %v4783_v23, %v6550_v51  ;;  %v8413_v23 = vmov 4  }
 0x593   : > { %4263 = vmatpush3.msra.mxu1 %v2046_v29  ;;  %v2043_v36 = vmul.f32 %v2014_v6, %v1959_v62  ;;  %v8412_v6 = vmov 7   ;;  %v2041_v29 = vmul.f32 %v6748_v58, %v1955_v0  ;;  %v2040_v34 = vmul.f32 %v6740_v37, %v1953_v25 }
 0x594   : > { %v6784_v56 = vmul.f32 %v6781_v46, %v2215_v17  ;;  %4264 = vmatprep.subr.mxu1 %v2045_v22  ;;  %v2038_v17 = vmul.f32 %v6735_v52, %v1949_v16  ;;  %v1945_v30 = vmul.f32 %v4785_v10, %v6547_v11 }
 0x595   : > { %2988 = vperm.xlu1 %4513, %v6656_v50   ;;  %4265 = vmatpush3.msra.mxu1 %v2045_v22 }
 0x596   : > { %v2600_v4 = vpop.permute.xlu1 %2599  ;;  %2261 = vmax.xlane.f32.xlu0 %v6784_v56  ;;  %4266 = vmatprep.subr.mxu1 %v2044_v5  ;;  %v6790_v12 = vpop.permute.xlu0 %2174  ;;  %v2036_v51 = vmul.f32 %v6730_v20, %v1945_v30  ;;  %v6913_v30 = vld [vmem:[%s8137_s4 + $0x58] sm:$0xff] }
 0x597   : > { %v2624_v38 = vmul.f32 %v8411_v7, %v2600_v4  ;;  %4267 = vmatpush3.msra.mxu1 %v2044_v5  ;;  %v4787_v5 = vpop.eup %4786 }
 0x598   : > { %4268 = vmatprep.subr.mxu1 %v2043_v36  ;;  %v4789_v62 = vpop.eup %4788  ;;  %v1943_v52 = vmul.f32 %v4787_v5, %v6542_v54 }
 0x599   : > { %v6797_v61 = vmul.f32 %v6781_v46, %v2624_v38  ;;  %4514 = vset.pattern.permute.xlu1 %v8412_v6  ;;  %4269 = vmatpush3.msra.mxu1 %v2043_v36  ;;  %v4791_v45 = vpop.eup %4790  ;;  %v1941_v11 = vmul.f32 %v4789_v62, %v6539_v24 }
 0x59a   : > { %3397 = vperm.xlu1 %4514, %v6656_v50   ;;  %v2596_v55 = vpop.permute.xlu1 %2595  ;;  %4270 = vmatprep.subr.mxu1 %v2042_v28  ;;  %v6804_v35 = vpop.permute.xlu0 %2162  ;;  %v6813_v50 = vld [vmem:[%s8137_s4 + $0x68] sm:$0xff]  ;;  %v1939_v4 = vmul.f32 %v4791_v45, %v6531_v57  ;;  %v6924_v45 = vld [vmem:[%s8137_s4 + $0x50] sm:$0xff] }
 0x59b   : > { %v2623_v8 = vmul.f32 %v8411_v7, %v2596_v55  ;;  %2670 = vmax.xlane.f32.xlu0 %v6797_v61  ;;  %4271 = vmatpush3.msra.mxu1 %v2042_v28  ;;  %v4793_v36 = vpop.eup %4792  ;;  %v2034_v20 = vmul.f32 %v6725_v26, %v1941_v11 }
 0x59c   : > { %4272 = vmatprep.subr.mxu1 %v2041_v29  ;;  %v2033_v54 = vmul.f32 %v6721_v44, %v1939_v4  ;;  %v1937_v24 = vmul.f32 %v4793_v36, %v6534_v41  ;;  %v5119_v41 = vld [vmem:[%s8138_s5 + $0x8] sm:$0xff] }
 0x59d   : > { %v6816_v58 = vmul.f32 %v6813_v50, %v2623_v8  ;;  %4273 = vmatpush3.msra.mxu1 %v2041_v29 }
 0x59e   : > { %3393 = vperm.xlu1 %4514, %v6651_v42   ;;  %4274 = vmatprep.subr.mxu1 %v2040_v34  ;;  %v6821_v37 = vpop.permute.xlu0 %2150  ;;  %v2037_v42 = vmul.f32 %v6737_v9, %v1947_v63  ;;  %v2035_v9 = vmul.f32 %v6732_v40, %v1943_v52  ;;  %v2032_v38 = vmul.f32 %v6727_v2, %v1937_v24 }
 0x59f   : > { %v6823_v22 = vpop.permute.xlu1 %2182  ;;  %2668 = vmax.xlane.f32.xlu0 %v6816_v58  ;;  %4275 = vmatpush3.msra.mxu1 %v2040_v34 }
 0x5a0   : > { %4276 = vmatprep.subr.mxu1 %v2039_v53 }
 0x5a1   : > { %4277 = vmatpush3.msra.mxu1 %v2039_v53 }
 0x5a2   : > { %4515 = vset.pattern.permute.xlu1 %v8194_v14  ;;  %4278 = vmatprep.subr.mxu1 %v2038_v17  ;;  %v6831_v18 = vpop.permute.xlu0 %2138 }
 0x5a3   : > { %2980 = vperm.xlu1 %4515, %v6624_v15   ;;  %v6834_v27 = vpop.permute.xlu1 %2178  ;;  %4279 = vmatpush3.msra.mxu1 %v2038_v17  ;;  %v6902_v17 = vld [vmem:[%s8137_s4 + $0x60] sm:$0xff] }
 0x5a4   : > { %4280 = vmatprep.subr.mxu1 %v2037_v42 }
 0x5a5   : > { %4281 = vmatpush3.msra.mxu1 %v2037_v42 }
 0x5a6   : > { %4282 = vmatprep.subr.mxu1 %v2036_v51 }
 0x5a7   : > { %2976 = vperm.xlu1 %4515, %v6676_v32   ;;  %4283 = vmatpush3.msra.mxu1 %v2036_v51  ;;  %v6841_v15 = vpop.permute.xlu0 %3008 }
 0x5a8   : > { %v2588_v47 = vpop.permute.xlu1 %2587  ;;  %4284 = vmatprep.subr.mxu1 %v2035_v9 }
 0x5a9   : > { %4285 = vmatpush3.msra.mxu1 %v2035_v9  ;;  %v2621_v10 = vmul.f32 %v8411_v7, %v2588_v47  ;;  %v6932_v9 = vld [vmem:[%s8137_s4 + $0x48] sm:$0xff] }
 0x5aa   : > { %4286 = vmatprep.subr.mxu1 %v2034_v20 }
 0x5ab   : > { %4516 = vset.pattern.permute.xlu1 %v8412_v6  ;;  %4287 = vmatpush3.msra.mxu1 %v2034_v20  ;;  %v6848_v40 = vpop.permute.xlu0 %2996  ;;  %v6916_v42 = vmul.f32 %v6913_v30, %v2621_v10 }
 0x5ac   : > { %3385 = vperm.xlu1 %4516, %v6676_v32   ;;  %v2584_v57 = vpop.permute.xlu1 %2583  ;;  %4288 = vmatprep.subr.mxu1 %v2033_v54  ;;  %v5120_v32 = vld [vmem:[%s8138_s5] sm:$0xff] }
 0x5ad   : > { %4289 = vmatpush3.msra.mxu1 %v2033_v54  ;;  %v2620_v62 = vmul.f32 %v8411_v7, %v2584_v57  ;;  %v6945_v54 = vld [vmem:[%s8137_s4 + $0x40] sm:$0xff] }
 0x5ae   : > { %4290 = vmatprep.subr.mxu1 %v2032_v38 }
 0x5af   : > { %4291 = vmatpush3.msra.mxu1 %v2032_v38  ;;  %v6852_v26 = vpop.permute.xlu0 %2984  ;;  %v6927_v11 = vmul.f32 %v6924_v45, %v2620_v62 }
 0x5b0   : > { %3381 = vperm.xlu1 %4516, %v6660_v59   ;;  %4293 = vmatmul.mubr.f32.vlgmr.msra.gmra.mxu1 %v5119_v41 }
 0x5b1   : > { %v6858_v44 = vpop.permute.xlu1 %2170  ;;  %4362 = vmatprep.mubr.f32.mxu1 %v5120_v32  ;;  %v6956_v32 = vld [vmem:[%s8137_s4 + $0x38] sm:$0xff] }
 0x5b3   : > { %v6863_v2 = vpop.permute.xlu0 %2972 }
 0x5b4   : > { %4517 = vset.pattern.permute.xlu1 %v8194_v14 }
 0x5b5   : > { %2968 = vperm.xlu1 %4517, %v6629_v13   ;;  %v6867_v28 = vpop.permute.xlu1 %2166 }
 0x5b7   : > { %v6869_v59 = vpop.permute.xlu0 %2960 }
 0x5b9   : > { %2964 = vperm.xlu1 %4517, %v6704_v21  }
 0x5ba   : > { %v2576_v0 = vpop.permute.xlu1 %2575 }
 0x5bb   : > { %v2618_v20 = vmul.f32 %v8411_v7, %v2576_v0 }
 0x5bc   : > { %v6872_v43 = vpop.permute.xlu0 %3413 }
 0x5bd   : > { %4518 = vset.pattern.permute.xlu1 %v8412_v6  ;;  %v6948_v24 = vmul.f32 %v6945_v54, %v2618_v20  ;;  %v6983_v20 = vld [vmem:[%s8137_s4 + $0x28] sm:$0xff] }
 0x5be   : > { %3373 = vperm.xlu1 %4518, %v6704_v21   ;;  %v2572_v25 = vpop.permute.xlu1 %2571 }
 0x5bf   : > { %8415 = vst [vmem:[#allocation22_spill] sm:$0xff] %v6948_v24  ;;  %v2617_v38 = vmul.f32 %v8411_v7, %v2572_v25  ;;  %v6967_v25 = vld [vmem:[%s8137_s4 + $0x30] sm:$0xff] }
 0x5c0   : > { %v6876_v29 = vpop.permute.xlu0 %3401 }
 0x5c1   : > { %v6959_v0 = vmul.f32 %v6956_v32, %v2617_v38 }
 0x5c2   : > { %3369 = vperm.xlu1 %4518, %v6665_v60  }
 0x5c3   : > { %v6879_v55 = vpop.permute.xlu1 %2158  ;;  %8416 = vst [vmem:[#allocation3_spill] sm:$0xff] %v6959_v0 }
 0x5c4   : > { %v6881_v13 = vpop.permute.xlu0 %3389 }
 0x5c6   : > { %4520 = vset.pattern.permute.xlu1 %v8194_v14  ;;  %v6999_v14 = vld [vmem:[%s8137_s4 + $0x20] sm:$0xff] }
 0x5c7   : > { %2956 = vperm.xlu1 %4520, %v6637_v19   ;;  %v6885_v3 = vpop.permute.xlu1 %2154 }
 0x5c8   : > { %v6887_v8 = vpop.permute.xlu0 %3377 }
 0x5cb   : > { %2952 = vperm.xlu1 %4520, %v6716_v33  }
 0x5cc   : > { %v2564_v21 = vpop.permute.xlu1 %2563  ;;  %v6890_v34 = vpop.permute.xlu0 %3365 }
 0x5cf   : > { %4522 = vset.pattern.permute.xlu1 %v8412_v6 }
 0x5d0   : > { %3361 = vperm.xlu1 %4522, %v6716_v33   ;;  %v2560_v60 = vpop.permute.xlu1 %2559 }
 0x5d1   : > { %v2604_v49 = vpop.permute.xlu0 %2603 }
 0x5d4   : > { %4523 = vset.pattern.permute.xlu1 %v8413_v23 }
 0x5d5   : > { %v6895_v16 = vpop.permute.xlu1 %2146  ;;  %v2592_v19 = vpop.permute.xlu0 %2591 }
 0x5d6   : > { %v2622_v53 = vmul.f32 %v8411_v7, %v2592_v19  ;;  %v2625_v19 = vmul.f32 %v8411_v7, %v2604_v49  ;;  %v2214_v49 = vmul.f32 %v8410_v48, %v6774_v1  ;;  %v2213_v1 = vmul.f32 %v8410_v48, %v6823_v22 }
 0x5d7   : > { %v2212_v22 = vmul.f32 %v8410_v48, %v6834_v27 }
 0x5d8   : > { %v6905_v63 = vmul.f32 %v6902_v17, %v2622_v53  ;;  %v6975_v62 = vmul.f32 %v6763_v39, %v2625_v19 }
 0x5d9   : > { %v6907_v33 = vpop.permute.xlu1 %2142  ;;  %v2580_v5 = vpop.permute.xlu0 %2579  ;;  %v7027_v27 = vmul.f32 %v6913_v30, %v2212_v22 }
 0x5da   : > { %2666 = vmax.xlane.f32.xlu0 %v6905_v63  ;;  %v2619_v52 = vmul.f32 %v8411_v7, %v2580_v5  ;;  %v2615_v5 = vmul.f32 %v8411_v7, %v2564_v21 }
 0x5dc   : > { %v6935_v36 = vmul.f32 %v6932_v9, %v2619_v52  ;;  %v6986_v38 = vmul.f32 %v6983_v20, %v2615_v5 }
 0x5dd   : > { %v2568_v57 = vpop.permute.xlu0 %2567 }
 0x5de   : > { %v2552_v51 = vpop.permute.xlu1 %2551  ;;  %2664 = vmax.xlane.f32.xlu0 %v6916_v42  ;;  %8414 = vst [vmem:[#allocation24_spill] sm:$0xff] %v6935_v36  ;;  %v2616_v41 = vmul.f32 %v8411_v7, %v2568_v57  ;;  %8418 = vst [vmem:[#allocation10_spill] sm:$0xff] %v6986_v38  ;;  %v2614_v57 = vmul.f32 %v8411_v7, %v2560_v60 }
 0x5df   : > { %v2612_v23 = vmul.f32 %v8411_v7, %v2552_v51  ;;  %v7035_v51 = vld [vmem:[%s8137_s4 + $0x10] sm:$0xff] }
 0x5e0   : > { %v6970_v10 = vmul.f32 %v6967_v25, %v2616_v41  ;;  %v6991_v41 = vmul.f32 %v6813_v50, %v2214_v49  ;;  %v7002_v5 = vmul.f32 %v6999_v14, %v2614_v57  ;;  %v7007_v49 = vmul.f32 %v6902_v17, %v2213_v1  ;;  %v7018_v57 = vld [vmem:[%s8137_s4 + $0x18] sm:$0xff] }
 0x5e1   : > { %v2556_v19 = vpop.permute.xlu0 %2555  ;;  %v2211_v1 = vmul.f32 %v8410_v48, %v6790_v12 }
 0x5e2   : > { %v2548_v4 = vpop.permute.xlu1 %2547  ;;  %2662 = vmax.xlane.f32.xlu0 %v6927_v11  ;;  %8417 = vst [vmem:[#allocation9_spill] sm:$0xff] %v6970_v10  ;;  %8419 = vst [vmem:[#allocation11_spill] sm:$0xff] %v7002_v5  ;;  %v2613_v60 = vmul.f32 %v8411_v7, %v2556_v19 }
 0x5e3   : > { %v7043_v22 = vmul.f32 %v6924_v45, %v2211_v1 }
 0x5e4   : > { %v7021_v19 = vmul.f32 %v7018_v57, %v2613_v60  ;;  %v7038_v60 = vmul.f32 %v7035_v51, %v2612_v23 }
 0x5e5   : > { %v2544_v12 = vpop.permute.xlu0 %2543  ;;  %8422 = vst [vmem:[#allocation36_spill] sm:$0xff] %v7043_v22 }
 0x5e6   : > { %2660 = vmax.xlane.f32.xlu0 %v6935_v36  ;;  %8420 = vst [vmem:[#allocation12_spill] sm:$0xff] %v7021_v19  ;;  %8421 = vst [vmem:[#allocation4_spill] sm:$0xff] %v7038_v60 }
 0x5e7   : > { %v6940_v47 = vpop.permute.xlu1 %2134 }
 0x5ea   : > { %2658 = vmax.xlane.f32.xlu0 %v6948_v24  ;;  %v7067_v24 = vld [vmem:[%s8137_s4] sm:$0xff] }
 0x5ec   : > { %v6962_v53 = vpop.permute.xlu1 %3012 }
 0x5ee   : > { %2656 = vmax.xlane.f32.xlu0 %v6959_v0  ;;  %v7051_v0 = vld [vmem:[%s8137_s4 + $0x8] sm:$0xff] }
 0x5f1   : > { %v3422_v52 = vpop.permute.xlu1 %3421 }
 0x5f2   : > { %2654 = vmax.xlane.f32.xlu0 %v6970_v10  ;;  %v2210_v10 = vmul.f32 %v8410_v48, %v6858_v44  ;;  %v2209_v44 = vmul.f32 %v8410_v48, %v6867_v28 }
 0x5f4   : > { %2672 = vmax.xlane.f32.xlu1 %v6975_v62  ;;  %v7059_v1 = vmul.f32 %v6932_v9, %v2210_v10  ;;  %v2208_v10 = vmul.f32 %v8410_v48, %v6804_v35  ;;  %v7077_v28 = vmul.f32 %v6945_v54, %v2209_v44  ;;  %v2207_v35 = vmul.f32 %v8410_v48, %v6879_v55 }
 0x5f5   : > { %v3418_v21 = vpop.permute.xlu1 %3417 }
 0x5f6   : > { %2652 = vmax.xlane.f32.xlu0 %v6986_v38 }
 0x5f8   : > { %2259 = vmax.xlane.f32.xlu1 %v6991_v41 }
 0x5fa   : > { %v7011_v6 = vpop.permute.xlu1 %3004  ;;  %2650 = vmax.xlane.f32.xlu0 %v7002_v5  ;;  %v2611_v5 = vmul.f32 %v8411_v7, %v2548_v4  ;;  %v2610_v4 = vmul.f32 %v8411_v7, %v2544_v12  ;;  %v8425_v7 = vld [vmem:[#allocation8_spill] sm:$0xff] }
 0x5fb   : > { %v3443_v12 = vmul.f32 %v8425_v7, %v3422_v52  ;;  %v3442_v36 = vmul.f32 %v8425_v7, %v3418_v21  ;;  %v7088_v52 = vmul.f32 %v6956_v32, %v2208_v10  ;;  %v7102_v21 = vmul.f32 %v6967_v25, %v2207_v35 }
 0x5fc   : > { %2257 = vmax.xlane.f32.xlu1 %v7007_v49  ;;  %v7054_v23 = vmul.f32 %v7051_v0, %v2611_v5  ;;  %v7070_v5 = vmul.f32 %v7067_v24, %v2610_v4  ;;  %v3441_v4 = vmul.f32 %v8425_v7, %v6872_v43  ;;  %v2206_v10 = vmul.f32 %v8410_v48, %v6885_v3 }
 0x5fd   : > { %v7096_v44 = vmul.f32 %v6781_v46, %v3442_v36 }
 0x5fe   : > { %v7029_v38 = vpop.permute.xlu1 %3000  ;;  %2648 = vmax.xlane.f32.xlu0 %v7021_v19  ;;  %8423 = vst [vmem:[#allocation35_spill] sm:$0xff] %v7054_v23  ;;  %8424 = vst [vmem:[#allocation13_spill] sm:$0xff] %v7070_v5  ;;  %v7108_v55 = vmul.f32 %v6813_v50, %v3441_v4 }
 0x5ff   : > { %8427 = vst [vmem:[#allocation14_spill] sm:$0xff] %v7096_v44 }
 0x600   : > { %2255 = vmax.xlane.f32.xlu1 %v7027_v27 }
 0x602   : > { %2646 = vmax.xlane.f32.xlu0 %v7038_v60 }
 0x603   : > { %v3410_v19 = vpop.permute.xlu1 %3409 }
 0x604   : > { %2253 = vmax.xlane.f32.xlu1 %v7043_v22  ;;  %v3440_v43 = vmul.f32 %v8425_v7, %v3410_v19 }
 0x606   : > { %2644 = vmax.xlane.f32.xlu0 %v7054_v23  ;;  %v7081_v23 = vmul.f32 %v6763_v39, %v3443_v12  ;;  %v7119_v3 = vmul.f32 %v6902_v17, %v3440_v43 }
 0x607   : > { %v3406_v60 = vpop.permute.xlu1 %3405 }
 0x608   : > { %2251 = vmax.xlane.f32.xlu1 %v7059_v1  ;;  %8426 = vst [vmem:[#allocation26_spill] sm:$0xff] %v7081_v23  ;;  %8428 = vst [vmem:[#allocation20_spill] sm:$0xff] %v7119_v3  ;;  %v3439_v35 = vmul.f32 %v8425_v7, %v3406_v60 }
 0x60a   : > { %2642 = vmax.xlane.f32.xlu0 %v7070_v5  ;;  %v7115_v5 = vmul.f32 %v6983_v20, %v2206_v10  ;;  %v7132_v10 = vmul.f32 %v6913_v30, %v3439_v35  ;;  %v2202_v35 = vmul.f32 %v8410_v48, %v6831_v18  ;;  %v2201_v18 = vmul.f32 %v8410_v48, %v6940_v47 }
 0x60c   : > { %v7084_v22 = vpop.permute.xlu1 %2992  ;;  %2249 = vmax.xlane.f32.xlu1 %v7077_v28  ;;  %8429 = vst [vmem:[#allocation16_spill] sm:$0xff] %v7132_v10 }
 0x60e   : > { %3490 = vmax.xlane.f32.xlu0 %v7081_v23  ;;  %v2205_v23 = vmul.f32 %v8410_v48, %v6821_v37  ;;  %v3438_v37 = vmul.f32 %v8425_v7, %v6876_v29 }
 0x610   : > { %v7098_v12 = vpop.permute.xlu1 %2988  ;;  %2247 = vmax.xlane.f32.xlu1 %v7088_v52  ;;  %v7124_v19 = vmul.f32 %v6999_v14, %v2205_v23  ;;  %v2203_v23 = vmul.f32 %v8410_v48, %v6907_v33 }
 0x612   : > { %3488 = vmax.xlane.f32.xlu0 %v7096_v44  ;;  %v2204_v44 = vmul.f32 %v8410_v48, %v6895_v16  ;;  %v7144_v16 = vmul.f32 %v6924_v45, %v3438_v37 }
 0x614   : > { %2245 = vmax.xlane.f32.xlu1 %v7102_v21  ;;  %v7136_v60 = vmul.f32 %v7018_v57, %v2204_v44  ;;  %8430 = vst [vmem:[#allocation33_spill] sm:$0xff] %v7144_v16  ;;  %v7151_v44 = vmul.f32 %v7035_v51, %v2203_v23 }
 0x615   : > { %v3398_v36 = vpop.permute.xlu1 %3397 }
 0x616   : > { %3486 = vmax.xlane.f32.xlu0 %v7108_v55  ;;  %v3437_v29 = vmul.f32 %v8425_v7, %v3398_v36  ;;  %v7162_v36 = vmul.f32 %v7051_v0, %v2202_v35 }
 0x618   : > { %2243 = vmax.xlane.f32.xlu1 %v7115_v5  ;;  %v7157_v33 = vmul.f32 %v6932_v9, %v3437_v29  ;;  %v8433_v29 = vld [vmem:[#allocation7_spill] sm:$0xff] }
 0x619   : > { %v3394_v4 = vpop.permute.xlu1 %3393  ;;  %v3034_v35 = vmul.f32 %v8433_v29, %v6962_v53 }
 0x61a   : > { %3484 = vmax.xlane.f32.xlu0 %v7119_v3  ;;  %8431 = vst [vmem:[#allocation34_spill] sm:$0xff] %v7157_v33  ;;  %v3436_v37 = vmul.f32 %v8425_v7, %v3394_v4  ;;  %v7174_v4 = vmul.f32 %v7067_v24, %v2201_v18 }
 0x61c   : > { %2241 = vmax.xlane.f32.xlu1 %v7124_v19 }
 0x61e   : > { %v7140_v43 = vpop.permute.xlu1 %2980  ;;  %3482 = vmax.xlane.f32.xlu0 %v7132_v10  ;;  %v3435_v10 = vmul.f32 %v8425_v7, %v6881_v13  ;;  %v3033_v13 = vmul.f32 %v8433_v29, %v6841_v15 }
 0x620   : > { %2239 = vmax.xlane.f32.xlu1 %v7136_v60  ;;  %v7180_v47 = vmul.f32 %v6956_v32, %v3435_v10  ;;  %v7196_v10 = vmul.f32 %v6781_v46, %v3033_v13  ;;  %v3031_v46 = vmul.f32 %v8433_v29, %v7029_v38 }
 0x622   : > { %v7153_v3 = vpop.permute.xlu1 %2976  ;;  %3480 = vmax.xlane.f32.xlu0 %v7144_v16  ;;  %v7170_v16 = vmul.f32 %v6945_v54, %v3436_v37  ;;  %v7187_v37 = vmul.f32 %v6763_v39, %v3034_v35  ;;  %v3432_v39 = vmul.f32 %v8425_v7, %v6887_v8  ;;  %v7220_v13 = vmul.f32 %v6902_v17, %v3031_v46 }
 0x623   : > { %v3429_v17 = vmul.f32 %v8425_v7, %v6890_v34  ;;  %v3027_v34 = vmul.f32 %v8433_v29, %v6852_v26 }
 0x624   : > { %2237 = vmax.xlane.f32.xlu1 %v7151_v44  ;;  %8432 = vst [vmem:[#allocation31_spill] sm:$0xff] %v7170_v16 }
 0x626   : > { %3478 = vmax.xlane.f32.xlu0 %v7157_v33 }
 0x627   : > { %v3386_v23 = vpop.permute.xlu1 %3385 }
 0x628   : > { %2235 = vmax.xlane.f32.xlu1 %v7162_v36  ;;  %v3434_v33 = vmul.f32 %v8425_v7, %v3386_v23  ;;  %v3032_v23 = vmul.f32 %v8433_v29, %v7011_v6  ;;  %v7214_v6 = vmul.f32 %v6999_v14, %v3432_v39  ;;  %v3029_v39 = vmul.f32 %v8433_v29, %v7084_v22 }
 0x629   : > { %v7248_v22 = vmul.f32 %v7051_v0, %v3429_v17 }
 0x62a   : > { %3476 = vmax.xlane.f32.xlu0 %v7170_v16  ;;  %v7191_v53 = vmul.f32 %v6967_v25, %v3434_v33  ;;  %v7208_v35 = vmul.f32 %v6813_v50, %v3032_v23 }
 0x62b   : > { %v3382_v48 = vpop.permute.xlu1 %3381  ;;  %8434 = vst [vmem:[#allocation15_spill] sm:$0xff] %v7248_v22 }
 0x62c   : > { %2233 = vmax.xlane.f32.xlu1 %v7174_v4  ;;  %v3433_v18 = vmul.f32 %v8425_v7, %v3382_v48  ;;  %v3030_v48 = vmul.f32 %v8433_v29, %v6848_v40 }
 0x62e   : > { %3474 = vmax.xlane.f32.xlu0 %v7180_v47  ;;  %v7204_v15 = vmul.f32 %v6983_v20, %v3433_v18  ;;  %v7229_v23 = vmul.f32 %v6913_v30, %v3030_v48  ;;  %v3028_v30 = vmul.f32 %v8433_v29, %v7098_v12  ;;  %v3026_v12 = vmul.f32 %v8433_v29, %v7140_v43 }
 0x630   : > { %v2969_v16 = vpop.permute.xlu1 %2968  ;;  %3081 = vmax.xlane.f32.xlu1 %v7187_v37  ;;  %v7266_v26 = vmul.f32 %v6956_v32, %v3026_v12  ;;  %v2264_v32 = vpop.xlane.xlu0 %2263 }
 0x632   : > { %3472 = vmax.xlane.f32.xlu0 %v7191_v53 }
 0x634   : > { %v2965_v33 = vpop.permute.xlu1 %2964  ;;  %3079 = vmax.xlane.f32.xlu1 %v7196_v10  ;;  %v2262_v12 = vpop.xlane.xlu0 %2261 }
 0x636   : > { %3470 = vmax.xlane.f32.xlu0 %v7204_v15 }
 0x638   : > { %3077 = vmax.xlane.f32.xlu1 %v7208_v35 }
 0x639   : > { %v3374_v8 = vpop.permute.xlu1 %3373 }
 0x63a   : > { %v3431_v50 = vmul.f32 %v8425_v7, %v3374_v8  ;;  %3468 = vmax.xlane.f32.xlu0 %v7214_v6  ;;  %v7242_v8 = vmul.f32 %v6924_v45, %v3029_v39  ;;  %v7259_v45 = vmul.f32 %v6945_v54, %v3027_v34  ;;  %v3024_v54 = vmul.f32 %v8433_v29, %v6863_v2 }
 0x63b   : > { %v3022_v2 = vmul.f32 %v8433_v29, %v2965_v33 }
 0x63c   : > { %v7225_v38 = vmul.f32 %v7018_v57, %v3431_v50  ;;  %3075 = vmax.xlane.f32.xlu1 %v7220_v13  ;;  %v7254_v50 = vmul.f32 %v6932_v9, %v3028_v30  ;;  %v3025_v9 = vmul.f32 %v8433_v29, %v7153_v3  ;;  %v7282_v43 = vmul.f32 %v6983_v20, %v3024_v54 }
 0x63d   : > { %v3370_v18 = vpop.permute.xlu1 %3369  ;;  %v3023_v3 = vmul.f32 %v8433_v29, %v2969_v16  ;;  %v2280_v30 = vsub.f32 %v6766_v31, %v2264_v32  ;;  %v2279_v20 = vsub.f32 %v6784_v56, %v2262_v12  ;;  %v7296_v16 = vmul.f32 %v7018_v57, %v3022_v2 }
 0x63e   : > { %v3430_v40 = vmul.f32 %v8425_v7, %v3370_v18  ;;  %3466 = vmax.xlane.f32.xlu0 %v7225_v38 }
 0x63f   : > { %v7288_v34 = vmul.f32 %v6999_v14, %v3023_v3  ;;  %v2309_v14 = vmul.f32 1.442695, %v2279_v20 }
 0x640   : > { %v7238_v46 = vmul.f32 %v7035_v51, %v3430_v40  ;;  %3073 = vmax.xlane.f32.xlu1 %v7229_v23 }
 0x642   : > { %v2957_v48 = vpop.permute.xlu1 %2956  ;;  %3464 = vmax.xlane.f32.xlu0 %v7238_v46 }
 0x643   : > { %v3020_v33 = vmul.f32 %v8433_v29, %v2957_v48 }
 0x644   : > { %3071 = vmax.xlane.f32.xlu1 %v7242_v8 }
 0x646   : > { %v2953_v18 = vpop.permute.xlu1 %2952  ;;  %3462 = vmax.xlane.f32.xlu0 %v7248_v22 }
 0x647   : > { %v3019_v56 = vmul.f32 %v8433_v29, %v2953_v18 }
 0x648   : > { %3069 = vmax.xlane.f32.xlu1 %v7254_v50 }
 0x649   : > { %v7310_v57 = vmul.f32 %v7067_v24, %v3019_v56 }
 0x64b   : > { %v3362_v39 = vpop.permute.xlu1 %3361  ;;  %8436 = vst [vmem:[#allocation32_spill] sm:$0xff] %v7310_v57 }
 0x64c   : > { %v3428_v40 = vmul.f32 %v8425_v7, %v3362_v39  ;;  %3067 = vmax.xlane.f32.xlu1 %v7259_v45  ;;  %v7278_v7 = vmul.f32 %v6967_v25, %v3025_v9  ;;  %v3021_v25 = vmul.f32 %v8433_v29, %v6869_v59  ;;  %v2311_v39 = vmul.f32 1.442695, %v2280_v30 }
 0x64d   : > { %v7305_v59 = vmul.f32 %v7051_v0, %v3020_v33 }
 0x64e   : > { %v7271_v17 = vmul.f32 %v7067_v24, %v3428_v40  ;;  %v7300_v31 = vmul.f32 %v7035_v51, %v3021_v25  ;;  %4794 = vpow2.f32 %v2311_v39  ;;  %v2671_v40 = vpop.xlane.xlu0 %2670 }
 0x64f   : > { %4796 = vpow2.f32 %v2309_v14  ;;  %v2688_v29 = vsub.f32 %v6797_v61, %v2671_v40 }
 0x650   : > { %8435 = vst [vmem:[#allocation18_spill] sm:$0xff] %v7271_v17  ;;  %3065 = vmax.xlane.f32.xlu1 %v7266_v26  ;;  %3460 = vmax.xlane.f32.xlu0 %v7271_v17 }
 0x651   : > { %v2718_v30 = vmul.f32 1.442695, %v2688_v29 }
 0x652   : > { %v2669_v51 = vpop.xlane.xlu0 %2668 }
 0x653   : > { %v2687_v2 = vsub.f32 %v6816_v58, %v2669_v51 }
 0x654   : > { %3063 = vmax.xlane.f32.xlu1 %v7278_v7 }
 0x655   : > { %v2716_v14 = vmul.f32 1.442695, %v2687_v2 }
 0x658   : > { %3061 = vmax.xlane.f32.xlu1 %v7282_v43 }
 0x65b   : > { %v7313_v9 = vpop.eup %4794 }
 0x65c   : > { %3059 = vmax.xlane.f32.xlu1 %v7288_v34  ;;  %v7316_v54 = vpop.eup %4796 }
 0x660   : > { %3057 = vmax.xlane.f32.xlu1 %v7296_v16 }
 0x663   : > { %v2667_v48 = vpop.xlane.xlu0 %2666 }
 0x664   : > { %3055 = vmax.xlane.f32.xlu1 %v7300_v31  ;;  %v2686_v33 = vsub.f32 %v6905_v63, %v2667_v48 }
 0x666   : > { %v2714_v29 = vmul.f32 1.442695, %v2686_v33 }
 0x667   : > { %v2665_v0 = vpop.xlane.xlu0 %2664 }
 0x668   : > { %3053 = vmax.xlane.f32.xlu1 %v7305_v59  ;;  %v2685_v58 = vsub.f32 %v6916_v42, %v2665_v0  ;;  %v8438_v0 = vld [vmem:[#allocation24_spill] sm:$0xff] }
 0x66b   : > { %v2663_v32 = vpop.xlane.xlu0 %2662 }
 0x66c   : > { %3051 = vmax.xlane.f32.xlu1 %v7310_v57 }
 0x66f   : > { %v2661_v12 = vpop.xlane.xlu0 %2660 }
 0x670   : > { %2343 = vadd.xlane.f32.xlu1 %v7313_v9 }
 0x673   : > { %v2659_v40 = vpop.xlane.xlu0 %2658 }
 0x674   : > { %2341 = vadd.xlane.f32.xlu1 %v7316_v54 }
 0x677   : > { %v2657_v63 = vpop.xlane.xlu0 %2656 }
 0x67d   : > { %v2673_v18 = vpop.xlane.xlu1 %2672 }
 0x67e   : > { %v2689_v24 = vsub.f32 %v6975_v62, %v2673_v18 }
 0x680   : > { %v2720_v3 = vmul.f32 1.442695, %v2689_v24  ;;  %v2712_v24 = vmul.f32 1.442695, %v2685_v58 }
 0x681   : > { %v2260_v25 = vpop.xlane.xlu1 %2259 }
 0x682   : > { %4798 = vpow2.f32 %v2720_v3  ;;  %v2278_v39 = vsub.f32 %v6991_v41, %v2260_v25  ;;  %v2684_v3 = vsub.f32 %v6927_v11, %v2663_v32 }
 0x683   : > { %4800 = vpow2.f32 %v2718_v30  ;;  %v8437_v30 = vld [vmem:[#allocation36_spill] sm:$0xff] }
 0x684   : > { %v2307_v20 = vmul.f32 1.442695, %v2278_v39  ;;  %v2710_v42 = vmul.f32 1.442695, %v2684_v3  ;;  %v2683_v39 = vsub.f32 %v8438_v0, %v2661_v12 }
 0x685   : > { %v2258_v56 = vpop.xlane.xlu1 %2257 }
 0x686   : > { %4802 = vpow2.f32 %v2307_v20  ;;  %v2277_v61 = vsub.f32 %v7007_v49, %v2258_v56  ;;  %v2708_v56 = vmul.f32 1.442695, %v2683_v39 }
 0x687   : > { %4804 = vpow2.f32 %v2716_v14  ;;  %v2655_v14 = vpop.xlane.xlu0 %2654 }
 0x688   : > { %v2305_v62 = vmul.f32 1.442695, %v2277_v61  ;;  %v8441_v61 = vld [vmem:[#allocation22_spill] sm:$0xff] }
 0x689   : > { %v2256_v51 = vpop.xlane.xlu1 %2255 }
 0x68a   : > { %4806 = vpow2.f32 %v2305_v62  ;;  %v2276_v18 = vsub.f32 %v7027_v27, %v2256_v51  ;;  %v2682_v62 = vsub.f32 %v8441_v61, %v2659_v40  ;;  %v8450_v61 = vld [vmem:[#allocation10_spill] sm:$0xff] }
 0x68b   : > { %4808 = vpow2.f32 %v2714_v29  ;;  %v2653_v3 = vpop.xlane.xlu0 %2652 }
 0x68c   : > { %v2303_v41 = vmul.f32 1.442695, %v2276_v18  ;;  %v2706_v18 = vmul.f32 1.442695, %v2682_v62  ;;  %v2679_v62 = vsub.f32 %v8450_v61, %v2653_v3 }
 0x68d   : > { %v2254_v48 = vpop.xlane.xlu1 %2253 }
 0x68e   : > { %4810 = vpow2.f32 %v2303_v41  ;;  %v2275_v49 = vsub.f32 %v8437_v30, %v2254_v48  ;;  %v8444_v41 = vld [vmem:[#allocation3_spill] sm:$0xff] }
 0x68f   : > { %v7329_v2 = vpop.eup %4798  ;;  %4812 = vpow2.f32 %v2712_v24  ;;  %v2681_v24 = vsub.f32 %v8444_v41, %v2657_v63  ;;  %v8453_v41 = vld [vmem:[#allocation11_spill] sm:$0xff] }
 0x690   : > { %v2301_v25 = vmul.f32 1.442695, %v2275_v49  ;;  %2752 = vadd.xlane.f32.xlu0 %v7329_v2  ;;  %v7333_v20 = vpop.eup %4800 }
 0x691   : > { %v2252_v27 = vpop.xlane.xlu1 %2251  ;;  %8439 = vst [vmem:[#allocation29_spill] sm:$0xff] %v7333_v20 }
 0x692   : > { %4814 = vpow2.f32 %v2301_v25  ;;  %v2274_v11 = vsub.f32 %v7059_v1, %v2252_v27  ;;  %v2704_v25 = vmul.f32 1.442695, %v2681_v24 }
 0x693   : > { %v7336_v32 = vpop.eup %4802  ;;  %4816 = vpow2.f32 %v2710_v42  ;;  %v8447_v42 = vld [vmem:[#allocation9_spill] sm:$0xff] }
 0x694   : > { %8440 = vst [vmem:[#allocation17_spill] sm:$0xff] %v7336_v32  ;;  %v2299_v33 = vmul.f32 1.442695, %v2274_v11  ;;  %2339 = vadd.xlane.f32.xlu1 %v7336_v32  ;;  %2750 = vadd.xlane.f32.xlu0 %v7333_v20  ;;  %v7341_v12 = vpop.eup %4804  ;;  %v2680_v0 = vsub.f32 %v8447_v42, %v2655_v14 }
 0x695   : > { %v2250_v29 = vpop.xlane.xlu1 %2249  ;;  %8442 = vst [vmem:[#allocation19_spill] sm:$0xff] %v7341_v12 }
 0x696   : > { %4818 = vpow2.f32 %v2299_v33  ;;  %v2273_v58 = vsub.f32 %v7077_v28, %v2250_v29 }
 0x697   : > { %v7344_v51 = vpop.eup %4806  ;;  %4820 = vpow2.f32 %v2708_v56  ;;  %v2702_v56 = vmul.f32 1.442695, %v2680_v0 }
 0x698   : > { %8443 = vst [vmem:[#allocation30_spill] sm:$0xff] %v7344_v51  ;;  %v2297_v1 = vmul.f32 1.442695, %v2273_v58  ;;  %2337 = vadd.xlane.f32.xlu1 %v7344_v51  ;;  %2748 = vadd.xlane.f32.xlu0 %v7341_v12  ;;  %v7349_v40 = vpop.eup %4808 }
 0x699   : > { %v2248_v48 = vpop.xlane.xlu1 %2247  ;;  %8445 = vst [vmem:[#allocation27_spill] sm:$0xff] %v7349_v40 }
 0x69a   : > { %4822 = vpow2.f32 %v2297_v1  ;;  %v2272_v30 = vsub.f32 %v7088_v52, %v2248_v48  ;;  %v2651_v52 = vpop.xlane.xlu0 %2650 }
 0x69b   : > { %v7352_v49 = vpop.eup %4810  ;;  %4824 = vpow2.f32 %v2706_v18  ;;  %v2700_v18 = vmul.f32 1.442695, %v2679_v62  ;;  %v2678_v24 = vsub.f32 %v8453_v41, %v2651_v52 }
 0x69c   : > { %8446 = vst [vmem:[#allocation21_spill] sm:$0xff] %v7352_v49  ;;  %v2295_v28 = vmul.f32 1.442695, %v2272_v30  ;;  %2335 = vadd.xlane.f32.xlu1 %v7352_v49  ;;  %2746 = vadd.xlane.f32.xlu0 %v7349_v40  ;;  %v7357_v63 = vpop.eup %4812  ;;  %v8470_v49 = vld [vmem:[#allocation4_spill] sm:$0xff] }
 0x69d   : > { %v2246_v39 = vpop.xlane.xlu1 %2245  ;;  %8448 = vst [vmem:[#allocation23_spill] sm:$0xff] %v7357_v63  ;;  %v2698_v42 = vmul.f32 1.442695, %v2678_v24 }
 0x69e   : > { %4826 = vpow2.f32 %v2295_v28  ;;  %v2271_v27 = vsub.f32 %v7102_v21, %v2246_v39  ;;  %v7373_v48 = vpop.xlane.xlu0 %2648 }
 0x69f   : > { %v7360_v11 = vpop.eup %4814  ;;  %4828 = vpow2.f32 %v2704_v25 }
 0x6a0   : > { %8449 = vst [vmem:[#allocation28_spill] sm:$0xff] %v7360_v11  ;;  %v2293_v33 = vmul.f32 1.442695, %v2271_v27  ;;  %2333 = vadd.xlane.f32.xlu1 %v7360_v11  ;;  %2744 = vadd.xlane.f32.xlu0 %v7357_v63  ;;  %v7365_v14 = vpop.eup %4816 }
 0x6a1   : > { %v2244_v29 = vpop.xlane.xlu1 %2243  ;;  %8451 = vst [vmem:[#allocation25_spill] sm:$0xff] %v7365_v14 }
 0x6a2   : > { %4830 = vpow2.f32 %v2293_v33  ;;  %v2270_v58 = vsub.f32 %v7115_v5, %v2244_v29  ;;  %v2647_v33 = vpop.xlane.xlu0 %2646 }
 0x6a3   : > { %v7368_v1 = vpop.eup %4818  ;;  %4832 = vpow2.f32 %v2702_v56  ;;  %v2676_v63 = vsub.f32 %v8470_v49, %v2647_v33 }
 0x6a4   : > { %8452 = vst [vmem:[#allocation5_spill] sm:$0xff] %v7368_v1  ;;  %v2291_v21 = vmul.f32 1.442695, %v2270_v58  ;;  %2331 = vadd.xlane.f32.xlu1 %v7368_v1  ;;  %2742 = vadd.xlane.f32.xlu0 %v7365_v14  ;;  %v7375_v30 = vpop.eup %4820 }
 0x6a5   : > { %v2242_v3 = vpop.xlane.xlu1 %2241  ;;  %8454 = vst [vmem:[#allocation6_spill] sm:$0xff] %v7375_v30  ;;  %v2694_v32 = vmul.f32 1.442695, %v2676_v63 }
 0x6a6   : > { %4834 = vpow2.f32 %v2291_v21  ;;  %v2269_v28 = vsub.f32 %v7124_v19, %v2242_v3 }
 0x6a7   : > { %v7378_v5 = vpop.eup %4822  ;;  %4836 = vpow2.f32 %v2700_v18 }
 0x6a8   : > { %8455 = vst [vmem:[#allocation8_spill] sm:$0xff] %v7378_v5  ;;  %v2289_v25 = vmul.f32 1.442695, %v2269_v28  ;;  %2329 = vadd.xlane.f32.xlu1 %v7378_v5  ;;  %2740 = vadd.xlane.f32.xlu0 %v7375_v30  ;;  %v7382_v39 = vpop.eup %4824  ;;  %v8467_v5 = vmov 5   ;;  %v8469_v30 = vld [vmem:[#allocation12_spill] sm:$0xff] }
 0x6a9   : > { %v2240_v0 = vpop.xlane.xlu1 %2239  ;;  %8456 = vst [vmem:[#allocation7_spill] sm:$0xff] %v7382_v39  ;;  %v2677_v57 = vsub.f32 %v8469_v30, %v7373_v48  ;;  %v8472_v30 = vld [vmem:[#allocation13_spill] sm:$0xff] }
 0x6aa   : > { %4838 = vpow2.f32 %v2289_v25  ;;  %v2268_v27 = vsub.f32 %v7136_v60, %v2240_v0  ;;  %v2645_v60 = vpop.xlane.xlu0 %2644 }
 0x6ab   : > { %v7385_v52 = vpop.eup %4826  ;;  %4840 = vpow2.f32 %v2698_v42  ;;  %v2696_v51 = vmul.f32 1.442695, %v2677_v57 }
 0x6ac   : > { %8457 = vst [vmem:[#allocation36_spill] sm:$0xff] %v7385_v52  ;;  %v2287_v56 = vmul.f32 1.442695, %v2268_v27  ;;  %2327 = vadd.xlane.f32.xlu1 %v7385_v52  ;;  %2738 = vadd.xlane.f32.xlu0 %v7382_v39  ;;  %v7389_v61 = vpop.eup %4828  ;;  %v8468_v39 = vmov 4  }
 0x6ad   : > { %v2238_v19 = vpop.xlane.xlu1 %2237  ;;  %8458 = vst [vmem:[#allocation24_spill] sm:$0xff] %v7389_v61 }
 0x6ae   : > { %4842 = vpow2.f32 %v2287_v56  ;;  %v2643_v3 = vpop.xlane.xlu0 %2642  ;;  %v2267_v40 = vsub.f32 %v7151_v44, %v2238_v19 }
 0x6af   : > { %v7391_v62 = vpop.eup %4830  ;;  %4844 = vpow2.f32 %v2696_v51  ;;  %v2674_v22 = vsub.f32 %v8472_v30, %v2643_v3  ;;  %v8473_v51 = vld [vmem:[#allocation26_spill] sm:$0xff] }
 0x6b0   : > { %8459 = vst [vmem:[#allocation22_spill] sm:$0xff] %v7391_v62  ;;  %2325 = vadd.xlane.f32.xlu1 %v7391_v62  ;;  %2736 = vadd.xlane.f32.xlu0 %v7389_v61  ;;  %v7395_v58 = vpop.eup %4832  ;;  %4846 = vpow2.f32 %v2694_v32 }
 0x6b1   : > { %v2236_v29 = vpop.xlane.xlu1 %2235  ;;  %8460 = vst [vmem:[#allocation3_spill] sm:$0xff] %v7395_v58  ;;  %v2690_v63 = vmul.f32 1.442695, %v2674_v22 }
 0x6b2   : > { %v3491_v0 = vpop.xlane.xlu0 %3490  ;;  %v2266_v20 = vsub.f32 %v7162_v36, %v2236_v29 }
 0x6b3   : > { %v7397_v21 = vpop.eup %4834 }
 0x6b4   : > { %8461 = vst [vmem:[#allocation9_spill] sm:$0xff] %v7397_v21  ;;  %2323 = vadd.xlane.f32.xlu1 %v7397_v21  ;;  %2734 = vadd.xlane.f32.xlu0 %v7395_v58  ;;  %v7401_v41 = vpop.eup %4836  ;;  %v7422_v58 = vld [vmem:[%s5350_s25 + $0x78] sm:$0xff]  ;;  %v2283_v49 = vmul.f32 1.442695, %v2266_v20 }
 0x6b5   : > { %v2234_v18 = vpop.xlane.xlu1 %2233  ;;  %8462 = vst [vmem:[#allocation10_spill] sm:$0xff] %v7401_v41  ;;  %8466 = vst [vmem:[#allocation39_spill] sm:$0xff] %v7422_v58 }
 0x6b6   : > { %v3489_v21 = vpop.xlane.xlu0 %3488  ;;  %v2265_v44 = vsub.f32 %v7174_v4, %v2234_v18 }
 0x6b7   : > { %v7403_v24 = vpop.eup %4838 }
 0x6b8   : > { %8463 = vst [vmem:[#allocation11_spill] sm:$0xff] %v7403_v24  ;;  %2321 = vadd.xlane.f32.xlu1 %v7403_v24  ;;  %2732 = vadd.xlane.f32.xlu0 %v7401_v41  ;;  %v7407_v25 = vpop.eup %4840  ;;  %v2281_v36 = vmul.f32 1.442695, %v2265_v44 }
 0x6b9   : > { %v3082_v28 = vpop.xlane.xlu1 %3081  ;;  %8464 = vst [vmem:[#allocation37_spill] sm:$0xff] %v7407_v25 }
 0x6ba   : > { %v7417_v24 = vpop.xlane.xlu0 %3486  ;;  %v3098_v19 = vsub.f32 %v7187_v37, %v3082_v28 }
 0x6bb   : > { %v7409_v42 = vpop.eup %4842  ;;  %v3505_v37 = vsub.f32 %v7108_v55, %v7417_v24  ;;  %v8475_v55 = vld [vmem:[#allocation20_spill] sm:$0xff] }
 0x6bc   : > { %8465 = vst [vmem:[#allocation38_spill] sm:$0xff] %v7409_v42  ;;  %2319 = vadd.xlane.f32.xlu1 %v7409_v42  ;;  %2730 = vadd.xlane.f32.xlu0 %v7407_v25  ;;  %v7430_v25 = vld [vmem:[%s5350_s25 + $0x70] sm:$0xff]  ;;  %v3129_v29 = vmul.f32 1.442695, %v3098_v19  ;;  %v7468_v3 = vpop.eup %4844 }
 0x6bd   : > { %v3080_v27 = vpop.xlane.xlu1 %3079  ;;  %v7473_v28 = vpop.eup %4846 }
 0x6be   : > { %v7425_v52 = vpop.xlane.xlu0 %3484  ;;  %v3097_v4 = vsub.f32 %v7196_v10, %v3080_v27 }
 0x6bf   : > { %v3504_v24 = vsub.f32 %v8475_v55, %v7425_v52 }
 0x6c1   : > { %v7413_v56 = vpop.xlane.xlu1 %3077  ;;  %v3532_v44 = vmul.f32 1.442695, %v3504_v24  ;;  %v8483_v24 = vld [vmem:[#allocation31_spill] sm:$0xff] }
 0x6c2   : > { %v7434_v61 = vpop.xlane.xlu0 %3482  ;;  %v3096_v10 = vsub.f32 %v7208_v35, %v7413_v56 }
 0x6c4   : > { %v3125_v30 = vmul.f32 1.442695, %v3096_v10 }
 0x6c5   : > { %v7415_v62 = vpop.xlane.xlu1 %3075 }
 0x6c6   : > { %v7442_v11 = vpop.xlane.xlu0 %3480  ;;  %v3095_v35 = vsub.f32 %v7220_v13, %v7415_v62 }
 0x6c9   : > { %v7419_v41 = vpop.xlane.xlu1 %3073 }
 0x6ca   : > { %v7448_v17 = vpop.xlane.xlu0 %3478  ;;  %v3094_v13 = vsub.f32 %v7229_v23, %v7419_v41 }
 0x6cd   : > { %2438 = vperm.xlu1 %4523, %v7422_v58   ;;  %v7427_v42 = vpop.xlane.xlu1 %3071 }
 0x6ce   : > { %v7455_v57 = vpop.xlane.xlu0 %3476  ;;  %v3093_v23 = vsub.f32 %v7242_v8, %v7427_v42 }
 0x6d0   : > { %v3119_v10 = vmul.f32 1.442695, %v3093_v23 }
 0x6d1   : > { %2434 = vperm.xlu1 %4523, %v7430_v25   ;;  %v7438_v1 = vpop.xlane.xlu1 %3069 }
 0x6d2   : > { %2847 = vperm.xlu0 %4521, %v7422_v58   ;;  %v7462_v32 = vpop.xlane.xlu0 %3474  ;;  %v3092_v8 = vsub.f32 %v7254_v50, %v7438_v1 }
 0x6d5   : > { %4525 = vset.pattern.permute.xlu1 %v8467_v5  ;;  %v7444_v14 = vpop.xlane.xlu1 %3067  ;;  %v8471_v5 = vld [vmem:[#allocation35_spill] sm:$0xff] }
 0x6d6   : > { %4524 = vset.pattern.permute.xlu0 %v8468_v39  ;;  %v2675_v12 = vsub.f32 %v8471_v5, %v2645_v60  ;;  %v2285_v39 = vmul.f32 1.442695, %v2267_v40  ;;  %v3507_v40 = vsub.f32 %v8473_v51, %v3491_v0  ;;  %v8474_v60 = vld [vmem:[#allocation14_spill] sm:$0xff]  ;;  %v7475_v0 = vpop.xlane.xlu0 %3472  ;;  %v3091_v50 = vsub.f32 %v7259_v45, %v7444_v14 }
 0x6d7   : > { %v3506_v20 = vsub.f32 %v8474_v60, %v3489_v21  ;;  %v3127_v21 = vmul.f32 1.442695, %v3097_v4 }
 0x6d8   : > { %v2692_v48 = vmul.f32 1.442695, %v2675_v12  ;;  %4848 = vpow2.f32 %v2285_v39  ;;  %v3538_v12 = vmul.f32 1.442695, %v3507_v40  ;;  %v3534_v39 = vmul.f32 1.442695, %v3505_v37 }
 0x6d9   : > { %v7452_v58 = vpop.xlane.xlu1 %3065  ;;  %v3536_v22 = vmul.f32 1.442695, %v3506_v20  ;;  %v3123_v40 = vmul.f32 1.442695, %v3095_v35  ;;  %v3117_v35 = vmul.f32 1.442695, %v3092_v8 }
 0x6da   : > { %4850 = vpow2.f32 %v2692_v48  ;;  %v3090_v45 = vsub.f32 %v7266_v26, %v7452_v58 }
 0x6db   : > { %4852 = vpow2.f32 %v2283_v49  ;;  %v7493_v49 = vpop.xlane.xlu0 %3470 }
 0x6dc   : > { %4854 = vpow2.f32 %v2690_v63  ;;  %v8476_v63 = vld [vmem:[#allocation16_spill] sm:$0xff] }
 0x6dd   : > { %v7458_v33 = vpop.xlane.xlu1 %3063  ;;  %4856 = vpow2.f32 %v2281_v36  ;;  %v3503_v52 = vsub.f32 %v8476_v63, %v7434_v61 }
 0x6de   : > { %4858 = vpow2.f32 %v3538_v12  ;;  %v8477_v12 = vld [vmem:[#allocation33_spill] sm:$0xff]  ;;  %v3089_v26 = vsub.f32 %v7278_v7, %v7458_v33 }
 0x6df   : > { %4860 = vpow2.f32 %v3129_v29  ;;  %v3530_v19 = vmul.f32 1.442695, %v3503_v52  ;;  %v3502_v61 = vsub.f32 %v8477_v12, %v7442_v11  ;;  %v7513_v20 = vpop.xlane.xlu0 %3468  ;;  %v3121_v29 = vmul.f32 1.442695, %v3094_v13  ;;  %v8480_v11 = vld [vmem:[#allocation34_spill] sm:$0xff] }
 0x6e0   : > { %4862 = vpow2.f32 %v3536_v22  ;;  %v3501_v37 = vsub.f32 %v8480_v11, %v7448_v17  ;;  %v3500_v17 = vsub.f32 %v8483_v24, %v7455_v57  ;;  %v3499_v57 = vsub.f32 %v7180_v47, %v7462_v32 }
 0x6e1   : > { %v7466_v18 = vpop.xlane.xlu1 %3061  ;;  %4864 = vpow2.f32 %v3127_v21  ;;  %v3528_v22 = vmul.f32 1.442695, %v3502_v61  ;;  %v3115_v13 = vmul.f32 1.442695, %v3091_v50  ;;  %v3498_v47 = vsub.f32 %v7191_v53, %v7475_v0 }
 0x6e2   : > { %4866 = vpow2.f32 %v3534_v39  ;;  %v3526_v55 = vmul.f32 1.442695, %v3501_v37  ;;  %v3524_v63 = vmul.f32 1.442695, %v3500_v17  ;;  %v3522_v12 = vmul.f32 1.442695, %v3499_v57 }
 0x6e3   : > { %4868 = vpow2.f32 %v3125_v30  ;;  %v7531_v39 = vpop.xlane.xlu0 %3466  ;;  %v3113_v61 = vmul.f32 1.442695, %v3090_v45  ;;  %v3520_v23 = vmul.f32 1.442695, %v3498_v47  ;;  %v3497_v53 = vsub.f32 %v7204_v15, %v7493_v49 }
 0x6e4   : > { %4870 = vpow2.f32 %v3532_v44  ;;  %v3088_v7 = vsub.f32 %v7282_v43, %v7466_v18 }
 0x6e5   : > { %v7479_v27 = vpop.eup %4848  ;;  %v7481_v5 = vpop.xlane.xlu1 %3059  ;;  %4872 = vpow2.f32 %v3123_v40 }
 0x6e6   : > { %4874 = vpow2.f32 %v3530_v19  ;;  %v3109_v15 = vmul.f32 1.442695, %v3088_v7 }
 0x6e7   : > { %v7487_v48 = vpop.eup %4850  ;;  %4876 = vpow2.f32 %v3121_v29  ;;  %v7551_v40 = vpop.xlane.xlu0 %3464 }
 0x6e8   : > { %v7491_v56 = vpop.eup %4852  ;;  %4878 = vpow2.f32 %v3528_v22  ;;  %v3111_v22 = vmul.f32 1.442695, %v3089_v26 }
 0x6e9   : > { %v7499_v51 = vpop.eup %4854  ;;  %v7503_v62 = vpop.xlane.xlu1 %3057  ;;  %4880 = vpow2.f32 %v3119_v10  ;;  %v3518_v10 = vmul.f32 1.442695, %v3497_v53 }
 0x6ea   : > { %v7505_v36 = vpop.eup %4856  ;;  %4882 = vpow2.f32 %v3526_v55 }
 0x6eb   : > { %v7511_v60 = vpop.eup %4858  ;;  %4884 = vpow2.f32 %v3117_v35  ;;  %v7569_v29 = vpop.xlane.xlu0 %3462 }
 0x6ec   : > { %8478 = vst [vmem:[#allocation12_spill] sm:$0xff] %v7511_v60  ;;  %v7517_v41 = vpop.eup %4860  ;;  %4886 = vpow2.f32 %v3524_v63 }
 0x6ed   : > { %8479 = vst [vmem:[#allocation4_spill] sm:$0xff] %v7517_v41  ;;  %v7519_v4 = vpop.xlane.xlu1 %3055  ;;  %v7525_v21 = vpop.eup %4862  ;;  %4888 = vpow2.f32 %v3115_v13 }
 0x6ee   : > { %8481 = vst [vmem:[#allocation35_spill] sm:$0xff] %v7525_v21  ;;  %v7529_v42 = vpop.eup %4864  ;;  %4890 = vpow2.f32 %v3522_v12 }
 0x6ef   : > { %8482 = vst [vmem:[#allocation13_spill] sm:$0xff] %v7529_v42  ;;  %v7537_v30 = vpop.eup %4866  ;;  %4892 = vpow2.f32 %v3113_v61  ;;  %v7581_v37 = vpop.xlane.xlu0 %3460 }
 0x6f0   : > { %8484 = vst [vmem:[#allocation26_spill] sm:$0xff] %v7537_v30  ;;  %v7543_v44 = vpop.eup %4868  ;;  %4894 = vpow2.f32 %v3520_v23 }
 0x6f1   : > { %2728 = vadd.xlane.f32.xlu0 %v7468_v3  ;;  %v7541_v1 = vpop.xlane.xlu1 %3053  ;;  %8485 = vst [vmem:[#allocation14_spill] sm:$0xff] %v7543_v44  ;;  %v7549_v52 = vpop.eup %4870  ;;  %4896 = vpow2.f32 %v3111_v22 }
 0x6f2   : > { %8486 = vst [vmem:[#allocation20_spill] sm:$0xff] %v7549_v52  ;;  %v7555_v14 = vpop.eup %4872  ;;  %4898 = vpow2.f32 %v3518_v10 }
 0x6f3   : > { %8487 = vst [vmem:[#allocation16_spill] sm:$0xff] %v7555_v14  ;;  %v7563_v32 = vpop.eup %4874  ;;  %4900 = vpow2.f32 %v3109_v15 }
 0x6f4   : > { %8488 = vst [vmem:[#allocation33_spill] sm:$0xff] %v7563_v32  ;;  %v7567_v58 = vpop.eup %4876 }
 0x6f5   : > { %2317 = vadd.xlane.f32.xlu1 %v7479_v27  ;;  %2726 = vadd.xlane.f32.xlu0 %v7473_v28  ;;  %v7557_v19 = vpop.xlane.xlu1 %3051  ;;  %8489 = vst [vmem:[#allocation34_spill] sm:$0xff] %v7567_v58  ;;  %v7575_v0 = vpop.eup %4878 }
 0x6f6   : > { %8490 = vst [vmem:[#allocation31_spill] sm:$0xff] %v7575_v0  ;;  %v7579_v11 = vpop.eup %4880 }
 0x6f7   : > { %8491 = vst [vmem:[#allocation40_spill] sm:$0xff] %v7579_v11  ;;  %v7585_v8 = vpop.eup %4882 }
 0x6f8   : > { %8492 = vst [vmem:[#allocation41_spill] sm:$0xff] %v7585_v8  ;;  %v7587_v49 = vpop.eup %4884 }
 0x6f9   : > { %2315 = vadd.xlane.f32.xlu0 %v7491_v56  ;;  %2724 = vadd.xlane.f32.xlu1 %v7487_v48  ;;  %v2344_v33 = vpop.xlane.xlu1 %2343  ;;  %8493 = vst [vmem:[#allocation42_spill] sm:$0xff] %v7587_v49  ;;  %v7591_v18 = vpop.eup %4886 }
 0x6fa   : > { %8494 = vst [vmem:[#allocation43_spill] sm:$0xff] %v7591_v18  ;;  %v7593_v24 = vpop.eup %4888  ;;  %4902 = vrcp.f32 %v2344_v33 }
 0x6fb   : > { %8495 = vst [vmem:[#allocation44_spill] sm:$0xff] %v7593_v24  ;;  %v7601_v50 = vpop.eup %4890 }
 0x6fc   : > { %8496 = vst [vmem:[#allocation45_spill] sm:$0xff] %v7601_v50  ;;  %v7603_v63 = vpop.eup %4892 }
 0x6fd   : > { %2313 = vadd.xlane.f32.xlu0 %v7505_v36  ;;  %2722 = vadd.xlane.f32.xlu1 %v7499_v51  ;;  %v2342_v55 = vpop.xlane.xlu1 %2341  ;;  %8497 = vst [vmem:[#allocation46_spill] sm:$0xff] %v7603_v63  ;;  %v7611_v45 = vpop.eup %4894 }
 0x6fe   : > { %8498 = vst [vmem:[#allocation47_spill] sm:$0xff] %v7611_v45  ;;  %v7613_v12 = vpop.eup %4896  ;;  %4904 = vrcp.f32 %v2342_v55 }
 0x6ff   : > { %8499 = vst [vmem:[#allocation48_spill] sm:$0xff] %v7613_v12  ;;  %v7621_v26 = vpop.eup %4898 }
 0x700   : > { %8500 = vst [vmem:[#allocation49_spill] sm:$0xff] %v7621_v26  ;;  %v7623_v23 = vpop.eup %4900 }
 0x701   : > { %3161 = vadd.xlane.f32.xlu0 %v7517_v41  ;;  %3570 = vadd.xlane.f32.xlu1 %v7511_v60  ;;  %8501 = vst [vmem:[#allocation50_spill] sm:$0xff] %v7623_v23 }
 0x705   : > { %3159 = vadd.xlane.f32.xlu0 %v7529_v42  ;;  %3568 = vadd.xlane.f32.xlu1 %v7525_v21 }
 0x707   : > { %v4903_v55 = vpop.eup %4902 }
 0x709   : > { %3157 = vadd.xlane.f32.xlu0 %v7543_v44  ;;  %3566 = vadd.xlane.f32.xlu1 %v7537_v30 }
 0x70d   : > { %3155 = vadd.xlane.f32.xlu0 %v7555_v14  ;;  %3564 = vadd.xlane.f32.xlu1 %v7549_v52  ;;  %v7677_v52 = vld [vmem:[%s5350_s25 + $0x50] sm:$0xff] }
 0x70e   : > { %8502 = vst [vmem:[#allocation51_spill] sm:$0xff] %v7677_v52 }
 0x711   : > { %3153 = vadd.xlane.f32.xlu0 %v7567_v58  ;;  %3562 = vadd.xlane.f32.xlu1 %v7563_v32  ;;  %v2376_v58 = vmul.f32 %v4903_v55, %v7313_v9 }
 0x715   : > { %3151 = vadd.xlane.f32.xlu0 %v7579_v11  ;;  %3560 = vadd.xlane.f32.xlu1 %v7575_v0  ;;  %v7669_v0 = vld [vmem:[%s5350_s25 + $0x58] sm:$0xff]  ;;  %v4905_v11 = vpop.eup %4904 }
 0x716   : > { %v2374_v30 = vmul.f32 %v4905_v11, %v7316_v54  ;;  %v7689_v54 = vld [vmem:[%s5350_s25 + $0x40] sm:$0xff]  ;;  %v8513_v11 = vmov 7  }
 0x717   : > { %8504 = vst [vmem:[#allocation53_spill] sm:$0xff] %v7689_v54 }
 0x719   : > { %3149 = vadd.xlane.f32.xlu0 %v7587_v49  ;;  %3558 = vadd.xlane.f32.xlu1 %v7585_v8  ;;  %v2753_v43 = vpop.xlane.xlu0 %2752  ;;  %v7660_v8 = vld [vmem:[%s5350_s25 + $0x60] sm:$0xff] }
 0x71a   : > { %4906 = vrcp.f32 %v2753_v43 }
 0x71d   : > { %v7595_v17 = vpop.xlane.xlu1 %2339  ;;  %3147 = vadd.xlane.f32.xlu0 %v7593_v24  ;;  %3556 = vadd.xlane.f32.xlu1 %v7591_v18  ;;  %v7599_v35 = vpop.xlane.xlu0 %2750  ;;  %v7653_v24 = vld [vmem:[%s5350_s25 + $0x68] sm:$0xff] }
 0x721   : > { %v7605_v57 = vpop.xlane.xlu1 %2337  ;;  %3145 = vadd.xlane.f32.xlu0 %v7603_v63  ;;  %3554 = vadd.xlane.f32.xlu1 %v7601_v50  ;;  %v7609_v13 = vpop.xlane.xlu0 %2748 }
 0x725   : > { %v7615_v47 = vpop.xlane.xlu1 %2335  ;;  %3143 = vadd.xlane.f32.xlu0 %v7613_v12  ;;  %3552 = vadd.xlane.f32.xlu1 %v7611_v45  ;;  %v7619_v61 = vpop.xlane.xlu0 %2746 }
 0x727   : > { %v4907_v14 = vpop.eup %4906 }
 0x728   : > { %v2785_v21 = vmul.f32 %v4907_v14, %v7329_v2  ;;  %v7694_v2 = vld [vmem:[%s5350_s25 + $0x38] sm:$0xff]  ;;  %v7724_v14 = vld [vmem:[%s5350_s25 + $0x8] sm:$0xff] }
 0x729   : > { %v7625_v53 = vpop.xlane.xlu1 %2333  ;;  %3141 = vadd.xlane.f32.xlu0 %v7623_v23  ;;  %3550 = vadd.xlane.f32.xlu1 %v7621_v26  ;;  %v7629_v22 = vpop.xlane.xlu0 %2744  ;;  %8505 = vst [vmem:[#allocation54_spill] sm:$0xff] %v7694_v2  ;;  %8511 = vst [vmem:[#allocation60_spill] sm:$0xff] %v7724_v14 }
 0x72d   : > { %v7631_v7 = vpop.xlane.xlu1 %2331  ;;  %v7633_v10 = vpop.xlane.xlu0 %2742 }
 0x731   : > { %v7635_v15 = vpop.xlane.xlu1 %2329  ;;  %v7637_v12 = vpop.xlane.xlu0 %2740 }
 0x735   : > { %v7639_v45 = vpop.xlane.xlu1 %2327  ;;  %v7641_v50 = vpop.xlane.xlu0 %2738 }
 0x739   : > { %v7643_v23 = vpop.xlane.xlu1 %2325  ;;  %v7645_v26 = vpop.xlane.xlu0 %2736 }
 0x73a   : > { %2843 = vperm.xlu1 %4525, %v7430_v25  }
 0x73d   : > { %v7648_v63 = vpop.xlane.xlu1 %2323  ;;  %v7650_v18 = vpop.xlane.xlu0 %2734 }
 0x73e   : > { %2839 = vperm.xlu1 %4525, %v7653_v24  }
 0x73f   : > { %2430 = vperm.xlu0 %4524, %v7653_v24  }
 0x741   : > { %v7657_v33 = vpop.xlane.xlu1 %2321  ;;  %v7663_v49 = vpop.xlane.xlu0 %2732 }
 0x742   : > { %2835 = vperm.xlu1 %4525, %v7660_v8  }
 0x743   : > { %2426 = vperm.xlu0 %4524, %v7660_v8  }
 0x745   : > { %v7666_v43 = vpop.xlane.xlu1 %2319  ;;  %v7674_v44 = vpop.xlane.xlu0 %2730 }
 0x746   : > { %2831 = vperm.xlu1 %4525, %v7669_v0  }
 0x747   : > { %2422 = vperm.xlu0 %4524, %v7669_v0  }
 0x749   : > { %v2439_v32 = vpop.permute.xlu1 %2438 }
 0x74a   : > { %v2456_v42 = vmul.f32 %v2439_v32, %v2376_v58  ;;  %2827 = vperm.xlu1 %4525, %v7677_v52   ;;  %v7684_v32 = vld [vmem:[%s5350_s25 + $0x48] sm:$0xff]  ;;  %v7729_v58 = vld [vmem:[%s5350_s25] sm:$0xff] }
 0x74b   : > { %2418 = vperm.xlu0 %4524, %v7677_v52   ;;  %8503 = vst [vmem:[#allocation52_spill] sm:$0xff] %v7684_v32  ;;  %8512 = vst [vmem:[#allocation61_spill] sm:$0xff] %v7729_v58 }
 0x74c   : > { %4295 = vmatprep.subr.mxu0 %v2456_v42 }
 0x74d   : > { %4296 = vmatpush3.msra.mxu0 %v2456_v42  ;;  %v2435_v9 = vpop.permute.xlu1 %2434  ;;  %v2848_v55 = vpop.permute.xlu0 %2847  ;;  %v7714_v42 = vld [vmem:[%s5350_s25 + $0x18] sm:$0xff] }
 0x74e   : > { %v2455_v60 = vmul.f32 %v2435_v9, %v2374_v30  ;;  %v2865_v41 = vmul.f32 %v2848_v55, %v2785_v21  ;;  %2823 = vperm.xlu1 %4525, %v7684_v32   ;;  %v7699_v21 = vld [vmem:[%s5350_s25 + $0x30] sm:$0xff]  ;;  %8509 = vst [vmem:[#allocation58_spill] sm:$0xff] %v7714_v42  ;;  %v8514_v9 = vmov 6  }
 0x74f   : > { %2414 = vperm.xlu0 %4524, %v7684_v32   ;;  %8506 = vst [vmem:[#allocation55_spill] sm:$0xff] %v7699_v21  ;;  %v7719_v30 = vld [vmem:[%s5350_s25 + $0x10] sm:$0xff] }
 0x750   : > { %4297 = vmatprep.subr.mxu0 %v2455_v60  ;;  %4330 = vmatprep.subr.mxu1 %v2865_v41  ;;  %8510 = vst [vmem:[#allocation59_spill] sm:$0xff] %v7719_v30 }
 0x751   : > { %4298 = vmatpush3.msra.mxu0 %v2455_v60  ;;  %4331 = vmatpush3.msra.mxu1 %v2865_v41  ;;  %v7704_v60 = vld [vmem:[%s5350_s25 + $0x28] sm:$0xff]  ;;  %v7709_v41 = vld [vmem:[%s5350_s25 + $0x20] sm:$0xff] }
 0x752   : > { %2819 = vperm.xlu1 %4525, %v7689_v54   ;;  %8507 = vst [vmem:[#allocation56_spill] sm:$0xff] %v7704_v60  ;;  %8508 = vst [vmem:[#allocation57_spill] sm:$0xff] %v7709_v41 }
 0x753   : > { %2410 = vperm.xlu0 %4524, %v7689_v54  }
 0x756   : > { %2815 = vperm.xlu1 %4525, %v7694_v2  }
 0x757   : > { %2406 = vperm.xlu0 %4524, %v7694_v2   ;;  %v3087_v2 = vsub.f32 %v7288_v34, %v7481_v5  ;;  %v3084_v5 = vsub.f32 %v7305_v59, %v7541_v1 }
 0x75a   : > { %2811 = vperm.xlu1 %4525, %v7699_v21  }
 0x75b   : > { %2402 = vperm.xlu0 %4524, %v7699_v21  }
 0x75e   : > { %2807 = vperm.xlu1 %4525, %v7704_v60  }
 0x75f   : > { %2398 = vperm.xlu0 %4524, %v7704_v60   ;;  %v3086_v60 = vsub.f32 %v7296_v16, %v7503_v62  ;;  %v3494_v16 = vsub.f32 %v7238_v46, %v7551_v40 }
 0x762   : > { %2803 = vperm.xlu1 %4525, %v7709_v41  }
 0x763   : > { %2394 = vperm.xlu0 %4524, %v7709_v41  }
 0x766   : > { %2799 = vperm.xlu1 %4525, %v7714_v42  }
 0x767   : > { %2390 = vperm.xlu0 %4524, %v7714_v42  }
 0x76a   : > { %2795 = vperm.xlu1 %4525, %v7719_v30  }
 0x76b   : > { %2386 = vperm.xlu0 %4524, %v7719_v30   ;;  %v3495_v30 = vsub.f32 %v7225_v38, %v7531_v39  ;;  %v3105_v38 = vmul.f32 1.442695, %v3086_v60  ;;  %v3101_v39 = vmul.f32 1.442695, %v3084_v5  ;;  %v8515_v60 = vld [vmem:[#allocation15_spill] sm:$0xff] }
 0x76d   : > { %v3514_v34 = vmul.f32 1.442695, %v3495_v30  ;;  %v3493_v30 = vsub.f32 %v8515_v60, %v7569_v29 }
 0x76e   : > { %2791 = vperm.xlu1 %4525, %v7724_v14  }
 0x76f   : > { %2382 = vperm.xlu0 %4524, %v7724_v14   ;;  %v3496_v14 = vsub.f32 %v7214_v6, %v7513_v20  ;;  %v3085_v20 = vsub.f32 %v7300_v31, %v7519_v4  ;;  %v3510_v40 = vmul.f32 1.442695, %v3493_v30 }
 0x771   : > { %v3516_v52 = vmul.f32 1.442695, %v3496_v14  ;;  %v3103_v59 = vmul.f32 1.442695, %v3085_v20 }
 0x772   : > { %2787 = vperm.xlu1 %4525, %v7729_v58  }
 0x773   : > { %2378 = vperm.xlu0 %4524, %v7729_v58   ;;  %v3107_v58 = vmul.f32 1.442695, %v3087_v2 }
 0x775   : > { %4908 = vpow2.f32 %v3107_v58 }
 0x776   : > { %4527 = vset.pattern.permute.xlu1 %v8513_v11  ;;  %4910 = vpow2.f32 %v3516_v52  ;;  %v3512_v52 = vmul.f32 1.442695, %v3494_v16 }
 0x777   : > { %4526 = vset.pattern.permute.xlu0 %v8514_v9  ;;  %4912 = vpow2.f32 %v3514_v34 }
 0x778   : > { %4914 = vpow2.f32 %v3105_v38 }
 0x779   : > { %4916 = vpow2.f32 %v3101_v39 }
 0x77a   : > { %v7735_v55 = vpop.xlane.xlu0 %2728  ;;  %4918 = vpow2.f32 %v3103_v59 }
 0x77b   : > { %4920 = vpow2.f32 %v3512_v52 }
 0x77c   : > { %4922 = vpow2.f32 %v3510_v40 }
 0x77d   : > { %4924 = vrcp.f32 %v7599_v35 }
 0x77e   : > { %v7739_v54 = vpop.xlane.xlu1 %2317  ;;  %v7741_v32 = vpop.xlane.xlu0 %2726  ;;  %4926 = vrcp.f32 %v7595_v17 }
 0x77f   : > { %4928 = vrcp.f32 %v7609_v13 }
 0x780   : > { %4930 = vrcp.f32 %v7605_v57 }
 0x781   : > { %4932 = vrcp.f32 %v7619_v61  ;;  %v8532_v61 = vld [vmem:[#allocation29_spill] sm:$0xff] }
 0x782   : > { %v7747_v42 = vpop.xlane.xlu1 %2724  ;;  %v7749_v41 = vpop.xlane.xlu0 %2315  ;;  %4934 = vrcp.f32 %v7615_v47 }
 0x783   : > { %v7773_v31 = vpop.eup %4908  ;;  %4936 = vrcp.f32 %v7629_v22 }
 0x784   : > { %8516 = vst [vmem:[#allocation15_spill] sm:$0xff] %v7773_v31  ;;  %v7780_v46 = vpop.eup %4910  ;;  %4938 = vrcp.f32 %v7625_v53  ;;  %v8534_v53 = vld [vmem:[#allocation19_spill] sm:$0xff] }
 0x785   : > { %8517 = vst [vmem:[#allocation62_spill] sm:$0xff] %v7780_v46  ;;  %v7782_v34 = vpop.eup %4912  ;;  %4940 = vrcp.f32 %v7633_v10  ;;  %v8535_v10 = vld [vmem:[#allocation17_spill] sm:$0xff] }
 0x786   : > { %v7755_v21 = vpop.xlane.xlu1 %2722  ;;  %v7757_v6 = vpop.xlane.xlu0 %2313  ;;  %8518 = vst [vmem:[#allocation63_spill] sm:$0xff] %v7782_v34  ;;  %4942 = vrcp.f32 %v7631_v7 }
 0x787   : > { %v7790_v38 = vpop.eup %4914  ;;  %4944 = vrcp.f32 %v7637_v12  ;;  %v8537_v12 = vld [vmem:[#allocation27_spill] sm:$0xff] }
 0x788   : > { %8519 = vst [vmem:[#allocation64_spill] sm:$0xff] %v7790_v38  ;;  %v7792_v20 = vpop.eup %4916  ;;  %4946 = vrcp.f32 %v7635_v15 }
 0x789   : > { %8520 = vst [vmem:[#allocation65_spill] sm:$0xff] %v7792_v20  ;;  %v7800_v59 = vpop.eup %4918  ;;  %4948 = vrcp.f32 %v7641_v50  ;;  %v8539_v50 = vld [vmem:[#allocation23_spill] sm:$0xff] }
 0x78a   : > { %v7761_v2 = vpop.xlane.xlu1 %3570  ;;  %v7763_v14 = vpop.xlane.xlu0 %3161  ;;  %8521 = vst [vmem:[#allocation66_spill] sm:$0xff] %v7800_v59  ;;  %4950 = vrcp.f32 %v7639_v45 }
 0x78b   : > { %v7807_v30 = vpop.eup %4920  ;;  %4952 = vrcp.f32 %v7645_v26  ;;  %v8541_v26 = vld [vmem:[#allocation25_spill] sm:$0xff] }
 0x78c   : > { %8522 = vst [vmem:[#allocation67_spill] sm:$0xff] %v7807_v30 }
 0x78e   : > { %v7767_v62 = vpop.xlane.xlu1 %3568  ;;  %v7769_v1 = vpop.xlane.xlu0 %3159 }
 0x792   : > { %v7775_v4 = vpop.xlane.xlu1 %3566  ;;  %3139 = vadd.xlane.f32.xlu0 %v7773_v31  ;;  %v7778_v58 = vpop.xlane.xlu0 %3157 }
 0x796   : > { %v7784_v5 = vpop.xlane.xlu1 %3564  ;;  %3548 = vadd.xlane.f32.xlu1 %v7780_v46  ;;  %3546 = vadd.xlane.f32.xlu0 %v7782_v34  ;;  %v7788_v29 = vpop.xlane.xlu0 %3155 }
 0x79a   : > { %v7794_v39 = vpop.xlane.xlu1 %3562  ;;  %3137 = vadd.xlane.f32.xlu1 %v7790_v38  ;;  %3133 = vadd.xlane.f32.xlu0 %v7792_v20  ;;  %v7798_v16 = vpop.xlane.xlu0 %3153 }
 0x79b   : > { %v7814_v38 = vpop.eup %4922 }
 0x79c   : > { %8523 = vst [vmem:[#allocation68_spill] sm:$0xff] %v7814_v38  ;;  %v4925_v17 = vpop.eup %4924 }
 0x79d   : > { %v4927_v57 = vpop.eup %4926 }
 0x79e   : > { %v7802_v52 = vpop.xlane.xlu1 %3560  ;;  %3135 = vadd.xlane.f32.xlu1 %v7800_v59  ;;  %v7805_v60 = vpop.xlane.xlu0 %3151 }
 0x7a2   : > { %v7809_v40 = vpop.xlane.xlu1 %3558  ;;  %3544 = vadd.xlane.f32.xlu1 %v7807_v30  ;;  %v7812_v31 = vpop.xlane.xlu0 %3149 }
 0x7a6   : > { %v7817_v20 = vpop.xlane.xlu1 %3556  ;;  %3542 = vadd.xlane.f32.xlu1 %v7814_v38  ;;  %v7820_v34 = vpop.xlane.xlu0 %3147  ;;  %v8530_v38 = vld [vmem:[#allocation39_spill] sm:$0xff] }
 0x7a7   : > { %8524 = vst [vmem:[#allocation69_spill] sm:$0xff] %v7817_v20  ;;  %8525 = vst [vmem:[#allocation70_spill] sm:$0xff] %v7820_v34  ;;  %v2372_v20 = vmul.f32 %v4927_v57, %v8535_v10  ;;  %v8538_v57 = vld [vmem:[#allocation30_spill] sm:$0xff] }
 0x7aa   : > { %v7824_v59 = vpop.xlane.xlu1 %3554  ;;  %v7826_v46 = vpop.xlane.xlu0 %3145 }
 0x7ab   : > { %8526 = vst [vmem:[#allocation71_spill] sm:$0xff] %v7824_v59  ;;  %8527 = vst [vmem:[#allocation72_spill] sm:$0xff] %v7826_v46  ;;  %v4929_v59 = vpop.eup %4928 }
 0x7ac   : > { %v4931_v22 = vpop.eup %4930 }
 0x7ae   : > { %v7830_v30 = vpop.xlane.xlu1 %3552  ;;  %v7833_v35 = vpop.xlane.xlu0 %3143 }
 0x7af   : > { %8528 = vst [vmem:[#allocation73_spill] sm:$0xff] %v7830_v30  ;;  %8529 = vst [vmem:[#allocation74_spill] sm:$0xff] %v7833_v35  ;;  %v2783_v30 = vmul.f32 %v4925_v17, %v8532_v61  ;;  %v4933_v17 = vpop.eup %4932 }
 0x7b0   : > { %3256 = vperm.xlu0 %4526, %v8530_v38   ;;  %v4935_v7 = vpop.eup %4934 }
 0x7b2   : > { %v7837_v13 = vpop.xlane.xlu1 %3550  ;;  %v7843_v47 = vpop.xlane.xlu0 %3141 }
 0x7b3   : > { %8531 = vst [vmem:[#allocation39_spill] sm:$0xff] %v7837_v13  ;;  %8533 = vst [vmem:[#allocation29_spill] sm:$0xff] %v7843_v47  ;;  %v2781_v13 = vmul.f32 %v4929_v59, %v8534_v53  ;;  %v2779_v59 = vmul.f32 %v4933_v17, %v8537_v12  ;;  %v2370_v53 = vmul.f32 %v4931_v22, %v8538_v57  ;;  %v8540_v22 = vld [vmem:[#allocation21_spill] sm:$0xff] }
 0x7b4   : > { %3244 = vperm.xlu0 %4526, %v7660_v8   ;;  %v2368_v17 = vmul.f32 %v4935_v7, %v8540_v22 }
 0x7b6   : > { %v2844_v35 = vpop.permute.xlu1 %2843 }
 0x7b7   : > { %v2864_v46 = vmul.f32 %v2844_v35, %v2783_v30  ;;  %3665 = vperm.xlu1 %4527, %v8530_v38   ;;  %v8536_v30 = vld [vmem:[#allocation18_spill] sm:$0xff] }
 0x7b8   : > { %4529 = vset.pattern.permute.xlu0 %v8513_v11  ;;  %v3492_v35 = vsub.f32 %v8536_v30, %v7581_v37 }
 0x7b9   : > { %4332 = vmatprep.subr.mxu1 %v2864_v46 }
 0x7ba   : > { %v2840_v61 = vpop.permute.xlu1 %2839  ;;  %4333 = vmatpush3.msra.mxu1 %v2864_v46  ;;  %v2431_v47 = vpop.permute.xlu0 %2430 }
 0x7bb   : > { %v2863_v38 = vmul.f32 %v2840_v61, %v2781_v13  ;;  %v2454_v34 = vmul.f32 %v2431_v47, %v2372_v20  ;;  %3653 = vperm.xlu1 %4527, %v7660_v8   ;;  %v4937_v46 = vpop.eup %4936  ;;  %v3508_v13 = vmul.f32 1.442695, %v3492_v35 }
 0x7bc   : > { %v4939_v8 = vpop.eup %4938  ;;  %v2777_v15 = vmul.f32 %v4937_v46, %v8539_v50 }
 0x7bd   : > { %4299 = vmatprep.subr.mxu0 %v2454_v34  ;;  %4334 = vmatprep.subr.mxu1 %v2863_v38  ;;  %v4941_v61 = vpop.eup %4940  ;;  %4954 = vpow2.f32 %v3508_v13 }
 0x7be   : > { %v2836_v10 = vpop.permute.xlu1 %2835  ;;  %4300 = vmatpush3.msra.mxu0 %v2454_v34  ;;  %4335 = vmatpush3.msra.mxu1 %v2863_v38  ;;  %v2427_v37 = vpop.permute.xlu0 %2426  ;;  %4956 = vrcp.f32 %v7643_v23  ;;  %v2775_v12 = vmul.f32 %v4941_v61, %v8541_v26 }
 0x7bf   : > { %v2862_v20 = vmul.f32 %v2836_v10, %v2779_v59  ;;  %v2453_v47 = vmul.f32 %v2427_v37, %v2370_v53  ;;  %4528 = vset.pattern.permute.xlu1 %v8514_v9  ;;  %v4943_v45 = vpop.eup %4942  ;;  %4958 = vrcp.f32 %v7650_v18  ;;  %v8542_v59 = vld [vmem:[#allocation28_spill] sm:$0xff]  ;;  %v8544_v18 = vld [vmem:[#allocation6_spill] sm:$0xff] }
 0x7c0   : > { %v2366_v57 = vmul.f32 %v4939_v8, %v8542_v59  ;;  %v4945_v7 = vpop.eup %4944  ;;  %v8543_v10 = vld [vmem:[#allocation32_spill] sm:$0xff]  ;;  %4960 = vrcp.f32 %v7648_v63  ;;  %v8545_v8 = vld [vmem:[#allocation5_spill] sm:$0xff] }
 0x7c1   : > { %4301 = vmatprep.subr.mxu0 %v2453_v47  ;;  %4336 = vmatprep.subr.mxu1 %v2862_v20  ;;  %v3083_v37 = vsub.f32 %v8543_v10, %v7557_v19  ;;  %v4947_v23 = vpop.eup %4946  ;;  %4962 = vrcp.f32 %v7663_v49  ;;  %v2364_v50 = vmul.f32 %v4943_v45, %v8545_v8  ;;  %v8546_v49 = vld [vmem:[#allocation7_spill] sm:$0xff]  ;;  %v8551_v8 = vld [vmem:[#allocation22_spill] sm:$0xff] }
 0x7c2   : > { %v2832_v34 = vpop.permute.xlu1 %2831  ;;  %4302 = vmatpush3.msra.mxu0 %v2453_v47  ;;  %4337 = vmatpush3.msra.mxu1 %v2862_v20  ;;  %v2423_v30 = vpop.permute.xlu0 %2422  ;;  %v2773_v47 = vmul.f32 %v4945_v7, %v8544_v18  ;;  %4964 = vrcp.f32 %v7657_v33 }
 0x7c3   : > { %v2861_v35 = vmul.f32 %v2832_v34, %v2777_v15  ;;  %v2452_v38 = vmul.f32 %v2423_v30, %v2368_v17  ;;  %v4949_v15 = vpop.eup %4948  ;;  %v3099_v61 = vmul.f32 1.442695, %v3083_v37  ;;  %4966 = vrcp.f32 %v7674_v44  ;;  %v8548_v44 = vld [vmem:[#allocation24_spill] sm:$0xff] }
 0x7c4   : > { %v4951_v63 = vpop.eup %4950  ;;  %v2771_v30 = vmul.f32 %v4949_v15, %v8546_v49 }
 0x7c5   : > { %4303 = vmatprep.subr.mxu0 %v2452_v38  ;;  %4338 = vmatprep.subr.mxu1 %v2861_v35  ;;  %v4953_v45 = vpop.eup %4952  ;;  %4968 = vpow2.f32 %v3099_v61 }
 0x7c6   : > { %v2828_v53 = vpop.permute.xlu1 %2827  ;;  %4304 = vmatpush3.msra.mxu0 %v2452_v38  ;;  %4339 = vmatpush3.msra.mxu1 %v2861_v35  ;;  %v2419_v46 = vpop.permute.xlu0 %2418  ;;  %v8547_v35 = vld [vmem:[#allocation8_spill] sm:$0xff]  ;;  %4970 = vrcp.f32 %v7666_v43 }
 0x7c7   : > { %v2860_v13 = vmul.f32 %v2828_v53, %v2775_v12  ;;  %v2451_v20 = vmul.f32 %v2419_v46, %v2366_v57  ;;  %v2362_v38 = vmul.f32 %v4947_v23, %v8547_v35  ;;  %4972 = vrcp.f32 %v7735_v55  ;;  %v8549_v46 = vld [vmem:[#allocation36_spill] sm:$0xff]  ;;  %v8550_v55 = vld [vmem:[#allocation3_spill] sm:$0xff] }
 0x7c8   : > { %v2769_v53 = vmul.f32 %v4953_v45, %v8548_v44  ;;  %v2360_v10 = vmul.f32 %v4951_v63, %v8549_v46  ;;  %4974 = vrcp.f32 %v7739_v54  ;;  %v8553_v63 = vld [vmem:[#allocation9_spill] sm:$0xff] }
 0x7c9   : > { %4305 = vmatprep.subr.mxu0 %v2451_v20  ;;  %4340 = vmatprep.subr.mxu1 %v2860_v13  ;;  %4976 = vrcp.f32 %v7741_v32  ;;  %v8552_v32 = vld [vmem:[#allocation10_spill] sm:$0xff] }
 0x7ca   : > { %v2824_v22 = vpop.permute.xlu1 %2823  ;;  %4306 = vmatpush3.msra.mxu0 %v2451_v20  ;;  %4341 = vmatpush3.msra.mxu1 %v2860_v13  ;;  %v2415_v17 = vpop.permute.xlu0 %2414  ;;  %4978 = vrcp.f32 %v7747_v42 }
 0x7cb   : > { %v2859_v19 = vmul.f32 %v2824_v22, %v2773_v47  ;;  %v2450_v34 = vmul.f32 %v2415_v17, %v2364_v50  ;;  %v7877_v7 = vpop.eup %4954  ;;  %4980 = vrcp.f32 %v7749_v41  ;;  %v8554_v41 = vld [vmem:[#allocation37_spill] sm:$0xff] }
 0x7cc   : > { %v4957_v33 = vpop.eup %4956  ;;  %4982 = vrcp.f32 %v7755_v21 }
 0x7cd   : > { %4307 = vmatprep.subr.mxu0 %v2450_v34  ;;  %4342 = vmatprep.subr.mxu1 %v2859_v19  ;;  %v4959_v37 = vpop.eup %4958  ;;  %v2358_v50 = vmul.f32 %v4957_v33, %v8551_v8  ;;  %4984 = vrcp.f32 %v7757_v6  ;;  %v8556_v6 = vld [vmem:[#allocation38_spill] sm:$0xff] }
 0x7ce   : > { %v2820_v26 = vpop.permute.xlu1 %2819  ;;  %4308 = vmatpush3.msra.mxu0 %v2450_v34  ;;  %4343 = vmatpush3.msra.mxu1 %v2859_v19  ;;  %v2411_v12 = vpop.permute.xlu0 %2410  ;;  %v2767_v47 = vmul.f32 %v4959_v37, %v8550_v55  ;;  %4986 = vrcp.f32 %v7763_v14 }
 0x7cf   : > { %v2858_v59 = vmul.f32 %v2820_v26, %v2771_v30  ;;  %v2449_v57 = vmul.f32 %v2411_v12, %v2362_v38  ;;  %v4961_v43 = vpop.eup %4960  ;;  %4988 = vrcp.f32 %v7761_v2 }
 0x7d0   : > { %v4963_v15 = vpop.eup %4962  ;;  %v2356_v49 = vmul.f32 %v4961_v43, %v8553_v63  ;;  %4990 = vrcp.f32 %v7767_v62  ;;  %v8570_v62 = vld [vmem:[#allocation35_spill] sm:$0xff] }
 0x7d1   : > { %4309 = vmatprep.subr.mxu0 %v2449_v57  ;;  %4344 = vmatprep.subr.mxu1 %v2858_v59  ;;  %v4965_v34 = vpop.eup %4964  ;;  %v2765_v54 = vmul.f32 %v4963_v15, %v8552_v32  ;;  %4992 = vrcp.f32 %v7775_v4 }
 0x7d2   : > { %v2816_v13 = vpop.permute.xlu1 %2815  ;;  %4310 = vmatpush3.msra.mxu0 %v2449_v57  ;;  %4345 = vmatpush3.msra.mxu1 %v2858_v59  ;;  %v2407_v20 = vpop.permute.xlu0 %2406  ;;  %v8555_v57 = vld [vmem:[#allocation11_spill] sm:$0xff]  ;;  %4994 = vrcp.f32 %v7784_v5 }
 0x7d3   : > { %v2857_v23 = vmul.f32 %v2816_v13, %v2769_v53  ;;  %v2448_v18 = vmul.f32 %v2407_v20, %v2360_v10  ;;  %3540 = vadd.xlane.f32.xlu0 %v7877_v7  ;;  %v4967_v30 = vpop.eup %4966  ;;  %v2354_v33 = vmul.f32 %v4965_v34, %v8555_v57  ;;  %v8560_v57 = vld [vmem:[#allocation57_spill] sm:$0xff]  ;;  %4996 = vrcp.f32 %v7769_v1 }
 0x7d4   : > { %v7892_v12 = vpop.eup %4968  ;;  %v2763_v59 = vmul.f32 %v4967_v30, %v8554_v41  ;;  %v8558_v41 = vld [vmem:[#allocation56_spill] sm:$0xff]  ;;  %4998 = vrcp.f32 %v7794_v39  ;;  %v8571_v39 = vld [vmem:[#allocation26_spill] sm:$0xff] }
 0x7d5   : > { %4311 = vmatprep.subr.mxu0 %v2448_v18  ;;  %4346 = vmatprep.subr.mxu1 %v2857_v23  ;;  %v4971_v42 = vpop.eup %4970  ;;  %5000 = vrcp.f32 %v7778_v58 }
 0x7d6   : > { %v2812_v22 = vpop.permute.xlu1 %2811  ;;  %4312 = vmatpush3.msra.mxu0 %v2448_v18  ;;  %4347 = vmatpush3.msra.mxu1 %v2857_v23  ;;  %v2403_v17 = vpop.permute.xlu0 %2402  ;;  %v2352_v20 = vmul.f32 %v4971_v42, %v8556_v6  ;;  %v5152_v42 = vld [vmem:[%s8138_s5] sm:$0xff]  ;;  %5002 = vrcp.f32 %v7788_v29 }
 0x7d7   : > { %v2856_v61 = vmul.f32 %v2812_v22, %v2767_v47  ;;  %v2447_v19 = vmul.f32 %v2403_v17, %v2358_v50  ;;  %v4973_v44 = vpop.eup %4972  ;;  %5004 = vrcp.f32 %v7798_v16 }
 0x7d8   : > { %v4975_v13 = vpop.eup %4974  ;;  %v2761_v21 = vmul.f32 %v4973_v44, %v7468_v3  ;;  %v8563_v44 = vld [vmem:[#allocation52_spill] sm:$0xff]  ;;  %5006 = vrcp.f32 %v7805_v60 }
 0x7d9   : > { %4313 = vmatprep.subr.mxu0 %v2447_v19  ;;  %4348 = vmatprep.subr.mxu1 %v2856_v61  ;;  %v4977_v23 = vpop.eup %4976  ;;  %v2350_v15 = vmul.f32 %v4975_v13, %v7479_v27  ;;  %5008 = vrcp.f32 %v7802_v52 }
 0x7da   : > { %v2808_v35 = vpop.permute.xlu1 %2807  ;;  %4314 = vmatpush3.msra.mxu0 %v2447_v19  ;;  %4349 = vmatpush3.msra.mxu1 %v2856_v61  ;;  %v2399_v38 = vpop.permute.xlu0 %2398  ;;  %v2759_v50 = vmul.f32 %v4977_v23, %v7473_v28 }
 0x7db   : > { %v2855_v45 = vmul.f32 %v2808_v35, %v2765_v54  ;;  %v2446_v26 = vmul.f32 %v2399_v38, %v2356_v49  ;;  %v4979_v8 = vpop.eup %4978  ;;  %5010 = vrcp.f32 %v7812_v31  ;;  %v8578_v31 = vld [vmem:[#allocation40_spill] sm:$0xff] }
 0x7dc   : > { %v4981_v22 = vpop.eup %4980  ;;  %v2757_v32 = vmul.f32 %v4979_v8, %v7487_v48  ;;  %v8569_v8 = vld [vmem:[#allocation12_spill] sm:$0xff]  ;;  %5012 = vrcp.f32 %v7809_v40  ;;  %v8581_v40 = vld [vmem:[#allocation69_spill] sm:$0xff] }
 0x7dd   : > { %4315 = vmatprep.subr.mxu0 %v2446_v26  ;;  %4350 = vmatprep.subr.mxu1 %v2855_v45  ;;  %v4983_v34 = vpop.eup %4982  ;;  %v2348_v54 = vmul.f32 %v4981_v22, %v7491_v56 }
 0x7de   : > { %v2804_v53 = vpop.permute.xlu1 %2803  ;;  %4316 = vmatpush3.msra.mxu0 %v2446_v26  ;;  %4351 = vmatpush3.msra.mxu1 %v2855_v45  ;;  %v2395_v46 = vpop.permute.xlu0 %2394  ;;  %v2755_v35 = vmul.f32 %v4983_v34, %v7499_v51  ;;  %v5150_v26 = vld [vmem:[%s5350_s25 + $0x70] sm:$0xff]  ;;  %v7914_v51 = vld [vmem:[%s8138_s5 + $0x8] sm:$0xff] }
 0x7df   : > { %v2854_v10 = vmul.f32 %v2804_v53, %v2763_v59  ;;  %v2445_v37 = vmul.f32 %v2395_v46, %v2354_v33  ;;  %3131 = vadd.xlane.f32.xlu1 %v7892_v12  ;;  %v4985_v63 = vpop.eup %4984  ;;  %v8559_v59 = vld [vmem:[#allocation51_spill] sm:$0xff]  ;;  %v8564_v53 = vld [vmem:[#allocation60_spill] sm:$0xff]  ;;  %v8566_v46 = vld [vmem:[#allocation53_spill] sm:$0xff] }
 0x7e0   : > { %v8562_v33 = vld [vmem:[#allocation59_spill] sm:$0xff]  ;;  %v4987_v14 = vpop.eup %4986 }
 0x7e1   : > { %4317 = vmatprep.subr.mxu0 %v2445_v37  ;;  %4352 = vmatprep.subr.mxu1 %v2854_v10  ;;  %v4989_v2 = vpop.eup %4988 }
 0x7e2   : > { %v2800_v18 = vpop.permute.xlu1 %2799  ;;  %4318 = vmatpush3.msra.mxu0 %v2445_v37  ;;  %4353 = vmatpush3.msra.mxu1 %v2854_v10  ;;  %v2391_v43 = vpop.permute.xlu0 %2390  ;;  %v8567_v10 = vld [vmem:[#allocation54_spill] sm:$0xff] }
 0x7e3   : > { %v2853_v55 = vmul.f32 %v2800_v18, %v2761_v21  ;;  %v2444_v47 = vmul.f32 %v2391_v43, %v2352_v20 }
 0x7e5   : > { %4319 = vmatprep.subr.mxu0 %v2444_v47  ;;  %4354 = vmatprep.subr.mxu1 %v2853_v55 }
 0x7e6   : > { %v2796_v17 = vpop.permute.xlu1 %2795  ;;  %4320 = vmatpush3.msra.mxu0 %v2444_v47  ;;  %4355 = vmatpush3.msra.mxu1 %v2853_v55  ;;  %v2387_v3 = vpop.permute.xlu0 %2386 }
 0x7e7   : > { %v2852_v61 = vmul.f32 %v2796_v17, %v2759_v50  ;;  %v2443_v19 = vmul.f32 %v2387_v3, %v2350_v15  ;;  %v3603_v50 = vmul.f32 %v4989_v2, %v8569_v8  ;;  %v7976_v17 = vld [vmem:[%s8139_s6 + $0x8] sm:$0xff]  ;;  %v4189_v3 = vpop.f32.mrf.mxu0 }
 0x7e8   : > { %v897_v34 = vmul.f32 %v4189_v3, %v7976_v17 }
 0x7e9   : > { %3661 = vperm.xlu0 %4529, %v7430_v25   ;;  %4321 = vmatprep.subr.mxu0 %v2443_v19  ;;  %v2346_v25 = vmul.f32 %v4985_v63, %v7505_v36  ;;  %v8557_v36 = vld [vmem:[#allocation55_spill] sm:$0xff] }
 0x7ea   : > { %4356 = vmatprep.subr.mxu1 %v2852_v61  ;;  %v2792_v28 = vpop.permute.xlu1 %2791  ;;  %4322 = vmatpush3.msra.mxu0 %v2443_v19  ;;  %v2383_v27 = vpop.permute.xlu0 %2382  ;;  %v7981_v19 = vld [vmem:[%s8139_s6] sm:$0xff] }
 0x7eb   : > { %v2851_v49 = vmul.f32 %v2792_v28, %v2757_v32  ;;  %4357 = vmatpush3.msra.mxu1 %v2852_v61  ;;  %v2442_v30 = vmul.f32 %v2383_v27, %v2348_v54  ;;  %v4224_v61 = vpop.f32.mrf.mxu1  ;;  %v887_v54 = vpop.f32.mrf.mxu0 }
 0x7ec   : > { %v1306_v32 = vmul.f32 %v4224_v61, %v7976_v17  ;;  %v896_v28 = vmul.f32 %v887_v54, %v7981_v19 }
 0x7ed   : > { %3657 = vperm.xlu0 %4529, %v7653_v24   ;;  %4323 = vmatprep.subr.mxu0 %v2442_v30  ;;  %v1296_v63 = vpop.f32.mrf.mxu1 }
 0x7ee   : > { %4358 = vmatprep.subr.mxu1 %v2851_v49  ;;  %v2788_v48 = vpop.permute.xlu1 %2787  ;;  %4324 = vmatpush3.msra.mxu0 %v2442_v30  ;;  %v2379_v56 = vpop.permute.xlu0 %2378  ;;  %v1305_v27 = vmul.f32 %v1296_v63, %v7981_v19 }
 0x7ef   : > { %v2850_v38 = vmul.f32 %v2788_v48, %v2755_v35  ;;  %4359 = vmatpush3.msra.mxu1 %v2851_v49  ;;  %v2441_v45 = vmul.f32 %v2379_v56, %v2346_v25  ;;  %v4259_v49 = vpop.f32.mrf.mxu0  ;;  %v4294_v30 = vpop.f32.mrf.mxu1  ;;  %v898_v35 = vadd.f32 %v897_v34, %v896_v28 }
 0x7f0   : > { %3252 = vperm.xlu1 %4528, %v5150_v26   ;;  %v1307_v25 = vadd.f32 %v1306_v32, %v1305_v27  ;;  %v1715_v48 = vmul.f32 %v4259_v49, %v7976_v17  ;;  %v2124_v56 = vmul.f32 %v4294_v30, %v7976_v17  ;;  %v4991_v28 = vpop.eup %4990 }
 0x7f1   : > { %3649 = vperm.xlu0 %4529, %v7669_v0   ;;  %4325 = vmatprep.subr.mxu0 %v2441_v45  ;;  %v899_v26 = vrot.slane %v898_v35, 4  ;;  %v3601_v49 = vmul.f32 %v4991_v28, %v8570_v62  ;;  %v4993_v30 = vpop.eup %4992 }
 0x7f2   : > { %4360 = vmatprep.subr.mxu1 %v2850_v38  ;;  %4326 = vmatpush3.msra.mxu0 %v2441_v45  ;;  %v2114_v45 = vpop.f32.mrf.mxu1  ;;  %v3599_v58 = vmul.f32 %v4993_v30, %v8571_v39  ;;  %v8582_v30 = vld [vmem:[#allocation42_spill] sm:$0xff]  ;;  %v8583_v39 = vld [vmem:[#allocation72_spill] sm:$0xff] }
 0x7f3   : > { %4361 = vmatpush3.msra.mxu1 %v2850_v38  ;;  %4328 = vmatmul.mubr.f32.vlgmr.msra.gmra.mxu0 %v7914_v51  ;;  %v1705_v38 = vpop.f32.mrf.mxu0 }
 0x7f4   : > { %3248 = vperm.xlu1 %4528, %v7653_v24   ;;  %4363 = vmatmul.mubr.f32.vlgmr.msra.gmra.mxu1 %v7914_v51  ;;  %v8561_v24 = vld [vmem:[#allocation58_spill] sm:$0xff] }
 0x7f5   : > { %3629 = vperm.xlu0 %4529, %v8557_v36   ;;  %4432 = vmatprep.mubr.f32.mxu1 %v5152_v42 }
 0x7f6   : > { %4397 = vmatprep.mubr.f32.mxu0 %v5152_v42  ;;  %v1714_v42 = vmul.f32 %v1705_v38, %v7981_v19  ;;  %v8572_v38 = vld [vmem:[#allocation20_spill] sm:$0xff] }
 0x7f8   : > { %3240 = vperm.xlu1 %4528, %v7669_v0   ;;  %v8565_v0 = vld [vmem:[#allocation61_spill] sm:$0xff] }
 0x7f9   : > { %3625 = vperm.xlu0 %4529, %v8558_v41  }
 0x7fc   : > { %3236 = vperm.xlu1 %4528, %v8559_v59  }
 0x7fd   : > { %3621 = vperm.xlu0 %4529, %v8560_v57  }
 0x800   : > { %4530 = vset.pattern.permute.xlu1 %v8513_v11 }
 0x801   : > { %3645 = vperm.xlu1 %4530, %v8559_v59   ;;  %3617 = vperm.xlu0 %4529, %v8561_v24   ;;  %v900_v59 = vadd.f32 %v899_v26, %v898_v35 }
 0x805   : > { %4531 = vset.pattern.permute.xlu1 %v8514_v9  ;;  %3613 = vperm.xlu0 %4529, %v8562_v33  }
 0x806   : > { %3232 = vperm.xlu1 %4531, %v8563_v44  }
 0x809   : > { %3609 = vperm.xlu0 %4529, %v8564_v53  }
 0x80a   : > { %4532 = vset.pattern.permute.xlu1 %v8513_v11 }
 0x80b   : > { %3641 = vperm.xlu1 %4532, %v8563_v44   ;;  %v901_v44 = vrot.slane %v900_v59, 2 }
 0x80d   : > { %3605 = vperm.xlu0 %4529, %v8565_v0  }
 0x80f   : > { %4533 = vset.pattern.permute.xlu1 %v8514_v9 }
 0x810   : > { %3228 = vperm.xlu1 %4533, %v8566_v46  }
 0x814   : > { %4534 = vset.pattern.permute.xlu1 %v8513_v11 }
 0x815   : > { %3637 = vperm.xlu1 %4534, %v8566_v46  }
 0x819   : > { %4535 = vset.pattern.permute.xlu1 %v8514_v9 }
 0x81a   : > { %3224 = vperm.xlu1 %4535, %v8567_v10  }
 0x81b   : > { %v7944_v37 = vpop.xlane.xlu0 %3139 }
 0x81e   : > { %4536 = vset.pattern.permute.xlu1 %v8513_v11  ;;  %v8568_v11 = vld [vmem:[#allocation4_spill] sm:$0xff] }
 0x81f   : > { %v7947_v13 = vpop.xlane.xlu1 %3548  ;;  %3633 = vperm.xlu1 %4536, %v8567_v10   ;;  %v7950_v21 = vpop.xlane.xlu0 %3546  ;;  %v3194_v18 = vmul.f32 %v4987_v14, %v8568_v11  ;;  %v902_v10 = vadd.f32 %v901_v44, %v900_v59 }
 0x823   : > { %v7953_v6 = vpop.xlane.xlu1 %3137  ;;  %4537 = vset.pattern.permute.xlu1 %v8514_v9  ;;  %v7957_v20 = vpop.xlane.xlu0 %3133 }
 0x824   : > { %3220 = vperm.xlu1 %4537, %v8557_v36   ;;  %v1308_v36 = vrot.slane %v1307_v25, 4 }
 0x827   : > { %v7959_v23 = vpop.xlane.xlu1 %3135 }
 0x828   : > { %3216 = vperm.xlu1 %4537, %v8558_v41   ;;  %v2123_v41 = vmul.f32 %v2114_v45, %v7981_v19 }
 0x82b   : > { %v7963_v43 = vpop.xlane.xlu1 %3544  ;;  %v3257_v55 = vpop.permute.xlu0 %3256 }
 0x82c   : > { %v3274_v47 = vmul.f32 %v3257_v55, %v3194_v18  ;;  %3212 = vperm.xlu1 %4537, %v8560_v57   ;;  %v1309_v57 = vadd.f32 %v1308_v36, %v1307_v25  ;;  %v903_v55 = vrot.slane %v902_v10, 1  ;;  %v4995_v25 = vpop.eup %4994  ;;  %v8573_v36 = vld [vmem:[#allocation13_spill] sm:$0xff] }
 0x82d   : > { %v4997_v1 = vpop.eup %4996  ;;  %v3597_v16 = vmul.f32 %v4995_v25, %v8572_v38 }
 0x82e   : > { %4365 = vmatprep.subr.mxu0 %v3274_v47 }
 0x82f   : > { %v7966_v9 = vpop.xlane.xlu1 %3542  ;;  %4366 = vmatpush3.msra.mxu0 %v3274_v47  ;;  %v3245_v63 = vpop.permute.xlu0 %3244 }
 0x830   : > { %3208 = vperm.xlu1 %4537, %v8561_v24   ;;  %v1716_v24 = vadd.f32 %v1715_v48, %v1714_v42  ;;  %v4999_v48 = vpop.eup %4998  ;;  %v3192_v42 = vmul.f32 %v4997_v1, %v8573_v36  ;;  %v8586_v36 = vld [vmem:[#allocation44_spill] sm:$0xff] }
 0x831   : > { %v5001_v60 = vpop.eup %5000 }
 0x833   : > { %v3666_v15 = vpop.permute.xlu1 %3665 }
 0x834   : > { %v3683_v22 = vmul.f32 %v3666_v15, %v3603_v50  ;;  %3204 = vperm.xlu1 %4537, %v8562_v33   ;;  %v2125_v33 = vadd.f32 %v2124_v56, %v2123_v41  ;;  %v904_v50 = vadd.f32 %v903_v55, %v902_v10  ;;  %v8574_v41 = vld [vmem:[#allocation33_spill] sm:$0xff] }
 0x835   : > { %v3595_v59 = vmul.f32 %v4999_v48, %v8574_v41  ;;  %v8587_v41 = vld [vmem:[#allocation73_spill] sm:$0xff] }
 0x836   : > { %4400 = vmatprep.subr.mxu1 %v3683_v22  ;;  %v2126_v46 = vrot.slane %v2125_v33, 4  ;;  %905 = vst [vmem:[#allocation2] sm:$0x1] %v904_v50 }
 0x837   : > { %4401 = vmatpush3.msra.mxu1 %v3683_v22  ;;  %v3654_v4 = vpop.permute.xlu1 %3653 }
 0x838   : > { %3200 = vperm.xlu1 %4537, %v8564_v53   ;;  %v1310_v53 = vrot.slane %v1309_v57, 2  ;;  %v2127_v18 = vadd.f32 %v2126_v46, %v2125_v33  ;;  %v3680_v26 = vmul.f32 %v3654_v4, %v3597_v16 }
 0x83a   : > { %v1311_v14 = vadd.f32 %v1310_v53, %v1309_v57  ;;  %v2128_v8 = vrot.slane %v2127_v18, 2  ;;  %v5003_v53 = vpop.eup %5002 }
 0x83b   : > { %v5005_v52 = vpop.eup %5004 }
 0x83c   : > { %3196 = vperm.xlu1 %4537, %v8565_v0   ;;  %v1717_v0 = vrot.slane %v1716_v24, 4  ;;  %v1312_v47 = vrot.slane %v1311_v14, 1  ;;  %v2129_v3 = vadd.f32 %v2128_v8, %v2127_v18  ;;  %v5007_v8 = vpop.eup %5006 }
 0x83e   : > { %v1718_v11 = vadd.f32 %v1717_v0, %v1716_v24  ;;  %v1313_v15 = vadd.f32 %v1312_v47, %v1311_v14  ;;  %v2130_v34 = vrot.slane %v2129_v3, 1  ;;  %v8575_v0 = vld [vmem:[#allocation14_spill] sm:$0xff]  ;;  %v8576_v14 = vld [vmem:[#allocation16_spill] sm:$0xff] }
 0x83f   : > { %v3190_v46 = vmul.f32 %v5001_v60, %v8575_v0  ;;  %v8577_v47 = vld [vmem:[#allocation34_spill] sm:$0xff] }
 0x840   : > { %v1719_v2 = vrot.slane %v1718_v11, 2  ;;  %1314 = vst [vmem:[#allocation2 + $0x1] sm:$0x1] %v1313_v15  ;;  %v2131_v54 = vadd.f32 %v2130_v34, %v2129_v3  ;;  %v5009_v3 = vpop.eup %5008 }
 0x841   : > { %v5011_v62 = vpop.eup %5010 }
 0x842   : > { %v1720_v22 = vadd.f32 %v1719_v2, %v1718_v11  ;;  %2132 = vst [vmem:[#allocation2 + $0x3] sm:$0x1] %v2131_v54  ;;  %v3188_v11 = vmul.f32 %v5003_v53, %v8576_v14  ;;  %v3186_v2 = vmul.f32 %v5005_v52, %v8577_v47  ;;  %v8580_v54 = vld [vmem:[#allocation31_spill] sm:$0xff]  ;;  %v3182_v4 = vmul.f32 %v5011_v62, %v8582_v30  ;;  %v8591_v14 = vld [vmem:[#allocation29_spill] sm:$0xff] }
 0x843   : > { %v8590_v53 = vld [vmem:[#allocation43_spill] sm:$0xff] }
 0x844   : > { %v1721_v61 = vrot.slane %v1720_v22, 1  ;;  %v3271_v55 = vmul.f32 %v3245_v63, %v3188_v11  ;;  %v3593_v63 = vmul.f32 %v5009_v3, %v8580_v54  ;;  %v8594_v3 = vld [vmem:[#allocation47_spill] sm:$0xff] }
 0x846   : > { %v1722_v32 = vadd.f32 %v1721_v61, %v1720_v22  ;;  %v3184_v22 = vmul.f32 %v5007_v8, %v8578_v31  ;;  %v8593_v8 = vld [vmem:[#allocation45_spill] sm:$0xff] }
 0x848   : > { %1723 = vst [vmem:[#allocation2 + $0x2] sm:$0x1] %v1722_v32  ;;  %v8579_v32 = vld [vmem:[#allocation70_spill] sm:$0xff] }
 0x849   : > { %5014 = vrcp.f32 %v8579_v32 }
 0x84a   : > { %5016 = vrcp.f32 %v8581_v40 }
 0x84b   : > { %5018 = vrcp.f32 %v8583_v39 }
 0x85c   : > { %v7997_v27 = vpop.xlane.xlu0 %3540 }
 0x864   : > { %v3662_v35 = vpop.permute.xlu0 %3661 }
 0x865   : > { %v3682_v5 = vmul.f32 %v3662_v35, %v3601_v49 }
 0x867   : > { %4402 = vmatprep.subr.mxu1 %v3682_v5 }
 0x868   : > { %v8004_v56 = vpop.xlane.xlu1 %3131  ;;  %4403 = vmatpush3.msra.mxu1 %v3682_v5  ;;  %v3658_v29 = vpop.permute.xlu0 %3657 }
 0x869   : > { %v3681_v45 = vmul.f32 %v3658_v29, %v3599_v58  ;;  %v5013_v5 = vpop.eup %5012  ;;  %v8584_v58 = vld [vmem:[#allocation41_spill] sm:$0xff] }
 0x86a   : > { %v3591_v48 = vmul.f32 %v5013_v5, %v8584_v58  ;;  %v5015_v38 = vpop.eup %5014 }
 0x86b   : > { %4404 = vmatprep.subr.mxu1 %v3681_v45  ;;  %v5017_v60 = vpop.eup %5016 }
 0x86c   : > { %v3253_v57 = vpop.permute.xlu1 %3252  ;;  %4405 = vmatpush3.msra.mxu1 %v3681_v45  ;;  %v3650_v24 = vpop.permute.xlu0 %3649  ;;  %v3589_v0 = vmul.f32 %v5017_v60, %v8590_v53 }
 0x86d   : > { %v3273_v33 = vmul.f32 %v3253_v57, %v3192_v42  ;;  %v3679_v44 = vmul.f32 %v3650_v24, %v3595_v59  ;;  %4406 = vmatprep.subr.mxu1 %v3680_v26  ;;  %v3180_v42 = vmul.f32 %v5015_v38, %v8586_v36  ;;  %v8588_v24 = vld [vmem:[#allocation39_spill] sm:$0xff]  ;;  %v5019_v52 = vpop.eup %5018 }
 0x86e   : > { %4407 = vmatpush3.msra.mxu1 %v3680_v26  ;;  %v8585_v26 = vld [vmem:[#allocation71_spill] sm:$0xff] }
 0x86f   : > { %4367 = vmatprep.subr.mxu0 %v3273_v33  ;;  %4408 = vmatprep.subr.mxu1 %v3679_v44  ;;  %5020 = vrcp.f32 %v8585_v26 }
 0x870   : > { %v3249_v10 = vpop.permute.xlu1 %3248  ;;  %4368 = vmatpush3.msra.mxu0 %v3273_v33  ;;  %4409 = vmatpush3.msra.mxu1 %v3679_v44  ;;  %v3630_v25 = vpop.permute.xlu0 %3629  ;;  %5022 = vrcp.f32 %v8587_v41  ;;  %v8589_v33 = vld [vmem:[#allocation74_spill] sm:$0xff] }
 0x871   : > { %v3272_v18 = vmul.f32 %v3249_v10, %v3190_v46  ;;  %5024 = vrcp.f32 %v8588_v24 }
 0x872   : > { %5026 = vrcp.f32 %v8589_v33 }
 0x873   : > { %4369 = vmatprep.subr.mxu0 %v3272_v18  ;;  %5028 = vrcp.f32 %v7947_v13 }
 0x874   : > { %v3241_v50 = vpop.permute.xlu1 %3240  ;;  %4370 = vmatpush3.msra.mxu0 %v3272_v18  ;;  %v3626_v45 = vpop.permute.xlu0 %3625  ;;  %5030 = vrcp.f32 %v7950_v21  ;;  %v8592_v18 = vld [vmem:[#allocation46_spill] sm:$0xff] }
 0x875   : > { %v3270_v15 = vmul.f32 %v3241_v50, %v3186_v2  ;;  %4371 = vmatprep.subr.mxu0 %v3271_v55  ;;  %5032 = vrcp.f32 %v8591_v14 }
 0x876   : > { %4372 = vmatpush3.msra.mxu0 %v3271_v55  ;;  %5034 = vrcp.f32 %v7963_v43  ;;  %v3178_v55 = vmul.f32 %v5019_v52, %v8592_v18 }
 0x877   : > { %4373 = vmatprep.subr.mxu0 %v3270_v15  ;;  %5036 = vrcp.f32 %v7966_v9 }
 0x878   : > { %v3237_v61 = vpop.permute.xlu1 %3236  ;;  %4374 = vmatpush3.msra.mxu0 %v3270_v15  ;;  %v3622_v44 = vpop.permute.xlu0 %3621  ;;  %5038 = vrcp.f32 %v7944_v37  ;;  %v8595_v37 = vld [vmem:[#allocation49_spill] sm:$0xff] }
 0x879   : > { %v3269_v34 = vmul.f32 %v3237_v61, %v3184_v22  ;;  %5040 = vrcp.f32 %v7997_v27 }
 0x87a   : > { %5042 = vrcp.f32 %v7953_v6  ;;  %v8597_v6 = vld [vmem:[#allocation62_spill] sm:$0xff] }
 0x87b   : > { %4375 = vmatprep.subr.mxu0 %v3269_v34  ;;  %5044 = vrcp.f32 %v7959_v23  ;;  %v8599_v23 = vld [vmem:[#allocation50_spill] sm:$0xff] }
 0x87c   : > { %v3646_v28 = vpop.permute.xlu1 %3645  ;;  %4376 = vmatpush3.msra.mxu0 %v3269_v34  ;;  %v3618_v11 = vpop.permute.xlu0 %3617  ;;  %5046 = vrcp.f32 %v7957_v20 }
 0x87d   : > { %v3678_v49 = vmul.f32 %v3646_v28, %v3593_v63  ;;  %v5021_v47 = vpop.eup %5020  ;;  %v8596_v63 = vld [vmem:[#allocation48_spill] sm:$0xff]  ;;  %5048 = vrcp.f32 %v8004_v56 }
 0x87e   : > { %v5023_v21 = vpop.eup %5022  ;;  %v3587_v50 = vmul.f32 %v5021_v47, %v8593_v8 }
 0x87f   : > { %4410 = vmatprep.subr.mxu1 %v3678_v49  ;;  %v5025_v43 = vpop.eup %5024  ;;  %v3585_v9 = vmul.f32 %v5023_v21, %v8594_v3  ;;  %v8605_v21 = vld [vmem:[#allocation65_spill] sm:$0xff] }
 0x880   : > { %4411 = vmatpush3.msra.mxu1 %v3678_v49  ;;  %v3614_v15 = vpop.permute.xlu0 %3613  ;;  %v5027_v22 = vpop.eup %5026  ;;  %v3583_v54 = vmul.f32 %v5025_v43, %v8595_v37 }
 0x881   : > { %v3233_v35 = vpop.permute.xlu1 %3232  ;;  %v5029_v34 = vpop.eup %5028  ;;  %v3674_v32 = vmul.f32 %v3630_v25, %v3585_v9  ;;  %v3176_v28 = vmul.f32 %v5027_v22, %v8596_v63 }
 0x882   : > { %v3268_v1 = vmul.f32 %v3233_v35, %v3182_v4  ;;  %v5031_v27 = vpop.eup %5030  ;;  %v3673_v49 = vmul.f32 %v3626_v45, %v3583_v54  ;;  %v3581_v40 = vmul.f32 %v5029_v34, %v8597_v6 }
 0x883   : > { %v5033_v62 = vpop.eup %5032 }
 0x884   : > { %4377 = vmatprep.subr.mxu0 %v3268_v1  ;;  %v5035_v4 = vpop.eup %5034  ;;  %v3610_v35 = vpop.permute.xlu0 %3609  ;;  %v3672_v25 = vmul.f32 %v3622_v44, %v3581_v40 }
 0x885   : > { %4378 = vmatpush3.msra.mxu0 %v3268_v1  ;;  %v8598_v1 = vld [vmem:[#allocation63_spill] sm:$0xff]  ;;  %v5037_v58 = vpop.eup %5036 }
 0x886   : > { %v3642_v29 = vpop.permute.xlu1 %3641  ;;  %v3579_v39 = vmul.f32 %v5031_v27, %v8598_v1 }
 0x887   : > { %v3677_v16 = vmul.f32 %v3642_v29, %v3591_v48  ;;  %v3174_v48 = vmul.f32 %v5033_v62, %v8599_v23  ;;  %v5039_v29 = vpop.eup %5038  ;;  %v5169_v23 = vmov 0.0  }
 0x888   : > { %v3671_v38 = vmul.f32 %v3618_v11, %v3579_v39  ;;  %v5041_v36 = vpop.eup %5040  ;;  %v3606_v20 = vpop.permute.xlu0 %3605 }
 0x889   : > { %4412 = vmatprep.subr.mxu1 %v3677_v16  ;;  %v5043_v33 = vpop.eup %5042  ;;  %v3573_v53 = vmul.f32 %v5041_v36, %v7877_v7  ;;  %v8604_v7 = vld [vmem:[#allocation66_spill] sm:$0xff] }
 0x88a   : > { %4413 = vmatpush3.msra.mxu1 %v3677_v16  ;;  %v8600_v16 = vld [vmem:[#allocation67_spill] sm:$0xff]  ;;  %v5045_v14 = vpop.eup %5044  ;;  %v3778_v36 = vld [vmem:[%s8140_s7 + $0x40] sm:$0xff] }
 0x88b   : > { %v3229_v59 = vpop.permute.xlu1 %3228  ;;  %v3577_v45 = vmul.f32 %v5035_v4, %v8600_v16  ;;  %v3668_v52 = vmul.f32 %v3606_v20, %v3573_v53  ;;  %v3781_v16 = vld [vmem:[%s8140_s7 + $0x58] sm:$0xff] }
 0x88c   : > { %v3267_v57 = vmul.f32 %v3229_v59, %v3180_v42  ;;  %v8601_v59 = vld [vmem:[#allocation68_spill] sm:$0xff]  ;;  %v3773_v20 = vld [vmem:[%s8140_s7 + $0x18] sm:$0xff] }
 0x88d   : > { %v3670_v41 = vmul.f32 %v3614_v15, %v3577_v45  ;;  %v3575_v60 = vmul.f32 %v5037_v58, %v8601_v59  ;;  %v3780_v45 = vld [vmem:[%s8140_s7 + $0x50] sm:$0xff]  ;;  %v3775_v59 = vld [vmem:[%s8140_s7 + $0x28] sm:$0xff] }
 0x88e   : > { %4379 = vmatprep.subr.mxu0 %v3267_v57 }
 0x88f   : > { %4380 = vmatpush3.msra.mxu0 %v3267_v57  ;;  %v8602_v57 = vld [vmem:[#allocation15_spill] sm:$0xff]  ;;  %v3669_v44 = vmul.f32 %v3610_v35, %v3575_v60  ;;  %v3774_v60 = vld [vmem:[%s8140_s7 + $0x20] sm:$0xff] }
 0x890   : > { %v3638_v46 = vpop.permute.xlu1 %3637  ;;  %v3172_v24 = vmul.f32 %v5039_v29, %v8602_v57  ;;  %v3783_v29 = vld [vmem:[%s8140_s7 + $0x68] sm:$0xff]  ;;  %v3772_v57 = vld [vmem:[%s8140_s7 + $0x10] sm:$0xff] }
 0x891   : > { %v3676_v10 = vmul.f32 %v3638_v46, %v3589_v0 }
 0x893   : > { %4414 = vmatprep.subr.mxu1 %v3676_v10 }
 0x894   : > { %4415 = vmatpush3.msra.mxu1 %v3676_v10  ;;  %v8603_v10 = vld [vmem:[#allocation64_spill] sm:$0xff] }
 0x895   : > { %v3225_v13 = vpop.permute.xlu1 %3224  ;;  %v3170_v56 = vmul.f32 %v5043_v33, %v8603_v10  ;;  %v3770_v33 = vld [vmem:[%s8140_s7] sm:$0xff] }
 0x896   : > { %v3266_v2 = vmul.f32 %v3225_v13, %v3178_v55  ;;  %v3168_v55 = vmul.f32 %v5045_v14, %v8604_v7  ;;  %v5047_v13 = vpop.eup %5046 }
 0x897   : > { %v3166_v8 = vmul.f32 %v5047_v13, %v8605_v21 }
 0x898   : > { %4381 = vmatprep.subr.mxu0 %v3266_v2 }
 0x899   : > { %4382 = vmatpush3.msra.mxu0 %v3266_v2 }
 0x89a   : > { %v3634_v31 = vpop.permute.xlu1 %3633 }
 0x89b   : > { %v3675_v61 = vmul.f32 %v3634_v31, %v3587_v50  ;;  %v5049_v50 = vpop.eup %5048 }
 0x89c   : > { %v3164_v34 = vmul.f32 %v5049_v50, %v7892_v12 }
 0x89d   : > { %4416 = vmatprep.subr.mxu1 %v3675_v61 }
 0x89e   : > { %4417 = vmatpush3.msra.mxu1 %v3675_v61 }
 0x89f   : > { %v3221_v30 = vpop.permute.xlu1 %3220  ;;  %4418 = vmatprep.subr.mxu1 %v3674_v32 }
 0x8a0   : > { %v3265_v5 = vmul.f32 %v3221_v30, %v3176_v28  ;;  %4419 = vmatpush3.msra.mxu1 %v3674_v32 }
 0x8a1   : > { %4420 = vmatprep.subr.mxu1 %v3673_v49 }
 0x8a2   : > { %4383 = vmatprep.subr.mxu0 %v3265_v5  ;;  %4421 = vmatpush3.msra.mxu1 %v3673_v49 }
 0x8a3   : > { %v3217_v26 = vpop.permute.xlu1 %3216  ;;  %4384 = vmatpush3.msra.mxu0 %v3265_v5  ;;  %4422 = vmatprep.subr.mxu1 %v3672_v25 }
 0x8a4   : > { %v3264_v42 = vmul.f32 %v3217_v26, %v3174_v48  ;;  %4423 = vmatpush3.msra.mxu1 %v3672_v25  ;;  %v3785_v48 = vld [vmem:[%s8140_s7 + $0x78] sm:$0xff]  ;;  %v3779_v26 = vld [vmem:[%s8140_s7 + $0x48] sm:$0xff] }
 0x8a5   : > { %4424 = vmatprep.subr.mxu1 %v3671_v38 }
 0x8a6   : > { %4385 = vmatprep.subr.mxu0 %v3264_v42  ;;  %4425 = vmatpush3.msra.mxu1 %v3671_v38  ;;  %v3782_v38 = vld [vmem:[%s8140_s7 + $0x60] sm:$0xff] }
 0x8a7   : > { %v3213_v0 = vpop.permute.xlu1 %3212  ;;  %4386 = vmatpush3.msra.mxu0 %v3264_v42  ;;  %4426 = vmatprep.subr.mxu1 %v3670_v41  ;;  %v3777_v42 = vld [vmem:[%s8140_s7 + $0x38] sm:$0xff] }
 0x8a8   : > { %v3263_v46 = vmul.f32 %v3213_v0, %v3172_v24  ;;  %4427 = vmatpush3.msra.mxu1 %v3670_v41  ;;  %v3776_v41 = vld [vmem:[%s8140_s7 + $0x30] sm:$0xff]  ;;  %v3771_v24 = vld [vmem:[%s8140_s7 + $0x8] sm:$0xff] }
 0x8a9   : > { %4428 = vmatprep.subr.mxu1 %v3669_v44 }
 0x8aa   : > { %4387 = vmatprep.subr.mxu0 %v3263_v46  ;;  %4429 = vmatpush3.msra.mxu1 %v3669_v44 }
 0x8ab   : > { %v3209_v11 = vpop.permute.xlu1 %3208  ;;  %4388 = vmatpush3.msra.mxu0 %v3263_v46  ;;  %4430 = vmatprep.subr.mxu1 %v3668_v52 }
 0x8ac   : > { %v3262_v18 = vmul.f32 %v3209_v11, %v3170_v56  ;;  %4431 = vmatpush3.msra.mxu1 %v3668_v52 }
 0x8ad   : > { %4433 = vmatmul.mubr.f32.vlgmr.msra.gmra.mxu1 %v7914_v51 }
 0x8ae   : > { %4389 = vmatprep.subr.mxu0 %v3262_v18 }
 0x8af   : > { %v3205_v47 = vpop.permute.xlu1 %3204  ;;  %4390 = vmatpush3.msra.mxu0 %v3262_v18 }
 0x8b0   : > { %v3261_v2 = vmul.f32 %v3205_v47, %v3168_v55 }
 0x8b2   : > { %4391 = vmatprep.subr.mxu0 %v3261_v2 }
 0x8b3   : > { %v3201_v43 = vpop.permute.xlu1 %3200  ;;  %4392 = vmatpush3.msra.mxu0 %v3261_v2  ;;  %v4329_v15 = vpop.f32.mrf.mxu0 }
 0x8b4   : > { %v3260_v31 = vmul.f32 %v3201_v43, %v3166_v8  ;;  %v2533_v22 = vmul.f32 %v4329_v15, %v7976_v17  ;;  %v4364_v3 = vpop.f32.mrf.mxu1 }
 0x8b5   : > { %v2942_v9 = vmul.f32 %v4364_v3, %v7976_v17  ;;  %v2523_v61 = vpop.f32.mrf.mxu0 }
 0x8b6   : > { %4393 = vmatprep.subr.mxu0 %v3260_v31  ;;  %v2532_v32 = vmul.f32 %v2523_v61, %v7981_v19  ;;  %v2932_v37 = vpop.f32.mrf.mxu1 }
 0x8b7   : > { %v3197_v54 = vpop.permute.xlu1 %3196  ;;  %4394 = vmatpush3.msra.mxu0 %v3260_v31  ;;  %v2941_v27 = vmul.f32 %v2932_v37, %v7981_v19 }
 0x8b8   : > { %v3259_v63 = vmul.f32 %v3197_v54, %v3164_v34  ;;  %v2534_v28 = vadd.f32 %v2533_v22, %v2532_v32 }
 0x8b9   : > { %v2943_v62 = vadd.f32 %v2942_v9, %v2941_v27  ;;  %v3856_v9 = vld [vmem:[%s407_s18] sm:$0xff] }
 0x8ba   : > { %4395 = vmatprep.subr.mxu0 %v3259_v63  ;;  %v2535_v49 = vrot.slane %v2534_v28, 4 }
 0x8bb   : > { %4396 = vmatpush3.msra.mxu0 %v3259_v63  ;;  %v2944_v6 = vrot.slane %v2943_v62, 4 }
 0x8bc   : > { %4398 = vmatmul.mubr.f32.vlgmr.msra.gmra.mxu0 %v7914_v51  ;;  %v2536_v40 = vadd.f32 %v2535_v49, %v2534_v28  ;;  %4435 = vmatprep.subr.mxu0 %v5169_v23  ;;  %v3784_v51 = vld [vmem:[%s8140_s7 + $0x70] sm:$0xff] }
 0x8bd   : > { %v2945_v30 = vadd.f32 %v2944_v6, %v2943_v62  ;;  %4436 = vmatpush3.msra.mxu0 %v3785_v48  ;;  %4467 = vmatprep.mubr.msk.f32.mxu0 %vm5170_vm0, %v5169_v23 }
 0x8be   : > { %v2537_v4 = vrot.slane %v2536_v40, 2  ;;  %4437 = vmatprep.subr.mxu0 %v5169_v23 }
 0x8bf   : > { %v2946_v12 = vrot.slane %v2945_v30, 2  ;;  %4438 = vmatpush3.msra.mxu0 %v3784_v51  ;;  %v3884_v51 = vld [vmem:[%s8141_s8] sm:$0xff] }
 0x8c0   : > { %v2538_v35 = vadd.f32 %v2537_v4, %v2536_v40  ;;  %4439 = vmatprep.subr.mxu0 %v5169_v23 }
 0x8c1   : > { %v2947_v5 = vadd.f32 %v2946_v12, %v2945_v30  ;;  %4440 = vmatpush3.msra.mxu0 %v3783_v29 }
 0x8c2   : > { %v2539_v25 = vrot.slane %v2538_v35, 1  ;;  %4441 = vmatprep.subr.mxu0 %v5169_v23 }
 0x8c3   : > { %v2948_v1 = vrot.slane %v2947_v5, 1  ;;  %4442 = vmatpush3.msra.mxu0 %v3782_v38  ;;  %v3886_v38 = vld [vmem:[%s8142_s9] sm:$0xff] }
 0x8c4   : > { %v2540_v39 = vadd.f32 %v2539_v25, %v2538_v35  ;;  %4443 = vmatprep.subr.mxu0 %v5169_v23 }
 0x8c5   : > { %v2949_v58 = vadd.f32 %v2948_v1, %v2947_v5  ;;  %4444 = vmatpush3.msra.mxu0 %v3781_v16 }
 0x8c6   : > { %2541 = vst [vmem:[#allocation2 + $0x4] sm:$0x1] %v2540_v39  ;;  %4445 = vmatprep.subr.mxu0 %v5169_v23 }
 0x8c7   : > { %2950 = vst [vmem:[#allocation2 + $0x5] sm:$0x1] %v2949_v58  ;;  %4446 = vmatpush3.msra.mxu0 %v3780_v45 }
 0x8c8   : > { %4447 = vmatprep.subr.mxu0 %v5169_v23 }
 0x8c9   : > { %4448 = vmatpush3.msra.mxu0 %v3779_v26 }
 0x8ca   : > { %4449 = vmatprep.subr.mxu0 %v5169_v23 }
 0x8cb   : > { %4450 = vmatpush3.msra.mxu0 %v3778_v36 }
 0x8cc   : > { %4451 = vmatprep.subr.mxu0 %v5169_v23 }
 0x8cd   : > { %4452 = vmatpush3.msra.mxu0 %v3777_v42 }
 0x8ce   : > { %4453 = vmatprep.subr.mxu0 %v5169_v23 }
 0x8cf   : > { %4454 = vmatpush3.msra.mxu0 %v3776_v41 }
 0x8d0   : > { %4455 = vmatprep.subr.mxu0 %v5169_v23 }
 0x8d1   : > { %4456 = vmatpush3.msra.mxu0 %v3775_v59 }
 0x8d2   : > { %4457 = vmatprep.subr.mxu0 %v5169_v23 }
 0x8d3   : > { %4458 = vmatpush3.msra.mxu0 %v3774_v60 }
 0x8d4   : > { %4459 = vmatprep.subr.mxu0 %v5169_v23 }
 0x8d5   : > { %4460 = vmatpush3.msra.mxu0 %v3773_v20 }
 0x8d6   : > { %4461 = vmatprep.subr.mxu0 %v5169_v23 }
 0x8d7   : > { %4462 = vmatpush3.msra.mxu0 %v3772_v57 }
 0x8d8   : > { %4463 = vmatprep.subr.mxu0 %v5169_v23 }
 0x8d9   : > { %4464 = vmatpush3.msra.mxu0 %v3771_v24 }
 0x8da   : > { %4465 = vmatprep.subr.mxu0 %v5169_v23 }
 0x8db   : > { %4466 = vmatpush3.msra.mxu0 %v3770_v33 }
 0x96d   : > { %v4434_v44 = vpop.f32.mrf.mxu1 }
 0x96e   : > { %v3760_v53 = vmul.f32 %v4434_v44, %v7976_v17 }
 0x96f   : > { %v3750_v0 = vpop.f32.mrf.mxu1 }
 0x970   : > { %v3759_v46 = vmul.f32 %v3750_v0, %v7981_v19 }
 0x972   : > { %v3761_v52 = vadd.f32 %v3760_v53, %v3759_v46 }
 0x974   : > { %v3762_v10 = vrot.slane %v3761_v52, 4 }
 0x976   : > { %v3763_v56 = vadd.f32 %v3762_v10, %v3761_v52 }
 0x978   : > { %v3764_v14 = vrot.slane %v3763_v56, 2 }
 0x97a   : > { %v3765_v11 = vadd.f32 %v3764_v14, %v3763_v56 }
 0x97c   : > { %v3766_v18 = vrot.slane %v3765_v11, 1  ;;  %v4399_v7 = vpop.f32.mrf.mxu0 }
 0x97d   : > { %v3351_v47 = vmul.f32 %v4399_v7, %v7976_v17 }
 0x97e   : > { %v3767_v55 = vadd.f32 %v3766_v18, %v3765_v11  ;;  %v3341_v13 = vpop.f32.mrf.mxu0 }
 0x97f   : > { %v3350_v2 = vmul.f32 %v3341_v13, %v7981_v19 }
 0x980   : > { %3768 = vst [vmem:[#allocation2 + $0x7] sm:$0x1] %v3767_v55 }
 0x981   : > { %v3352_v21 = vadd.f32 %v3351_v47, %v3350_v2 }
 0x983   : > { %v3353_v8 = vrot.slane %v3352_v21, 4 }
 0x985   : > { %v3354_v50 = vadd.f32 %v3353_v8, %v3352_v21 }
 0x987   : > { %v3355_v43 = vrot.slane %v3354_v50, 2 }
 0x989   : > { %v3356_v15 = vadd.f32 %v3355_v43, %v3354_v50 }
 0x98b   : > { %v3357_v31 = vrot.slane %v3356_v15, 1 }
 0x98d   : > { %v3358_v22 = vadd.f32 %v3357_v31, %v3356_v15 }
 0x98f   : > { %3359 = vst [vmem:[#allocation2 + $0x6] sm:$0x1] %v3358_v22 }
 0x996   : > { %v3769_v3 = vld [vmem:[#allocation2] sm:$0xff] }
 0x997   : > { %4468 = vmatmul.mubr.f32.vlgmr.msra.gmra.mxu0 %v3769_v3 }
 0xa57   : > { %v3852_v61 = vpop.f32.mrf.mxu0 }
 0xa58   : > { %v3857_v17 = vadd.f32 %v3856_v9, %v3852_v61 }
 0xa59   : > { %v4469_v19 = vpop.f32.mrf.mxu0 }
 0xa5a   : > { %v3859_v34 = vsel %vm3858_vm1, %v3857_v17, 0.0 }
 0xa5b   : > { %3860 = vadd.xlane.f32.xlu1 %v3859_v34 }
 0xae4   : > { %v3861_v32 = vpop.xlane.xlu1 %3860 }
 0xae5   : > { %v3862_v37 = vrot.slane %v3861_v32, 4 }
 0xae7   : > { %v3863_v54 = vadd.f32 %v3862_v37, %v3861_v32 }
 0xae9   : > { %v3864_v27 = vrot.slane %v3863_v54, 2 }
 0xaeb   : > { %v3865_v63 = vadd.f32 %v3864_v27, %v3863_v54 }
 0xaed   : > { %v3866_v28 = vrot.slane %v3865_v63, 1 }
 0xaef   : > { %v3867_v62 = vadd.f32 %v3866_v28, %v3865_v63 }
 0xaf1   : > { %v3868_v49 = vmul.f32 0.0078125, %v3867_v62 }
 0xaf3   : > { %v3869_v6 = vsub.f32 %v3857_v17, %v3868_v49 }
 0xaf5   : > { %v3870_v40 = vmul.f32 %v3869_v6, %v3869_v6 }
 0xaf7   : > { %v3871_v30 = vsel %vm3858_vm1, %v3870_v40, 0.0 }
 0xaf8   : > { %3872 = vadd.xlane.f32.xlu0 %v3871_v30 }
 0xb81   : > { %v3873_v4 = vpop.xlane.xlu0 %3872 }
 0xb82   : > { %v3874_v12 = vrot.slane %v3873_v4, 4 }
 0xb84   : > { %v3875_v35 = vadd.f32 %v3874_v12, %v3873_v4 }
 0xb86   : > { %v3876_v5 = vrot.slane %v3875_v35, 2 }
 0xb88   : > { %v3877_v25 = vadd.f32 %v3876_v5, %v3875_v35 }
 0xb8a   : > { %v3878_v1 = vrot.slane %v3877_v25, 1 }
 0xb8c   : > { %v3879_v39 = vadd.f32 %v3878_v1, %v3877_v25 }
 0xb8e   : > { %v3880_v58 = vmul.f32 0.0078125, %v3879_v39 }
 0xb90   : > { %v3881_v23 = vadd.f32 1e-05, %v3880_v58 }
 0xb92   : > { %5050 = vrsqrt.f32 %v3881_v23 }
 0xb9f   : > { %v5051_v48 = vpop.eup %5050 }
 0xba0   : > { %v3883_v29 = vmul.f32 %v5051_v48, %v3869_v6 }
 0xba2   : > { %v3885_v16 = vmul.f32 %v3884_v51, %v3883_v29 }
 0xba4   : > { %v3887_v45 = vadd.f32 %v3886_v38, %v3885_v16 }
 0xba6   : > { %3888 = vst.msk [vmem:[%s411_s27] sm:$0xff] %vm3858_vm1, %v3887_v45 }
 0xba7 PF: > { %s20_s13 = sadd.s32 1, %s5159_s13  }
 0xba8   : > { %p17_p4 = scmp.ge.s32.totalorder %s20_s13, 4  }
 0xbaa   :  { %19 = sbr.rel (!%p17_p4) target bundleno = 1 (0x1), region = 99 }

</bundles_post_ra>
